<compile_context>
chip_gen: v7x
topology: tpu7x:2x2x1
jax: 0.10.0
libtpu: 0.0.40
codegen_flags: <defaults>
</compile_context>

<pallas_src>
import functools

import jax
import jax.numpy as jnp
from jax.experimental import pallas as pl
from jax.experimental.pallas import tpu as pltpu


def _fused_conv_block_kernel(x_ref, w1_ref, b1_ref, w2_ref, b2_ref, o_ref,
                             xpad_ref, mid_ref, *, mxu_dtype):
    # x_ref : (1, H, W, Cin)     one batch element, NHWC
    # w1_ref: (3, 3, Cin, Cout)  resident (constant index_map)
    # b1_ref: (1, Cout)
    # w2_ref: (3, 3, Cout, Cout) resident
    # b2_ref: (1, Cout)
    # o_ref : (1, H, W, Cout)
    # xpad_ref: VMEM (H+2, W+2, Cin)  f32 scratch  (input  + zero halo)
    # mid_ref : VMEM (H+2, W+2, Cout) f32 scratch  (stage-1 act + zero halo)
    H = o_ref.shape[1]
    W = o_ref.shape[2]
    Cout = o_ref.shape[3]

    def conv3x3_bias_relu(xp, w_ref, b_ref):
        # xp: (H+2, W+2, C) f32 value.  9 static shifted windows, each an MXU
        # matmul contracting over C, accumulated in f32.
        acc = jnp.zeros((H, W, Cout), jnp.float32)
        for dy in range(3):
            for dx in range(3):
                patch = xp[dy:dy + H, dx:dx + W, :].astype(mxu_dtype)
                w_tap = w_ref[dy, dx].astype(mxu_dtype)      # (C, Cout)
                acc += jax.lax.dot_general(
                    patch, w_tap,
                    dimension_numbers=(((2,), (0,)), ((), ())),
                    preferred_element_type=jnp.float32,
                )
        return jnp.maximum(acc + b_ref[0], 0.0)              # f32 (H, W, Cout)

    # ---- Stage 1: build zero-halo input in VMEM (replaces wrapper jnp.pad).
    xpad_ref[...] = jnp.zeros_like(xpad_ref)
    xpad_ref[1:H + 1, 1:W + 1, :] = x_ref[0].astype(xpad_ref.dtype)
    y1 = conv3x3_bias_relu(xpad_ref[...], w1_ref, b1_ref)

    # ---- Stage 2: intermediate activation stays in VMEM (fused, no HBM trip).
    mid_ref[...] = jnp.zeros_like(mid_ref)
    mid_ref[1:H + 1, 1:W + 1, :] = y1
    y2 = conv3x3_bias_relu(mid_ref[...], w2_ref, b2_ref)

    o_ref[0] = y2.astype(o_ref.dtype)


def _fused_conv_block(x_nhwc, w1, b1, w2, b2, *, mxu_dtype=jnp.float32):
    """Fused [conv3x3 + bias + ReLU] x 2 on NHWC input via one pallas_call."""
    N, H, W, Cin = x_nhwc.shape
    Cout = w1.shape[-1]

    kernel = functools.partial(_fused_conv_block_kernel, mxu_dtype=mxu_dtype)

    return pl.pallas_call(
        kernel,
        out_shape=jax.ShapeDtypeStruct((N, H, W, Cout), jnp.float32),
        grid_spec=pltpu.PrefetchScalarGridSpec(
            num_scalar_prefetch=0,
            grid=(N,),
            in_specs=[
                pl.BlockSpec((1, H, W, Cin), lambda n: (n, 0, 0, 0)),
                pl.BlockSpec((3, 3, Cin, Cout), lambda n: (0, 0, 0, 0)),
                pl.BlockSpec((1, Cout), lambda n: (0, 0)),
                pl.BlockSpec((3, 3, Cout, Cout), lambda n: (0, 0, 0, 0)),
                pl.BlockSpec((1, Cout), lambda n: (0, 0)),
            ],
            out_specs=pl.BlockSpec((1, H, W, Cout), lambda n: (n, 0, 0, 0)),
            scratch_shapes=[
                pltpu.VMEM((H + 2, W + 2, Cin), jnp.float32),
                pltpu.VMEM((H + 2, W + 2, Cout), jnp.float32),
            ],
        ),
        compiler_params=pltpu.CompilerParams(
            dimension_semantics=("parallel",),
        ),
    )(x_nhwc, w1, b1.reshape(1, Cout), w2, b2.reshape(1, Cout))


def conv2d_block_forward(x_nchw, params, mxu_dtype=jnp.float32):
    """Forward pass of conv2d_block.  Input/output are NCHW like PyTorch."""
    w1, b1, w2, b2 = params
    x = jnp.transpose(x_nchw, (0, 2, 3, 1))        # NCHW -> NHWC (XLA op)
    y = _fused_conv_block(x, w1, b1, w2, b2, mxu_dtype=mxu_dtype)
    return jnp.transpose(y, (0, 3, 1, 2))          # NHWC -> NCHW


def init_params(key, ch_in, ch_out):
    """Deterministic init matching the PyTorch parameter shapes.

    PyTorch Conv2d weight is (Cout, Cin, 3, 3); we store (3, 3, Cin, Cout).
    """
    k1, k2, k3, k4 = jax.random.split(key, 4)
    fan_in1 = ch_in * 9
    fan_in2 = ch_out * 9
    bound1 = 1.0 / jnp.sqrt(fan_in1)
    bound2 = 1.0 / jnp.sqrt(fan_in2)
    w1 = jax.random.uniform(k1, (3, 3, ch_in, ch_out), jnp.float32, -bound1, bound1)
    b1 = jax.random.uniform(k2, (ch_out,), jnp.float32, -bound1, bound1)
    w2 = jax.random.uniform(k3, (3, 3, ch_out, ch_out), jnp.float32, -bound2, bound2)
    b2 = jax.random.uniform(k4, (ch_out,), jnp.float32, -bound2, bound2)
    return (w1, b1, w2, b2)


def _reference(x_nchw, params):
    """Pure-JAX reference using lax.conv_general_dilated (NCHW/OIHW)."""
    w1, b1, w2, b2 = params
    w1_oihw = jnp.transpose(w1, (3, 2, 0, 1))
    w2_oihw = jnp.transpose(w2, (3, 2, 0, 1))
    y = jax.lax.conv_general_dilated(
        x_nchw, w1_oihw, (1, 1), ((1, 1), (1, 1)),
        dimension_numbers=("NCHW", "OIHW", "NCHW"))
    y = jnp.maximum(y + b1[None, :, None, None], 0.0)
    y = jax.lax.conv_general_dilated(
        y, w2_oihw, (1, 1), ((1, 1), (1, 1)),
        dimension_numbers=("NCHW", "OIHW", "NCHW"))
    y = jnp.maximum(y + b2[None, :, None, None], 0.0)
    return y


if __name__ == "__main__":
    key = jax.random.PRNGKey(0)
    k_x, k_p = jax.random.split(key)

    N, CH_IN, CH_OUT, H, W = 2, 4, 8, 16, 16
    x = jax.random.normal(k_x, (N, CH_IN, H, W), jnp.float32)
    params = init_params(k_p, CH_IN, CH_OUT)

    fwd = jax.jit(conv2d_block_forward)
    out = jax.block_until_ready(fwd(x, params))
    ref = jax.block_until_ready(_reference(x, params))

    assert out.shape == (N, CH_OUT, H, W), out.shape
    assert jnp.allclose(out, ref, atol=1e-4, rtol=1e-4), "mismatch vs reference"

    print("KERNEL_OK")
</pallas_src>

<mosaic_0001>
module attributes {stable_mosaic.version = 11 : i64} {
  func.func @_fused_conv_block_kernel(%arg0: i32, %arg1: memref<1x16x16x4xf32, #tpu.memory_space<vmem>>, %arg2: memref<3x3x4x8xf32, #tpu.memory_space<vmem>>, %arg3: memref<1x8xf32, #tpu.memory_space<vmem>>, %arg4: memref<3x3x8x8xf32, #tpu.memory_space<vmem>>, %arg5: memref<1x8xf32, #tpu.memory_space<vmem>>, %arg6: memref<1x16x16x8xf32, #tpu.memory_space<vmem>>, %arg7: memref<18x18x4xf32, #tpu.memory_space<vmem>>, %arg8: memref<18x18x8xf32, #tpu.memory_space<vmem>>) attributes {dimension_semantics = [#tpu.dimension_semantics<parallel>], iteration_bounds = array<i64: 2>, scalar_prefetch = 0 : i64, scratch_operands = 2 : i64, tpu.core_type = #tpu.core_type<tc>, window_params = [{transform_indices = @transform_0, window_bounds = array<i64: 1, 16, 16, 4>}, {pipeline_mode = #tpu.pipeline_mode<synchronous>, transform_indices = @transform_1, window_bounds = array<i64: 3, 3, 4, 8>}, {pipeline_mode = #tpu.pipeline_mode<synchronous>, transform_indices = @transform_2, window_bounds = array<i64: 1, 8>}, {pipeline_mode = #tpu.pipeline_mode<synchronous>, transform_indices = @transform_3, window_bounds = array<i64: 3, 3, 8, 8>}, {pipeline_mode = #tpu.pipeline_mode<synchronous>, transform_indices = @transform_4, window_bounds = array<i64: 1, 8>}, {transform_indices = @transform_5, window_bounds = array<i64: 1, 16, 16, 8>}]} {
    %cst = arith.constant 0.000000e+00 : f32
    %0 = vector.broadcast %cst : f32 to vector<18x18x4xf32>
    %c0 = arith.constant 0 : index
    %c0_0 = arith.constant 0 : index
    %c0_1 = arith.constant 0 : index
    %1 = vector.load %arg7[%c0, %c0_0, %c0_1] : memref<18x18x4xf32, #tpu.memory_space<vmem>>, vector<18x18x4xf32>
    tpu.vector_store %arg7[%c0, %c0_0, %c0_1], %0 {strides = array<i32>} : memref<18x18x4xf32, #tpu.memory_space<vmem>>, vector<18x18x4xf32>,
    %c0_2 = arith.constant 0 : index
    %c0_3 = arith.constant 0 : index
    %c0_4 = arith.constant 0 : index
    %c0_5 = arith.constant 0 : index
    %2 = vector.load %arg1[%c0_2, %c0_3, %c0_4, %c0_5] : memref<1x16x16x4xf32, #tpu.memory_space<vmem>>, vector<1x16x16x4xf32>
    %3 = vector.shape_cast %2 : vector<1x16x16x4xf32> to vector<16x16x4xf32>
    %c1 = arith.constant 1 : index
    %c1_6 = arith.constant 1 : index
    %c0_7 = arith.constant 0 : index
    %4 = vector.load %arg7[%c1, %c1_6, %c0_7] : memref<18x18x4xf32, #tpu.memory_space<vmem>>, vector<16x16x4xf32>
    tpu.vector_store %arg7[%c1, %c1_6, %c0_7], %3 {strides = array<i32>} : memref<18x18x4xf32, #tpu.memory_space<vmem>>, vector<16x16x4xf32>,
    %c0_8 = arith.constant 0 : index
    %c0_9 = arith.constant 0 : index
    %c0_10 = arith.constant 0 : index
    %5 = vector.load %arg7[%c0_8, %c0_9, %c0_10] : memref<18x18x4xf32, #tpu.memory_space<vmem>>, vector<18x18x4xf32>
    %cst_11 = arith.constant 0.000000e+00 : f32
    %6 = vector.broadcast %cst_11 : f32 to vector<16x16x8xf32>
    %7 = vector.extract_strided_slice %5 {offsets = [0, 0, 0], sizes = [16, 16, 4], strides = [1, 1, 1]} : vector<18x18x4xf32> to vector<16x16x4xf32>
    %c0_12 = arith.constant 0 : index
    %c0_13 = arith.constant 0 : index
    %c0_14 = arith.constant 0 : index
    %c0_15 = arith.constant 0 : index
    %8 = vector.load %arg2[%c0_12, %c0_13, %c0_14, %c0_15] : memref<3x3x4x8xf32, #tpu.memory_space<vmem>>, vector<1x1x4x8xf32>
    %9 = vector.shape_cast %8 : vector<1x1x4x8xf32> to vector<4x8xf32>
    %cst_16 = arith.constant dense<0.000000e+00> : vector<16x16x8xf32>
    %10 = tpu.matmul %7, %9, %cst_16 {dimension_numbers = #tpu.dot_dimension_numbers<[2], [0], [0, 1], [1], [0, 0, 0, 1, 1, 1], [], []>} : vector<16x16x4xf32>, vector<4x8xf32>, vector<16x16x8xf32> -> vector<16x16x8xf32>
    %11 = arith.addf %6, %10 : vector<16x16x8xf32>
    %12 = vector.extract_strided_slice %5 {offsets = [0, 1, 0], sizes = [16, 16, 4], strides = [1, 1, 1]} : vector<18x18x4xf32> to vector<16x16x4xf32>
    %c0_17 = arith.constant 0 : index
    %c1_18 = arith.constant 1 : index
    %c0_19 = arith.constant 0 : index
    %c0_20 = arith.constant 0 : index
    %13 = vector.load %arg2[%c0_17, %c1_18, %c0_19, %c0_20] : memref<3x3x4x8xf32, #tpu.memory_space<vmem>>, vector<1x1x4x8xf32>
    %14 = vector.shape_cast %13 : vector<1x1x4x8xf32> to vector<4x8xf32>
    %cst_21 = arith.constant dense<0.000000e+00> : vector<16x16x8xf32>
    %15 = tpu.matmul %12, %14, %cst_21 {dimension_numbers = #tpu.dot_dimension_numbers<[2], [0], [0, 1], [1], [0, 0, 0, 1, 1, 1], [], []>} : vector<16x16x4xf32>, vector<4x8xf32>, vector<16x16x8xf32> -> vector<16x16x8xf32>
    %16 = arith.addf %11, %15 : vector<16x16x8xf32>
    %17 = vector.extract_strided_slice %5 {offsets = [0, 2, 0], sizes = [16, 16, 4], strides = [1, 1, 1]} : vector<18x18x4xf32> to vector<16x16x4xf32>
    %c0_22 = arith.constant 0 : index
    %c2 = arith.constant 2 : index
    %c0_23 = arith.constant 0 : index
    %c0_24 = arith.constant 0 : index
    %18 = vector.load %arg2[%c0_22, %c2, %c0_23, %c0_24] : memref<3x3x4x8xf32, #tpu.memory_space<vmem>>, vector<1x1x4x8xf32>
    %19 = vector.shape_cast %18 : vector<1x1x4x8xf32> to vector<4x8xf32>
    %cst_25 = arith.constant dense<0.000000e+00> : vector<16x16x8xf32>
    %20 = tpu.matmul %17, %19, %cst_25 {dimension_numbers = #tpu.dot_dimension_numbers<[2], [0], [0, 1], [1], [0, 0, 0, 1, 1, 1], [], []>} : vector<16x16x4xf32>, vector<4x8xf32>, vector<16x16x8xf32> -> vector<16x16x8xf32>
    %21 = arith.addf %16, %20 : vector<16x16x8xf32>
    %22 = vector.extract_strided_slice %5 {offsets = [1, 0, 0], sizes = [16, 16, 4], strides = [1, 1, 1]} : vector<18x18x4xf32> to vector<16x16x4xf32>
    %c1_26 = arith.constant 1 : index
    %c0_27 = arith.constant 0 : index
    %c0_28 = arith.constant 0 : index
    %c0_29 = arith.constant 0 : index
    %23 = vector.load %arg2[%c1_26, %c0_27, %c0_28, %c0_29] : memref<3x3x4x8xf32, #tpu.memory_space<vmem>>, vector<1x1x4x8xf32>
    %24 = vector.shape_cast %23 : vector<1x1x4x8xf32> to vector<4x8xf32>
    %cst_30 = arith.constant dense<0.000000e+00> : vector<16x16x8xf32>
    %25 = tpu.matmul %22, %24, %cst_30 {dimension_numbers = #tpu.dot_dimension_numbers<[2], [0], [0, 1], [1], [0, 0, 0, 1, 1, 1], [], []>} : vector<16x16x4xf32>, vector<4x8xf32>, vector<16x16x8xf32> -> vector<16x16x8xf32>
    %26 = arith.addf %21, %25 : vector<16x16x8xf32>
    %27 = vector.extract_strided_slice %5 {offsets = [1, 1, 0], sizes = [16, 16, 4], strides = [1, 1, 1]} : vector<18x18x4xf32> to vector<16x16x4xf32>
    %c1_31 = arith.constant 1 : index
    %c1_32 = arith.constant 1 : index
    %c0_33 = arith.constant 0 : index
    %c0_34 = arith.constant 0 : index
    %28 = vector.load %arg2[%c1_31, %c1_32, %c0_33, %c0_34] : memref<3x3x4x8xf32, #tpu.memory_space<vmem>>, vector<1x1x4x8xf32>
    %29 = vector.shape_cast %28 : vector<1x1x4x8xf32> to vector<4x8xf32>
    %cst_35 = arith.constant dense<0.000000e+00> : vector<16x16x8xf32>
    %30 = tpu.matmul %27, %29, %cst_35 {dimension_numbers = #tpu.dot_dimension_numbers<[2], [0], [0, 1], [1], [0, 0, 0, 1, 1, 1], [], []>} : vector<16x16x4xf32>, vector<4x8xf32>, vector<16x16x8xf32> -> vector<16x16x8xf32>
    %31 = arith.addf %26, %30 : vector<16x16x8xf32>
    %32 = vector.extract_strided_slice %5 {offsets = [1, 2, 0], sizes = [16, 16, 4], strides = [1, 1, 1]} : vector<18x18x4xf32> to vector<16x16x4xf32>
    %c1_36 = arith.constant 1 : index
    %c2_37 = arith.constant 2 : index
    %c0_38 = arith.constant 0 : index
    %c0_39 = arith.constant 0 : index
    %33 = vector.load %arg2[%c1_36, %c2_37, %c0_38, %c0_39] : memref<3x3x4x8xf32, #tpu.memory_space<vmem>>, vector<1x1x4x8xf32>
    %34 = vector.shape_cast %33 : vector<1x1x4x8xf32> to vector<4x8xf32>
    %cst_40 = arith.constant dense<0.000000e+00> : vector<16x16x8xf32>
    %35 = tpu.matmul %32, %34, %cst_40 {dimension_numbers = #tpu.dot_dimension_numbers<[2], [0], [0, 1], [1], [0, 0, 0, 1, 1, 1], [], []>} : vector<16x16x4xf32>, vector<4x8xf32>, vector<16x16x8xf32> -> vector<16x16x8xf32>
    %36 = arith.addf %31, %35 : vector<16x16x8xf32>
    %37 = vector.extract_strided_slice %5 {offsets = [2, 0, 0], sizes = [16, 16, 4], strides = [1, 1, 1]} : vector<18x18x4xf32> to vector<16x16x4xf32>
    %c2_41 = arith.constant 2 : index
    %c0_42 = arith.constant 0 : index
    %c0_43 = arith.constant 0 : index
    %c0_44 = arith.constant 0 : index
    %38 = vector.load %arg2[%c2_41, %c0_42, %c0_43, %c0_44] : memref<3x3x4x8xf32, #tpu.memory_space<vmem>>, vector<1x1x4x8xf32>
    %39 = vector.shape_cast %38 : vector<1x1x4x8xf32> to vector<4x8xf32>
    %cst_45 = arith.constant dense<0.000000e+00> : vector<16x16x8xf32>
    %40 = tpu.matmul %37, %39, %cst_45 {dimension_numbers = #tpu.dot_dimension_numbers<[2], [0], [0, 1], [1], [0, 0, 0, 1, 1, 1], [], []>} : vector<16x16x4xf32>, vector<4x8xf32>, vector<16x16x8xf32> -> vector<16x16x8xf32>
    %41 = arith.addf %36, %40 : vector<16x16x8xf32>
    %42 = vector.extract_strided_slice %5 {offsets = [2, 1, 0], sizes = [16, 16, 4], strides = [1, 1, 1]} : vector<18x18x4xf32> to vector<16x16x4xf32>
    %c2_46 = arith.constant 2 : index
    %c1_47 = arith.constant 1 : index
    %c0_48 = arith.constant 0 : index
    %c0_49 = arith.constant 0 : index
    %43 = vector.load %arg2[%c2_46, %c1_47, %c0_48, %c0_49] : memref<3x3x4x8xf32, #tpu.memory_space<vmem>>, vector<1x1x4x8xf32>
    %44 = vector.shape_cast %43 : vector<1x1x4x8xf32> to vector<4x8xf32>
    %cst_50 = arith.constant dense<0.000000e+00> : vector<16x16x8xf32>
    %45 = tpu.matmul %42, %44, %cst_50 {dimension_numbers = #tpu.dot_dimension_numbers<[2], [0], [0, 1], [1], [0, 0, 0, 1, 1, 1], [], []>} : vector<16x16x4xf32>, vector<4x8xf32>, vector<16x16x8xf32> -> vector<16x16x8xf32>
    %46 = arith.addf %41, %45 : vector<16x16x8xf32>
    %47 = vector.extract_strided_slice %5 {offsets = [2, 2, 0], sizes = [16, 16, 4], strides = [1, 1, 1]} : vector<18x18x4xf32> to vector<16x16x4xf32>
    %c2_51 = arith.constant 2 : index
    %c2_52 = arith.constant 2 : index
    %c0_53 = arith.constant 0 : index
    %c0_54 = arith.constant 0 : index
    %48 = vector.load %arg2[%c2_51, %c2_52, %c0_53, %c0_54] : memref<3x3x4x8xf32, #tpu.memory_space<vmem>>, vector<1x1x4x8xf32>
    %49 = vector.shape_cast %48 : vector<1x1x4x8xf32> to vector<4x8xf32>
    %cst_55 = arith.constant dense<0.000000e+00> : vector<16x16x8xf32>
    %50 = tpu.matmul %47, %49, %cst_55 {dimension_numbers = #tpu.dot_dimension_numbers<[2], [0], [0, 1], [1], [0, 0, 0, 1, 1, 1], [], []>} : vector<16x16x4xf32>, vector<4x8xf32>, vector<16x16x8xf32> -> vector<16x16x8xf32>
    %51 = arith.addf %46, %50 : vector<16x16x8xf32>
    %c0_56 = arith.constant 0 : index
    %c0_57 = arith.constant 0 : index
    %52 = vector.load %arg3[%c0_56, %c0_57] : memref<1x8xf32, #tpu.memory_space<vmem>>, vector<1x8xf32>
    %53 = vector.shape_cast %52 : vector<1x8xf32> to vector<8xf32>
    %54 = vector.shape_cast %53 : vector<8xf32> to vector<1x1x8xf32>
    %55 = vector.broadcast %54 : vector<1x1x8xf32> to vector<16x16x8xf32>
    %56 = arith.addf %51, %55 : vector<16x16x8xf32>
    %cst_58 = arith.constant 0.000000e+00 : f32
    %57 = vector.broadcast %cst_58 : f32 to vector<16x16x8xf32>
    %58 = arith.maximumf %56, %57 : vector<16x16x8xf32>
    %cst_59 = arith.constant 0.000000e+00 : f32
    %59 = vector.broadcast %cst_59 : f32 to vector<18x18x8xf32>
    %c0_60 = arith.constant 0 : index
    %c0_61 = arith.constant 0 : index
    %c0_62 = arith.constant 0 : index
    %60 = vector.load %arg8[%c0_60, %c0_61, %c0_62] : memref<18x18x8xf32, #tpu.memory_space<vmem>>, vector<18x18x8xf32>
    tpu.vector_store %arg8[%c0_60, %c0_61, %c0_62], %59 {strides = array<i32>} : memref<18x18x8xf32, #tpu.memory_space<vmem>>, vector<18x18x8xf32>,
    %c1_63 = arith.constant 1 : index
    %c1_64 = arith.constant 1 : index
    %c0_65 = arith.constant 0 : index
    %61 = vector.load %arg8[%c1_63, %c1_64, %c0_65] : memref<18x18x8xf32, #tpu.memory_space<vmem>>, vector<16x16x8xf32>
    tpu.vector_store %arg8[%c1_63, %c1_64, %c0_65], %58 {strides = array<i32>} : memref<18x18x8xf32, #tpu.memory_space<vmem>>, vector<16x16x8xf32>,
    %c0_66 = arith.constant 0 : index
    %c0_67 = arith.constant 0 : index
    %c0_68 = arith.constant 0 : index
    %62 = vector.load %arg8[%c0_66, %c0_67, %c0_68] : memref<18x18x8xf32, #tpu.memory_space<vmem>>, vector<18x18x8xf32>
    %cst_69 = arith.constant 0.000000e+00 : f32
    %63 = vector.broadcast %cst_69 : f32 to vector<16x16x8xf32>
    %64 = vector.extract_strided_slice %62 {offsets = [0, 0, 0], sizes = [16, 16, 8], strides = [1, 1, 1]} : vector<18x18x8xf32> to vector<16x16x8xf32>
    %c0_70 = arith.constant 0 : index
    %c0_71 = arith.constant 0 : index
    %c0_72 = arith.constant 0 : index
    %c0_73 = arith.constant 0 : index
    %65 = vector.load %arg4[%c0_70, %c0_71, %c0_72, %c0_73] : memref<3x3x8x8xf32, #tpu.memory_space<vmem>>, vector<1x1x8x8xf32>
    %66 = vector.shape_cast %65 : vector<1x1x8x8xf32> to vector<8x8xf32>
    %cst_74 = arith.constant dense<0.000000e+00> : vector<16x16x8xf32>
    %67 = tpu.matmul %64, %66, %cst_74 {dimension_numbers = #tpu.dot_dimension_numbers<[2], [0], [0, 1], [1], [0, 0, 0, 1, 1, 1], [], []>} : vector<16x16x8xf32>, vector<8x8xf32>, vector<16x16x8xf32> -> vector<16x16x8xf32>
    %68 = arith.addf %63, %67 : vector<16x16x8xf32>
    %69 = vector.extract_strided_slice %62 {offsets = [0, 1, 0], sizes = [16, 16, 8], strides = [1, 1, 1]} : vector<18x18x8xf32> to vector<16x16x8xf32>
    %c0_75 = arith.constant 0 : index
    %c1_76 = arith.constant 1 : index
    %c0_77 = arith.constant 0 : index
    %c0_78 = arith.constant 0 : index
    %70 = vector.load %arg4[%c0_75, %c1_76, %c0_77, %c0_78] : memref<3x3x8x8xf32, #tpu.memory_space<vmem>>, vector<1x1x8x8xf32>
    %71 = vector.shape_cast %70 : vector<1x1x8x8xf32> to vector<8x8xf32>
    %cst_79 = arith.constant dense<0.000000e+00> : vector<16x16x8xf32>
    %72 = tpu.matmul %69, %71, %cst_79 {dimension_numbers = #tpu.dot_dimension_numbers<[2], [0], [0, 1], [1], [0, 0, 0, 1, 1, 1], [], []>} : vector<16x16x8xf32>, vector<8x8xf32>, vector<16x16x8xf32> -> vector<16x16x8xf32>
    %73 = arith.addf %68, %72 : vector<16x16x8xf32>
    %74 = vector.extract_strided_slice %62 {offsets = [0, 2, 0], sizes = [16, 16, 8], strides = [1, 1, 1]} : vector<18x18x8xf32> to vector<16x16x8xf32>
    %c0_80 = arith.constant 0 : index
    %c2_81 = arith.constant 2 : index
    %c0_82 = arith.constant 0 : index
    %c0_83 = arith.constant 0 : index
    %75 = vector.load %arg4[%c0_80, %c2_81, %c0_82, %c0_83] : memref<3x3x8x8xf32, #tpu.memory_space<vmem>>, vector<1x1x8x8xf32>
    %76 = vector.shape_cast %75 : vector<1x1x8x8xf32> to vector<8x8xf32>
    %cst_84 = arith.constant dense<0.000000e+00> : vector<16x16x8xf32>
    %77 = tpu.matmul %74, %76, %cst_84 {dimension_numbers = #tpu.dot_dimension_numbers<[2], [0], [0, 1], [1], [0, 0, 0, 1, 1, 1], [], []>} : vector<16x16x8xf32>, vector<8x8xf32>, vector<16x16x8xf32> -> vector<16x16x8xf32>
    %78 = arith.addf %73, %77 : vector<16x16x8xf32>
    %79 = vector.extract_strided_slice %62 {offsets = [1, 0, 0], sizes = [16, 16, 8], strides = [1, 1, 1]} : vector<18x18x8xf32> to vector<16x16x8xf32>
    %c1_85 = arith.constant 1 : index
    %c0_86 = arith.constant 0 : index
    %c0_87 = arith.constant 0 : index
    %c0_88 = arith.constant 0 : index
    %80 = vector.load %arg4[%c1_85, %c0_86, %c0_87, %c0_88] : memref<3x3x8x8xf32, #tpu.memory_space<vmem>>, vector<1x1x8x8xf32>
    %81 = vector.shape_cast %80 : vector<1x1x8x8xf32> to vector<8x8xf32>
    %cst_89 = arith.constant dense<0.000000e+00> : vector<16x16x8xf32>
    %82 = tpu.matmul %79, %81, %cst_89 {dimension_numbers = #tpu.dot_dimension_numbers<[2], [0], [0, 1], [1], [0, 0, 0, 1, 1, 1], [], []>} : vector<16x16x8xf32>, vector<8x8xf32>, vector<16x16x8xf32> -> vector<16x16x8xf32>
    %83 = arith.addf %78, %82 : vector<16x16x8xf32>
    %84 = vector.extract_strided_slice %62 {offsets = [1, 1, 0], sizes = [16, 16, 8], strides = [1, 1, 1]} : vector<18x18x8xf32> to vector<16x16x8xf32>
    %c1_90 = arith.constant 1 : index
    %c1_91 = arith.constant 1 : index
    %c0_92 = arith.constant 0 : index
    %c0_93 = arith.constant 0 : index
    %85 = vector.load %arg4[%c1_90, %c1_91, %c0_92, %c0_93] : memref<3x3x8x8xf32, #tpu.memory_space<vmem>>, vector<1x1x8x8xf32>
    %86 = vector.shape_cast %85 : vector<1x1x8x8xf32> to vector<8x8xf32>
    %cst_94 = arith.constant dense<0.000000e+00> : vector<16x16x8xf32>
    %87 = tpu.matmul %84, %86, %cst_94 {dimension_numbers = #tpu.dot_dimension_numbers<[2], [0], [0, 1], [1], [0, 0, 0, 1, 1, 1], [], []>} : vector<16x16x8xf32>, vector<8x8xf32>, vector<16x16x8xf32> -> vector<16x16x8xf32>
    %88 = arith.addf %83, %87 : vector<16x16x8xf32>
    %89 = vector.extract_strided_slice %62 {offsets = [1, 2, 0], sizes = [16, 16, 8], strides = [1, 1, 1]} : vector<18x18x8xf32> to vector<16x16x8xf32>
    %c1_95 = arith.constant 1 : index
    %c2_96 = arith.constant 2 : index
    %c0_97 = arith.constant 0 : index
    %c0_98 = arith.constant 0 : index
    %90 = vector.load %arg4[%c1_95, %c2_96, %c0_97, %c0_98] : memref<3x3x8x8xf32, #tpu.memory_space<vmem>>, vector<1x1x8x8xf32>
    %91 = vector.shape_cast %90 : vector<1x1x8x8xf32> to vector<8x8xf32>
    %cst_99 = arith.constant dense<0.000000e+00> : vector<16x16x8xf32>
    %92 = tpu.matmul %89, %91, %cst_99 {dimension_numbers = #tpu.dot_dimension_numbers<[2], [0], [0, 1], [1], [0, 0, 0, 1, 1, 1], [], []>} : vector<16x16x8xf32>, vector<8x8xf32>, vector<16x16x8xf32> -> vector<16x16x8xf32>
    %93 = arith.addf %88, %92 : vector<16x16x8xf32>
    %94 = vector.extract_strided_slice %62 {offsets = [2, 0, 0], sizes = [16, 16, 8], strides = [1, 1, 1]} : vector<18x18x8xf32> to vector<16x16x8xf32>
    %c2_100 = arith.constant 2 : index
    %c0_101 = arith.constant 0 : index
    %c0_102 = arith.constant 0 : index
    %c0_103 = arith.constant 0 : index
    %95 = vector.load %arg4[%c2_100, %c0_101, %c0_102, %c0_103] : memref<3x3x8x8xf32, #tpu.memory_space<vmem>>, vector<1x1x8x8xf32>
    %96 = vector.shape_cast %95 : vector<1x1x8x8xf32> to vector<8x8xf32>
    %cst_104 = arith.constant dense<0.000000e+00> : vector<16x16x8xf32>
    %97 = tpu.matmul %94, %96, %cst_104 {dimension_numbers = #tpu.dot_dimension_numbers<[2], [0], [0, 1], [1], [0, 0, 0, 1, 1, 1], [], []>} : vector<16x16x8xf32>, vector<8x8xf32>, vector<16x16x8xf32> -> vector<16x16x8xf32>
    %98 = arith.addf %93, %97 : vector<16x16x8xf32>
    %99 = vector.extract_strided_slice %62 {offsets = [2, 1, 0], sizes = [16, 16, 8], strides = [1, 1, 1]} : vector<18x18x8xf32> to vector<16x16x8xf32>
    %c2_105 = arith.constant 2 : index
    %c1_106 = arith.constant 1 : index
    %c0_107 = arith.constant 0 : index
    %c0_108 = arith.constant 0 : index
    %100 = vector.load %arg4[%c2_105, %c1_106, %c0_107, %c0_108] : memref<3x3x8x8xf32, #tpu.memory_space<vmem>>, vector<1x1x8x8xf32>
    %101 = vector.shape_cast %100 : vector<1x1x8x8xf32> to vector<8x8xf32>
    %cst_109 = arith.constant dense<0.000000e+00> : vector<16x16x8xf32>
    %102 = tpu.matmul %99, %101, %cst_109 {dimension_numbers = #tpu.dot_dimension_numbers<[2], [0], [0, 1], [1], [0, 0, 0, 1, 1, 1], [], []>} : vector<16x16x8xf32>, vector<8x8xf32>, vector<16x16x8xf32> -> vector<16x16x8xf32>
    %103 = arith.addf %98, %102 : vector<16x16x8xf32>
    %104 = vector.extract_strided_slice %62 {offsets = [2, 2, 0], sizes = [16, 16, 8], strides = [1, 1, 1]} : vector<18x18x8xf32> to vector<16x16x8xf32>
    %c2_110 = arith.constant 2 : index
    %c2_111 = arith.constant 2 : index
    %c0_112 = arith.constant 0 : index
    %c0_113 = arith.constant 0 : index
    %105 = vector.load %arg4[%c2_110, %c2_111, %c0_112, %c0_113] : memref<3x3x8x8xf32, #tpu.memory_space<vmem>>, vector<1x1x8x8xf32>
    %106 = vector.shape_cast %105 : vector<1x1x8x8xf32> to vector<8x8xf32>
    %cst_114 = arith.constant dense<0.000000e+00> : vector<16x16x8xf32>
    %107 = tpu.matmul %104, %106, %cst_114 {dimension_numbers = #tpu.dot_dimension_numbers<[2], [0], [0, 1], [1], [0, 0, 0, 1, 1, 1], [], []>} : vector<16x16x8xf32>, vector<8x8xf32>, vector<16x16x8xf32> -> vector<16x16x8xf32>
    %108 = arith.addf %103, %107 : vector<16x16x8xf32>
    %c0_115 = arith.constant 0 : index
    %c0_116 = arith.constant 0 : index
    %109 = vector.load %arg5[%c0_115, %c0_116] : memref<1x8xf32, #tpu.memory_space<vmem>>, vector<1x8xf32>
    %110 = vector.shape_cast %109 : vector<1x8xf32> to vector<8xf32>
    %111 = vector.shape_cast %110 : vector<8xf32> to vector<1x1x8xf32>
    %112 = vector.broadcast %111 : vector<1x1x8xf32> to vector<16x16x8xf32>
    %113 = arith.addf %108, %112 : vector<16x16x8xf32>
    %cst_117 = arith.constant 0.000000e+00 : f32
    %114 = vector.broadcast %cst_117 : f32 to vector<16x16x8xf32>
    %115 = arith.maximumf %113, %114 : vector<16x16x8xf32>
    %c0_118 = arith.constant 0 : index
    %c0_119 = arith.constant 0 : index
    %c0_120 = arith.constant 0 : index
    %c0_121 = arith.constant 0 : index
    %116 = vector.load %arg6[%c0_118, %c0_119, %c0_120, %c0_121] : memref<1x16x16x8xf32, #tpu.memory_space<vmem>>, vector<1x16x16x8xf32>
    %117 = vector.shape_cast %116 : vector<1x16x16x8xf32> to vector<16x16x8xf32>
    %118 = vector.shape_cast %115 : vector<16x16x8xf32> to vector<1x16x16x8xf32>
    tpu.vector_store %arg6[%c0_118, %c0_119, %c0_120, %c0_121], %118 {strides = array<i32>} : memref<1x16x16x8xf32, #tpu.memory_space<vmem>>, vector<1x16x16x8xf32>,
    return
  }
  func.func @transform_0(%arg0: i32) -> (i32, i32, i32, i32) {
    %c0_i32 = arith.constant 0 : i32
    %c0_i32_0 = arith.constant 0 : i32
    %c0_i32_1 = arith.constant 0 : i32
    %c0_i32_2 = arith.constant 0 : i32
    return %arg0, %c0_i32, %c0_i32_0, %c0_i32_1 : i32, i32, i32, i32
  }
  func.func @transform_1(%arg0: i32) -> (i32, i32, i32, i32) {
    %c0_i32 = arith.constant 0 : i32
    %c0_i32_0 = arith.constant 0 : i32
    %c0_i32_1 = arith.constant 0 : i32
    %c0_i32_2 = arith.constant 0 : i32
    %c0_i32_3 = arith.constant 0 : i32
    return %c0_i32, %c0_i32_0, %c0_i32_1, %c0_i32_2 : i32, i32, i32, i32
  }
  func.func @transform_2(%arg0: i32) -> (i32, i32) {
    %c0_i32 = arith.constant 0 : i32
    %c0_i32_0 = arith.constant 0 : i32
    %c0_i32_1 = arith.constant 0 : i32
    return %c0_i32, %c0_i32_0 : i32, i32
  }
  func.func @transform_3(%arg0: i32) -> (i32, i32, i32, i32) {
    %c0_i32 = arith.constant 0 : i32
    %c0_i32_0 = arith.constant 0 : i32
    %c0_i32_1 = arith.constant 0 : i32
    %c0_i32_2 = arith.constant 0 : i32
    %c0_i32_3 = arith.constant 0 : i32
    return %c0_i32, %c0_i32_0, %c0_i32_1, %c0_i32_2 : i32, i32, i32, i32
  }
  func.func @transform_4(%arg0: i32) -> (i32, i32) {
    %c0_i32 = arith.constant 0 : i32
    %c0_i32_0 = arith.constant 0 : i32
    %c0_i32_1 = arith.constant 0 : i32
    return %c0_i32, %c0_i32_0 : i32, i32
  }
  func.func @transform_5(%arg0: i32) -> (i32, i32, i32, i32) {
    %c0_i32 = arith.constant 0 : i32
    %c0_i32_0 = arith.constant 0 : i32
    %c0_i32_1 = arith.constant 0 : i32
    %c0_i32_2 = arith.constant 0 : i32
    return %arg0, %c0_i32, %c0_i32_0, %c0_i32_1 : i32, i32, i32, i32
  }
}

</mosaic_0001>

<bundles_post_ra>
// kernel: conv2d_block_forward.1
= control target key start
LH: loop header
LB: loop body
LE: loop exit
PB: predicated region body
PF: predicated region fallthrough
CT: control target
= control target key end

     0   :  { %s8904_s18 = smov 0   ;;  %s11436_s0 = inlined_call_operand.vmem [shape: f32[2,16,16,4], index: 0, kind: input, shape index: {}]   ;;  %s11437_s1 = inlined_call_operand.vmem [shape: f32[3,3,4,8], index: 1, kind: input, shape index: {}]   ;;  %s11438_s2 = inlined_call_operand.vmem [shape: f32[1,8], index: 2, kind: input, shape index: {}]   ;;  %s11439_s3 = inlined_call_operand.vmem [shape: f32[3,3,8,8], index: 3, kind: input, shape index: {}]   ;;  %s11440_s4 = inlined_call_operand.vmem [shape: f32[1,8], index: 4, kind: input, shape index: {}]   ;;  %s11441_s5 = inlined_call_operand.vmem [shape: f32[2,16,16,8], index: 5, kind: output, shape index: {}]  }
   0x1 LB: > { %s6234_s19 = sadd.s32 4294967295, %s8871_s18   ;;  %p6238_p0 = scmp.ge.s32.totalorder %s8871_s18, 1  ;;  %s8871_s18 = sphi %s8904_s18, %s15_s18  }
   0x2   : > { %p187_p1 = scmp.lt.s32.totalorder %s8871_s18, 3 }
   0x4   : > { %p188_p2 = pnand %p6238_p0, %p187_p1 }
   0x6   : > { %191 = sbr.rel (%p188_p2) target bundleno = 1577 (0x629), region = 40 }
   0xd   : > { %v6243_v0 = vld [vmem:[%s11437_s1 + $0x4] sm:$0xf]  ;;  %vm596_vm0 = vcmask 1043456   ;;  %vm225_vm1 = vcmask 31744   ;;  %v11442_v1 = vmov 0.0   ;;  %vm228_vm2 = vcmask 25600  }
   0xe   : > { %7444 = vmatprep.subr.msk.mxu0 %vm596_vm0, %v6243_v0  ;;  %226 = vst.msk [vmem:[#allocation2] sm:$0xff] %vm225_vm1, %v11442_v1  ;;  %227 = vst.msk [vmem:[#allocation2 + $0x8] sm:$0xff] %vm225_vm1, %v11442_v1  ;;  %v8991_v2 = vld [vmem:[%s11437_s1] sm:$0xf]  ;;  %p8995_p3 = scmp.lt.s32.totalorder %s6234_s19, 1  ;;  %vm451_vm3 = vcmask 1046528  }
   0xf   : > { %230 = vst.msk [vmem:[#allocation2 + $0x18] sm:$0xff] %vm225_vm1, %v11442_v1  ;;  %231 = vst.msk [vmem:[#allocation2 + $0x20] sm:$0xff] %vm225_vm1, %v11442_v1  ;;  %7445 = vmatpush3.msk.msra.mxu0 %vm596_vm0, %v6243_v0  ;;  %v9079_v18 = vld [vmem:[%s11437_s1 + $0x8] sm:$0xf]  ;;  %vm1119_vm4 = vcmask 1045504   ;;  %vm3217_vm5 = vcmask 64512  }
  0x10   : > { %233 = vst.msk [vmem:[#allocation2 + $0x30] sm:$0xff] %vm225_vm1, %v11442_v1  ;;  %234 = vst.msk [vmem:[#allocation2 + $0x38] sm:$0xff] %vm225_vm1, %v11442_v1  ;;  %7494 = vmatprep.subr.msk.mxu0 %vm596_vm0, %v8991_v2  ;;  %s11799_s19 = smov (!%p8995_p3, %s6234_s19), 1  ;;  %vm3220_vm6 = vcmask 58368  }
  0x11   : > { %236 = vst.msk [vmem:[#allocation2 + $0x48] sm:$0xff] %vm225_vm1, %v11442_v1  ;;  %237 = vst.msk [vmem:[#allocation2 + $0x50] sm:$0xff] %vm225_vm1, %v11442_v1  ;;  %s6848_s25 = sshll.u32 %s11799_s19, 8 }
  0x12   : > { %239 = vst.msk [vmem:[#allocation2 + $0x60] sm:$0xff] %vm225_vm1, %v11442_v1  ;;  %240 = vst.msk [vmem:[#allocation2 + $0x68] sm:$0xff] %vm225_vm1, %v11442_v1  ;;  %s9050_s28 = scalar_lea.vmem %s11436_s0, %s6848_s25  ;;  %s11336_s22 = scalar_lea.vmem %s11441_s5, %s6848_s25 }
  0x13   : > { %242 = vst.msk [vmem:[#allocation2 + $0x78] sm:$0xff] %vm225_vm1, %v11442_v1  ;;  %243 = vst.msk [vmem:[#allocation2 + $0x80] sm:$0xff] %vm225_vm1, %v11442_v1  ;;  %v281_v3 = vld [vmem:[%s9050_s28] sm:$0xff]  ;;  %v282_v4 = vld [vmem:[%s9050_s28 + $0x8] sm:$0xff] }
  0x14   : > { %245 = vst.msk [vmem:[#allocation2 + $0x90] sm:$0xff] %vm225_vm1, %v11442_v1  ;;  %246 = vst.msk [vmem:[#allocation2 + $0x98] sm:$0xff] %vm225_vm1, %v11442_v1  ;;  %v283_v5 = vld [vmem:[%s9050_s28 + $0x10] sm:$0xff]  ;;  %v284_v8 = vld [vmem:[%s9050_s28 + $0x18] sm:$0xff] }
  0x15   : > { %248 = vst.msk [vmem:[#allocation2 + $0xa8] sm:$0xff] %vm225_vm1, %v11442_v1  ;;  %249 = vst.msk [vmem:[#allocation2 + $0xb0] sm:$0xff] %vm225_vm1, %v11442_v1  ;;  %v9055_v6 = vld [vmem:[#allocation2] sm:$0xff]  ;;  %v9057_v7 = vld [vmem:[#allocation2 + $0x8] sm:$0xff] }
  0x16   : > { %251 = vst.msk [vmem:[#allocation2 + $0xc0] sm:$0xff] %vm225_vm1, %v11442_v1  ;;  %252 = vst.msk [vmem:[#allocation2 + $0xc8] sm:$0xff] %vm225_vm1, %v11442_v1  ;;  %v452_v9 = vrot.slane %v9055_v6, 1  ;;  %v453_v10 = vrot.slane %v9057_v7, 1  ;;  %v285_v12 = vld [vmem:[%s9050_s28 + $0x20] sm:$0xff]  ;;  %v286_v13 = vld [vmem:[%s9050_s28 + $0x28] sm:$0xff] }
  0x17   : > { %254 = vst.msk [vmem:[#allocation2 + $0xd8] sm:$0xff] %vm225_vm1, %v11442_v1  ;;  %255 = vst.msk [vmem:[#allocation2 + $0xe0] sm:$0xff] %vm225_vm1, %v11442_v1  ;;  %v287_v15 = vld [vmem:[%s9050_s28 + $0x30] sm:$0xff]  ;;  %v288_v16 = vld [vmem:[%s9050_s28 + $0x38] sm:$0xff] }
  0x18   : > { %257 = vst.msk [vmem:[#allocation2 + $0xf0] sm:$0xff] %vm225_vm1, %v11442_v1  ;;  %258 = vst.msk [vmem:[#allocation2 + $0xf8] sm:$0xff] %vm225_vm1, %v11442_v1  ;;  %v289_v17 = vld [vmem:[%s9050_s28 + $0x40] sm:$0xff]  ;;  %v454_v19 = vsel %vm451_vm3, %v452_v9, %v453_v10  ;;  %v290_v20 = vld [vmem:[%s9050_s28 + $0x48] sm:$0xff] }
  0x19   : > { %260 = vst.msk [vmem:[#allocation2 + $0x108] sm:$0xff] %vm225_vm1, %v11442_v1  ;;  %261 = vst.msk [vmem:[#allocation2 + $0x110] sm:$0xff] %vm225_vm1, %v11442_v1  ;;  %v291_v21 = vld [vmem:[%s9050_s28 + $0x50] sm:$0xff]  ;;  %v292_v22 = vld [vmem:[%s9050_s28 + $0x58] sm:$0xff]  ;;  %7446 = vmatprep.mubr.msk.f32.mxu0 %vm225_vm1, %v454_v19 }
  0x1a   : > { %263 = vst.msk [vmem:[#allocation2 + $0x120] sm:$0xff] %vm225_vm1, %v11442_v1  ;;  %264 = vst.msk [vmem:[#allocation2 + $0x128] sm:$0xff] %vm225_vm1, %v11442_v1  ;;  %v293_v24 = vld [vmem:[%s9050_s28 + $0x60] sm:$0xff]  ;;  %v294_v25 = vld [vmem:[%s9050_s28 + $0x68] sm:$0xff] }
  0x1b   : > { %266 = vst.msk [vmem:[#allocation2 + $0x138] sm:$0xff] %vm225_vm1, %v11442_v1  ;;  %267 = vst.msk [vmem:[#allocation2 + $0x140] sm:$0xff] %vm225_vm1, %v11442_v1  ;;  %v295_v26 = vld [vmem:[%s9050_s28 + $0x70] sm:$0xff]  ;;  %v296_v27 = vld [vmem:[%s9050_s28 + $0x78] sm:$0xff] }
  0x1c   : > { %269 = vst.msk [vmem:[#allocation2 + $0x150] sm:$0xff] %vm225_vm1, %v11442_v1  ;;  %270 = vst.msk [vmem:[#allocation2 + $0x158] sm:$0xff] %vm225_vm1, %v11442_v1  ;;  %v297_v28 = vld [vmem:[%s9050_s28 + $0x80] sm:$0xff]  ;;  %v298_v29 = vld [vmem:[%s9050_s28 + $0x88] sm:$0xff] }
  0x1d   : > { %272 = vst.msk [vmem:[#allocation2 + $0x168] sm:$0xff] %vm225_vm1, %v11442_v1  ;;  %273 = vst.msk [vmem:[#allocation2 + $0x170] sm:$0xff] %vm225_vm1, %v11442_v1  ;;  %v299_v30 = vld [vmem:[%s9050_s28 + $0x90] sm:$0xff]  ;;  %v300_v31 = vld [vmem:[%s9050_s28 + $0x98] sm:$0xff] }
  0x1e   : > { %275 = vst.msk [vmem:[#allocation2 + $0x180] sm:$0xff] %vm225_vm1, %v11442_v1  ;;  %276 = vst.msk [vmem:[#allocation2 + $0x188] sm:$0xff] %vm225_vm1, %v11442_v1  ;;  %v301_v32 = vld [vmem:[%s9050_s28 + $0xa0] sm:$0xff]  ;;  %v302_v41 = vld [vmem:[%s9050_s28 + $0xa8] sm:$0xff] }
  0x1f   : > { %278 = vst.msk [vmem:[#allocation2 + $0x198] sm:$0xff] %vm225_vm1, %v11442_v1  ;;  %279 = vst.msk [vmem:[#allocation2 + $0x1a0] sm:$0xff] %vm225_vm1, %v11442_v1 }
  0x20   : > { %229 = vst.msk [vmem:[#allocation2 + $0x10] sm:$0x3] %vm228_vm2, %v11442_v1  ;;  %232 = vst.msk [vmem:[#allocation2 + $0x28] sm:$0x3] %vm228_vm2, %v11442_v1 }
  0x21   : > { %235 = vst.msk [vmem:[#allocation2 + $0x40] sm:$0x3] %vm228_vm2, %v11442_v1  ;;  %238 = vst.msk [vmem:[#allocation2 + $0x58] sm:$0x3] %vm228_vm2, %v11442_v1 }
  0x22   : > { %241 = vst.msk [vmem:[#allocation2 + $0x70] sm:$0x3] %vm228_vm2, %v11442_v1  ;;  %244 = vst.msk [vmem:[#allocation2 + $0x88] sm:$0x3] %vm228_vm2, %v11442_v1 }
  0x23   : > { %247 = vst.msk [vmem:[#allocation2 + $0xa0] sm:$0x3] %vm228_vm2, %v11442_v1  ;;  %250 = vst.msk [vmem:[#allocation2 + $0xb8] sm:$0x3] %vm228_vm2, %v11442_v1 }
  0x24   : > { %253 = vst.msk [vmem:[#allocation2 + $0xd0] sm:$0x3] %vm228_vm2, %v11442_v1  ;;  %256 = vst.msk [vmem:[#allocation2 + $0xe8] sm:$0x3] %vm228_vm2, %v11442_v1 }
  0x25   : > { %259 = vst.msk [vmem:[#allocation2 + $0x100] sm:$0x3] %vm228_vm2, %v11442_v1  ;;  %262 = vst.msk [vmem:[#allocation2 + $0x118] sm:$0x3] %vm228_vm2, %v11442_v1 }
  0x26   : > { %265 = vst.msk [vmem:[#allocation2 + $0x130] sm:$0x3] %vm228_vm2, %v11442_v1  ;;  %268 = vst.msk [vmem:[#allocation2 + $0x148] sm:$0x3] %vm228_vm2, %v11442_v1 }
  0x27   : > { %271 = vst.msk [vmem:[#allocation2 + $0x160] sm:$0x3] %vm228_vm2, %v11442_v1  ;;  %274 = vst.msk [vmem:[#allocation2 + $0x178] sm:$0x3] %vm228_vm2, %v11442_v1  ;;  %v9065_v11 = vld [vmem:[#allocation2 + $0x10] sm:$0x3] }
  0x28   : > { %277 = vst.msk [vmem:[#allocation2 + $0x190] sm:$0x3] %vm228_vm2, %v11442_v1  ;;  %280 = vst.msk [vmem:[#allocation2 + $0x1a8] sm:$0x3] %vm228_vm2, %v11442_v1  ;;  %v455_v14 = vrot.slane %v9065_v11, 1 }
  0x29   : > { %314 = vst.msk [vmem:[#allocation2 + $0x19] sm:$0xff] %vm225_vm1, %v281_v3  ;;  %315 = vst.msk [vmem:[#allocation2 + $0x21] sm:$0xff] %vm225_vm1, %v282_v4 }
  0x2a   : > { %316 = vst.msk [vmem:[#allocation2 + $0x31] sm:$0xff] %vm225_vm1, %v283_v5  ;;  %317 = vst.msk [vmem:[#allocation2 + $0x39] sm:$0xff] %vm225_vm1, %v284_v8  ;;  %v456_v23 = vsel %vm451_vm3, %v453_v10, %v455_v14  ;;  %v305_v14 = vld [vmem:[%s9050_s28 + $0xc0] sm:$0xff] }
  0x2b   : > { %318 = vst.msk [vmem:[#allocation2 + $0x49] sm:$0xff] %vm225_vm1, %v285_v12  ;;  %319 = vst.msk [vmem:[#allocation2 + $0x51] sm:$0xff] %vm225_vm1, %v286_v13  ;;  %7447 = vmatmul.mubr.msk.f32.vlgmr.msra.gmra.mrb[0].mxu0 %vm225_vm1, %v456_v23  ;;  %v303_v12 = vld [vmem:[%s9050_s28 + $0xb0] sm:$0xff]  ;;  %v304_v13 = vld [vmem:[%s9050_s28 + $0xb8] sm:$0xff] }
  0x2c   : > { %320 = vst.msk [vmem:[#allocation2 + $0x61] sm:$0xff] %vm225_vm1, %v287_v15  ;;  %321 = vst.msk [vmem:[#allocation2 + $0x69] sm:$0xff] %vm225_vm1, %v288_v16  ;;  %7495 = vmatpush3.msk.msra.mxu0 %vm596_vm0, %v8991_v2  ;;  %v306_v15 = vld [vmem:[%s9050_s28 + $0xc8] sm:$0xff]  ;;  %v307_v16 = vld [vmem:[%s9050_s28 + $0xd0] sm:$0xff] }
  0x2d   : > { %322 = vst.msk [vmem:[#allocation2 + $0x79] sm:$0xff] %vm225_vm1, %v289_v17  ;;  %323 = vst.msk [vmem:[#allocation2 + $0x81] sm:$0xff] %vm225_vm1, %v290_v20  ;;  %7544 = vmatprep.subr.msk.mxu0 %vm596_vm0, %v9079_v18  ;;  %v308_v20 = vld [vmem:[%s9050_s28 + $0xd8] sm:$0xff] }
  0x2e   : > { %324 = vst.msk [vmem:[#allocation2 + $0x91] sm:$0xff] %vm225_vm1, %v291_v21  ;;  %325 = vst.msk [vmem:[#allocation2 + $0x99] sm:$0xff] %vm225_vm1, %v292_v22  ;;  %v309_v21 = vld [vmem:[%s9050_s28 + $0xe0] sm:$0xff]  ;;  %v310_v22 = vld [vmem:[%s9050_s28 + $0xe8] sm:$0xff] }
  0x2f   : > { %326 = vst.msk [vmem:[#allocation2 + $0xa9] sm:$0xff] %vm225_vm1, %v293_v24  ;;  %327 = vst.msk [vmem:[#allocation2 + $0xb1] sm:$0xff] %vm225_vm1, %v294_v25 }
  0x30   : > { %328 = vst.msk [vmem:[#allocation2 + $0xc1] sm:$0xff] %vm225_vm1, %v295_v26  ;;  %329 = vst.msk [vmem:[#allocation2 + $0xc9] sm:$0xff] %vm225_vm1, %v296_v27  ;;  %v9111_v33 = vld [vmem:[#allocation2 + $0x18] sm:$0xff]  ;;  %v9113_v34 = vld [vmem:[#allocation2 + $0x20] sm:$0xff] }
  0x31   : > { %330 = vst.msk [vmem:[#allocation2 + $0xd9] sm:$0xff] %vm225_vm1, %v297_v28  ;;  %331 = vst.msk [vmem:[#allocation2 + $0xe1] sm:$0xff] %vm225_vm1, %v298_v29  ;;  %v9115_v35 = vld [vmem:[#allocation2 + $0x28] sm:$0x3]  ;;  %v457_v36 = vrot.slane %v9111_v33, 1  ;;  %v458_v37 = vrot.slane %v9113_v34, 1 }
  0x32   : > { %332 = vst.msk [vmem:[#allocation2 + $0xf1] sm:$0xff] %vm225_vm1, %v299_v30  ;;  %333 = vst.msk [vmem:[#allocation2 + $0xf9] sm:$0xff] %vm225_vm1, %v300_v31  ;;  %v460_v38 = vrot.slane %v9115_v35, 1  ;;  %v9125_v39 = vld [vmem:[#allocation2 + $0x30] sm:$0xff]  ;;  %v9127_v40 = vld [vmem:[#allocation2 + $0x38] sm:$0xff] }
  0x33   : > { %334 = vst.msk [vmem:[#allocation2 + $0x109] sm:$0xff] %vm225_vm1, %v301_v32  ;;  %v462_v42 = vrot.slane %v9125_v39, 1  ;;  %v463_v43 = vrot.slane %v9127_v40, 1  ;;  %v9132_v44 = vld [vmem:[#allocation2 + $0x40] sm:$0x3]  ;;  %v9134_v45 = vld [vmem:[#allocation2 + $0x48] sm:$0xff]  ;;  %v9140_v47 = vsel %vm451_vm3, %v457_v36, %v458_v37 }
  0x34   : > { %v9136_v46 = vld [vmem:[#allocation2 + $0x50] sm:$0xff]  ;;  %335 = vst.msk [vmem:[#allocation2 + $0x111] sm:$0xff] %vm225_vm1, %v302_v41  ;;  %v9143_v48 = vsel %vm451_vm3, %v458_v37, %v460_v38  ;;  %v465_v49 = vrot.slane %v9132_v44, 1  ;;  %v467_v50 = vrot.slane %v9134_v45, 1  ;;  %v9147_v51 = vld [vmem:[#allocation2 + $0x58] sm:$0x3]  ;;  %7449 = vmatprep.mubr.msk.f32.mxu0 %vm225_vm1, %v9140_v47 }
  0x35   : > { %v9152_v52 = vsel %vm451_vm3, %v462_v42, %v463_v43  ;;  %v468_v53 = vrot.slane %v9136_v46, 1  ;;  %v9155_v54 = vld [vmem:[#allocation2 + $0x60] sm:$0xff]  ;;  %v9157_v55 = vld [vmem:[#allocation2 + $0x68] sm:$0xff]  ;;  %7450 = vmatmul.mubr.msk.f32.gmra.mrb[2].mxu0 %vm225_vm1, %v9143_v48  ;;  %v470_v57 = vrot.slane %v9147_v51, 1  ;;  %v9172_v61 = vld [vmem:[#allocation2 + $0x70] sm:$0x3] }
  0x36   : > { %7452 = vmatprep.mubr.msk.f32.mxu0 %vm225_vm1, %v9152_v52  ;;  %v9164_v56 = vsel %vm451_vm3, %v463_v43, %v465_v49  ;;  %v472_v59 = vrot.slane %v9155_v54, 1  ;;  %v473_v60 = vrot.slane %v9157_v55, 1  ;;  %v9174_v62 = vld [vmem:[#allocation2 + $0x78] sm:$0xff]  ;;  %v9176_v63 = vld [vmem:[#allocation2 + $0x80] sm:$0xff]  ;;  %v475_v2 = vrot.slane %v9172_v61, 1  ;;  %v9193_v9 = vld [vmem:[#allocation2 + $0x90] sm:$0xff] }
  0x37   : > { %v9168_v58 = vsel %vm451_vm3, %v467_v50, %v468_v53  ;;  %v9183_v0 = vsel %vm451_vm3, %v468_v53, %v470_v57  ;;  %v477_v4 = vrot.slane %v9174_v62, 1  ;;  %v478_v5 = vrot.slane %v9176_v63, 1  ;;  %v9191_v8 = vld [vmem:[#allocation2 + $0x88] sm:$0x3]  ;;  %v9195_v10 = vld [vmem:[#allocation2 + $0x98] sm:$0xff]  ;;  %336 = vst.msk [vmem:[#allocation2 + $0x121] sm:$0xff] %vm225_vm1, %v303_v12 }
  0x38   : > { %11590 = vst [vmem:[#allocation4_spill] sm:$0xff] %v9168_v58  ;;  %11591 = vst [vmem:[#allocation5_spill] sm:$0xff] %v9183_v0  ;;  %v9187_v3 = vsel %vm451_vm3, %v472_v59, %v473_v60  ;;  %v9209_v17 = vsel %vm451_vm3, %v473_v60, %v475_v2  ;;  %v480_v19 = vrot.slane %v9191_v8, 1  ;;  %v482_v24 = vrot.slane %v9193_v9, 1  ;;  %v9223_v26 = vld [vmem:[#allocation2 + $0xa0] sm:$0x3] }
  0x39   : > { %7453 = vmatmul.mubr.msk.f32.gmra.mrb[4].mxu0 %vm225_vm1, %v9164_v56  ;;  %11592 = vst [vmem:[#allocation6_spill] sm:$0xff] %v9187_v3  ;;  %337 = vst.msk [vmem:[#allocation2 + $0x129] sm:$0xff] %vm225_vm1, %v304_v13  ;;  %v9219_v23 = vsel %vm451_vm3, %v477_v4, %v478_v5  ;;  %v483_v25 = vrot.slane %v9195_v10, 1  ;;  %v9228_v27 = vld [vmem:[#allocation2 + $0xa8] sm:$0xff]  ;;  %v9230_v28 = vld [vmem:[#allocation2 + $0xb0] sm:$0xff]  ;;  %v485_v30 = vrot.slane %v9223_v26, 1 }
  0x3a   : > { %7455 = vmatprep.mubr.msk.f32.mxu0 %vm225_vm1, %v9168_v58  ;;  %11593 = vst [vmem:[#allocation7_spill] sm:$0xff] %v9209_v17  ;;  %338 = vst.msk [vmem:[#allocation2 + $0x139] sm:$0xff] %vm225_vm1, %v305_v14  ;;  %v9237_v29 = vsel %vm451_vm3, %v478_v5, %v480_v19  ;;  %v487_v32 = vrot.slane %v9228_v27, 1  ;;  %v488_v36 = vrot.slane %v9230_v28, 1  ;;  %v9245_v37 = vld [vmem:[#allocation2 + $0xb8] sm:$0x3] }
  0x3b   : > { %339 = vst.msk [vmem:[#allocation2 + $0x141] sm:$0xff] %vm225_vm1, %v306_v15  ;;  %340 = vst.msk [vmem:[#allocation2 + $0x151] sm:$0xff] %vm225_vm1, %v307_v16  ;;  %v9241_v31 = vsel %vm451_vm3, %v482_v24, %v483_v25  ;;  %v9247_v38 = vld [vmem:[#allocation2 + $0xc0] sm:$0xff]  ;;  %v9249_v41 = vld [vmem:[#allocation2 + $0xc8] sm:$0xff]  ;;  %v9256_v42 = vsel %vm451_vm3, %v483_v25, %v485_v30  ;;  %v490_v43 = vrot.slane %v9245_v37, 1 }
  0x3c   : > { %11594 = vst [vmem:[#allocation8_spill] sm:$0xff] %v9219_v23  ;;  %341 = vst.msk [vmem:[#allocation2 + $0x159] sm:$0xff] %vm225_vm1, %v308_v20  ;;  %v9260_v49 = vsel %vm451_vm3, %v487_v32, %v488_v36  ;;  %v492_v50 = vrot.slane %v9247_v38, 1  ;;  %v493_v53 = vrot.slane %v9249_v41, 1  ;;  %v9264_v57 = vld [vmem:[#allocation2 + $0xd0] sm:$0x3] }
  0x3d   : > { %7456 = vmatmul.mubr.msk.f32.gmra.mrb[6].mxu0 %vm225_vm1, %v9183_v0  ;;  %342 = vst.msk [vmem:[#allocation2 + $0x169] sm:$0xff] %vm225_vm1, %v309_v21  ;;  %343 = vst.msk [vmem:[#allocation2 + $0x171] sm:$0xff] %vm225_vm1, %v310_v22  ;;  %v9266_v59 = vld [vmem:[#allocation2 + $0xd8] sm:$0xff]  ;;  %v9268_v60 = vld [vmem:[#allocation2 + $0xe0] sm:$0xff]  ;;  %v9275_v2 = vsel %vm451_vm3, %v488_v36, %v490_v43  ;;  %v495_v4 = vrot.slane %v9264_v57, 1 }
  0x3e   : > { %7458 = vmatprep.mubr.msk.f32.mxu0 %vm225_vm1, %v9187_v3  ;;  %11595 = vst [vmem:[#allocation9_spill] sm:$0xff] %v9237_v29  ;;  %11596 = vst [vmem:[#allocation10_spill] sm:$0xff] %v9241_v31  ;;  %v9279_v5 = vsel %vm451_vm3, %v492_v50, %v493_v53  ;;  %v497_v12 = vrot.slane %v9266_v59, 1  ;;  %v498_v13 = vrot.slane %v9268_v60, 1  ;;  %v9283_v14 = vld [vmem:[#allocation2 + $0xe8] sm:$0x3] }
  0x3f   : > { %11597 = vst [vmem:[#allocation11_spill] sm:$0xff] %v9256_v42  ;;  %11598 = vst [vmem:[#allocation12_spill] sm:$0xff] %v9260_v49  ;;  %v9285_v15 = vld [vmem:[#allocation2 + $0xf0] sm:$0xff]  ;;  %v9287_v16 = vld [vmem:[#allocation2 + $0xf8] sm:$0xff]  ;;  %v9294_v19 = vsel %vm451_vm3, %v493_v53, %v495_v4  ;;  %v500_v20 = vrot.slane %v9283_v14, 1 }
  0x40   : > { %11599 = vst [vmem:[#allocation13_spill] sm:$0xff] %v9275_v2  ;;  %11600 = vst [vmem:[#allocation14_spill] sm:$0xff] %v9279_v5  ;;  %v9298_v21 = vsel %vm451_vm3, %v497_v12, %v498_v13  ;;  %v502_v22 = vrot.slane %v9285_v15, 1  ;;  %v503_v24 = vrot.slane %v9287_v16, 1  ;;  %v9302_v25 = vld [vmem:[#allocation2 + $0x100] sm:$0x3] }
  0x41   : > { %7459 = vmatmul.mubr.msk.f32.gmra.mrb[8].mxu0 %vm225_vm1, %v9209_v17  ;;  %11601 = vst [vmem:[#allocation15_spill] sm:$0xff] %v9294_v19  ;;  %11602 = vst [vmem:[#allocation16_spill] sm:$0xff] %v9298_v21  ;;  %v9304_v30 = vld [vmem:[#allocation2 + $0x108] sm:$0xff]  ;;  %v9306_v32 = vld [vmem:[#allocation2 + $0x110] sm:$0xff]  ;;  %v9313_v36 = vsel %vm451_vm3, %v498_v13, %v500_v20  ;;  %v505_v43 = vrot.slane %v9302_v25, 1 }
  0x42   : > { %7461 = vmatprep.mubr.msk.f32.mxu0 %vm225_vm1, %v9219_v23  ;;  %11603 = vst [vmem:[#allocation17_spill] sm:$0xff] %v9313_v36  ;;  %v9317_v50 = vsel %vm451_vm3, %v502_v22, %v503_v24  ;;  %v507_v53 = vrot.slane %v9304_v30, 1  ;;  %v508_v4 = vrot.slane %v9306_v32, 1  ;;  %v9321_v12 = vld [vmem:[#allocation2 + $0x118] sm:$0x3]  ;;  %v9323_v1 = vld [vmem:[#allocation2 + $0x120] sm:$0xff] }
  0x43   : > { %11604 = vst [vmem:[#allocation18_spill] sm:$0xff] %v9317_v50  ;;  %v9332_v13 = vsel %vm451_vm3, %v503_v24, %v505_v43  ;;  %v510_v20 = vrot.slane %v9321_v12, 1  ;;  %v9378_v17 = vld [vmem:[#allocation2 + $0x160] sm:$0x3] }
  0x44   : > { %11605 = vst [vmem:[#allocation19_spill] sm:$0xff] %v9332_v13  ;;  %v9336_v22 = vsel %vm451_vm3, %v507_v53, %v508_v4  ;;  %v9380_v3 = vld [vmem:[#allocation2 + $0x168] sm:$0xff]  ;;  %v9397_v58 = vld [vmem:[#allocation2 + $0x178] sm:$0x3] }
  0x45   : > { %7462 = vmatmul.mubr.msk.f32.gmra.mrb[10].mxu0 %vm225_vm1, %v9237_v29  ;;  %11606 = vst [vmem:[#allocation20_spill] sm:$0xff] %v9336_v22  ;;  %v9351_v24 = vsel %vm451_vm3, %v508_v4, %v510_v20  ;;  %v9361_v29 = vld [vmem:[#allocation2 + $0x150] sm:$0xff] }
  0x46   : > { %7464 = vmatprep.mubr.msk.f32.mxu0 %vm225_vm1, %v9241_v31  ;;  %11607 = vst [vmem:[#allocation21_spill] sm:$0xff] %v9351_v24  ;;  %v9359_v31 = vld [vmem:[#allocation2 + $0x148] sm:$0x3] }
  0x49   : > { %7465 = vmatmul.mubr.msk.f32.gmra.mrb[12].mxu0 %vm225_vm1, %v9256_v42 }
  0x4a   : > { %7467 = vmatprep.mubr.msk.f32.mxu0 %vm225_vm1, %v9260_v49  ;;  %v9342_v49 = vld [vmem:[#allocation2 + $0x138] sm:$0xff] }
  0x4d   : > { %7468 = vmatmul.mubr.msk.f32.gmra.mrb[14].mxu0 %vm225_vm1, %v9275_v2  ;;  %v9340_v2 = vld [vmem:[#allocation2 + $0x130] sm:$0x3] }
  0x4e   : > { %7470 = vmatprep.mubr.msk.f32.mxu0 %vm225_vm1, %v9279_v5  ;;  %v515_v43 = vrot.slane %v9340_v2, 1 }
  0x51   : > { %7471 = vmatmul.mubr.msk.f32.gmra.mrb[16].mxu0 %vm225_vm1, %v9294_v19  ;;  %v9325_v19 = vld [vmem:[#allocation2 + $0x128] sm:$0xff] }
  0x52   : > { %7473 = vmatprep.mubr.msk.f32.mxu0 %vm225_vm1, %v9298_v21  ;;  %v512_v21 = vrot.slane %v9323_v1, 1  ;;  %v513_v5 = vrot.slane %v9325_v19, 1 }
  0x54   : > { %v9355_v53 = vsel %vm451_vm3, %v512_v21, %v513_v5  ;;  %v9370_v4 = vsel %vm451_vm3, %v513_v5, %v515_v43  ;;  %v520_v21 = vrot.slane %v9359_v31, 1 }
  0x55   : > { %7474 = vmatmul.mubr.msk.f32.gmra.mrb[18].mxu0 %vm225_vm1, %v9313_v36  ;;  %v9344_v36 = vld [vmem:[#allocation2 + $0x140] sm:$0xff]  ;;  %11608 = vst [vmem:[#allocation22_spill] sm:$0xff] %v9355_v53  ;;  %11609 = vst [vmem:[#allocation23_spill] sm:$0xff] %v9370_v4 }
  0x56   : > { %7476 = vmatprep.mubr.msk.f32.mxu0 %vm225_vm1, %v9317_v50  ;;  %v517_v50 = vrot.slane %v9342_v49, 1  ;;  %v518_v42 = vrot.slane %v9344_v36, 1 }
  0x58   : > { %v9374_v20 = vsel %vm451_vm3, %v517_v50, %v518_v42  ;;  %v9389_v5 = vsel %vm451_vm3, %v518_v42, %v520_v21  ;;  %v525_v50 = vrot.slane %v9378_v17, 1  ;;  %v530_v21 = vrot.slane %v9397_v58, 1 }
  0x59   : > { %7477 = vmatmul.mubr.msk.f32.gmra.mrb[20].mxu0 %vm225_vm1, %v9332_v13  ;;  %v9363_v13 = vld [vmem:[#allocation2 + $0x158] sm:$0xff]  ;;  %11610 = vst [vmem:[#allocation24_spill] sm:$0xff] %v9374_v20 }
  0x5a   : > { %7479 = vmatprep.mubr.msk.f32.mxu0 %vm225_vm1, %v9336_v22  ;;  %v522_v22 = vrot.slane %v9361_v29, 1  ;;  %v523_v23 = vrot.slane %v9363_v13, 1 }
  0x5c   : > { %v9393_v43 = vsel %vm451_vm3, %v522_v22, %v523_v23  ;;  %v9404_v42 = vsel %vm451_vm3, %v523_v23, %v525_v50  ;;  %v6344_v23 = vld [vmem:[%s11437_s1 + $0xc] sm:$0xf]  ;;  %v1121_v50 = vrot.slane %v9057_v7, 2 }
  0x5d   : > { %7480 = vmatmul.mubr.msk.f32.gmra.mrb[22].mxu0 %vm225_vm1, %v9351_v24  ;;  %v9382_v24 = vld [vmem:[#allocation2 + $0x170] sm:$0xff]  ;;  %11611 = vst [vmem:[#allocation25_spill] sm:$0xff] %v9393_v43  ;;  %11612 = vst [vmem:[#allocation26_spill] sm:$0xff] %v9404_v42 }
  0x5e   : > { %7482 = vmatprep.mubr.msk.f32.mxu0 %vm225_vm1, %v9355_v53  ;;  %v527_v53 = vrot.slane %v9380_v3, 1  ;;  %v528_v0 = vrot.slane %v9382_v24, 1 }
  0x60   : > { %v9408_v22 = vsel %vm451_vm3, %v527_v53, %v528_v0  ;;  %v1120_v53 = vrot.slane %v9055_v6, 2 }
  0x61   : > { %7483 = vmatmul.mubr.msk.f32.gmra.mrb[24].mxu0 %vm225_vm1, %v9370_v4  ;;  %11613 = vst [vmem:[#allocation27_spill] sm:$0xff] %v9408_v22 }
  0x62   : > { %7485 = vmatprep.mubr.msk.f32.mxu0 %vm225_vm1, %v9374_v20  ;;  %v9415_v20 = vsel %vm451_vm3, %v528_v0, %v530_v21  ;;  %v312_v0 = vld [vmem:[%s9050_s28 + $0xf8] sm:$0xff]  ;;  %v1123_v21 = vrot.slane %v9065_v11, 2 }
  0x63   : > { %11614 = vst [vmem:[#allocation28_spill] sm:$0xff] %v9415_v20  ;;  %345 = vst.msk [vmem:[#allocation2 + $0x189] sm:$0xff] %vm225_vm1, %v312_v0  ;;  %v1125_v0 = vrot.slane %v9111_v33, 2 }
  0x65   : > { %7486 = vmatmul.mubr.msk.f32.gmra.mrb[26].mxu0 %vm225_vm1, %v9389_v5 }
  0x66   : > { %7488 = vmatprep.mubr.msk.f32.mxu0 %vm225_vm1, %v9393_v43 }
  0x69   : > { %7489 = vmatmul.mubr.msk.f32.gmra.mrb[28].mxu0 %vm225_vm1, %v9404_v42  ;;  %v9510_v42 = vld [vmem:[%s11437_s1 + $0x10] sm:$0xf] }
  0x6a   : > { %7491 = vmatprep.mubr.msk.f32.mxu0 %vm225_vm1, %v9408_v22  ;;  %v1130_v22 = vrot.slane %v9125_v39, 2 }
  0x6d   : > { %7492 = vmatmul.mubr.msk.f32.gmra.mrb[30].mxu0 %vm225_vm1, %v9415_v20  ;;  %v1126_v20 = vrot.slane %v9113_v34, 2 }
  0x6e   : > { %7496 = vmatprep.mubr.msk.f32.mxu0 %vm225_vm1, %v9055_v6  ;;  %v1124_v6 = vsel %vm1119_vm4, %v1121_v50, %v1123_v21 }
  0x6f   : > { %v9503_v11 = vsel %vm1119_vm4, %v1125_v0, %v1126_v20  ;;  %v1136_v0 = vrot.slane %v9136_v46, 2 }
  0x71   : > { %7497 = vmatmul.mubr.msk.f32.vlgmr.msra.gmra.mrb[0].mxu0 %vm225_vm1, %v9057_v7  ;;  %v1128_v7 = vrot.slane %v9115_v35, 2 }
  0x72   : > { %7545 = vmatpush3.msk.msra.mxu0 %vm596_vm0, %v9079_v18  ;;  %7499 = vmatprep.mubr.msk.f32.mxu0 %vm225_vm1, %v9111_v33  ;;  %v311_v18 = vld [vmem:[%s9050_s28 + $0xf0] sm:$0xff] }
  0x73   : > { %7594 = vmatprep.subr.msk.mxu0 %vm596_vm0, %v6344_v23  ;;  %344 = vst.msk [vmem:[#allocation2 + $0x181] sm:$0xff] %vm225_vm1, %v311_v18  ;;  %v1122_v18 = vsel %vm1119_vm4, %v1120_v53, %v1121_v50  ;;  %v1131_v53 = vrot.slane %v9127_v40, 2  ;;  %v9517_v35 = vsel %vm1119_vm4, %v1126_v20, %v1128_v7  ;;  %v1133_v50 = vrot.slane %v9132_v44, 2 }
  0x74   : > { %v1138_v44 = vrot.slane %v9147_v51, 2 }
  0x75   : > { %7500 = vmatmul.mubr.msk.f32.gmra.mrb[2].mxu0 %vm225_vm1, %v9113_v34  ;;  %v9521_v21 = vsel %vm1119_vm4, %v1130_v22, %v1131_v53  ;;  %v9532_v20 = vsel %vm1119_vm4, %v1131_v53, %v1133_v50  ;;  %v1143_v53 = vrot.slane %v9172_v61, 2  ;;  %v1145_v50 = vrot.slane %v9174_v62, 2 }
  0x76   : > { %7502 = vmatprep.mubr.msk.f32.mxu0 %vm225_vm1, %v9125_v39  ;;  %v9545_v7 = vsel %vm1119_vm4, %v1136_v0, %v1138_v44  ;;  %v1150_v44 = vrot.slane %v9193_v9, 2 }
  0x79   : > { %7503 = vmatmul.mubr.msk.f32.gmra.mrb[4].mxu0 %vm225_vm1, %v9127_v40 }
  0x7a   : > { %7505 = vmatprep.mubr.msk.f32.mxu0 %vm225_vm1, %v9134_v45 }
  0x7d   : > { %7506 = vmatmul.mubr.msk.f32.gmra.mrb[6].mxu0 %vm225_vm1, %v9136_v46 }
  0x7e   : > { %7508 = vmatprep.mubr.msk.f32.mxu0 %vm225_vm1, %v9155_v54 }
  0x81   : > { %7509 = vmatmul.mubr.msk.f32.gmra.mrb[8].mxu0 %vm225_vm1, %v9157_v55 }
  0x82   : > { %7511 = vmatprep.mubr.msk.f32.mxu0 %vm225_vm1, %v9174_v62 }
  0x85   : > { %7512 = vmatmul.mubr.msk.f32.gmra.mrb[10].mxu0 %vm225_vm1, %v9176_v63 }
  0x86   : > { %7514 = vmatprep.mubr.msk.f32.mxu0 %vm225_vm1, %v9193_v9 }
  0x89   : > { %7515 = vmatmul.mubr.msk.f32.gmra.mrb[12].mxu0 %vm225_vm1, %v9195_v10 }
  0x8a   : > { %7517 = vmatprep.mubr.msk.f32.mxu0 %vm225_vm1, %v9228_v27 }
  0x8d   : > { %7518 = vmatmul.mubr.msk.f32.gmra.mrb[14].mxu0 %vm225_vm1, %v9230_v28 }
  0x8e   : > { %7520 = vmatprep.mubr.msk.f32.mxu0 %vm225_vm1, %v9247_v38 }
  0x91   : > { %7521 = vmatmul.mubr.msk.f32.gmra.mrb[16].mxu0 %vm225_vm1, %v9249_v41 }
  0x92   : > { %7523 = vmatprep.mubr.msk.f32.mxu0 %vm225_vm1, %v9266_v59 }
  0x95   : > { %7524 = vmatmul.mubr.msk.f32.gmra.mrb[18].mxu0 %vm225_vm1, %v9268_v60 }
  0x96   : > { %7526 = vmatprep.mubr.msk.f32.mxu0 %vm225_vm1, %v9285_v15 }
  0x99   : > { %7527 = vmatmul.mubr.msk.f32.gmra.mrb[20].mxu0 %vm225_vm1, %v9287_v16 }
  0x9a   : > { %7529 = vmatprep.mubr.msk.f32.mxu0 %vm225_vm1, %v9304_v30 }
  0x9d   : > { %7530 = vmatmul.mubr.msk.f32.gmra.mrb[22].mxu0 %vm225_vm1, %v9306_v32 }
  0x9e   : > { %7532 = vmatprep.mubr.msk.f32.mxu0 %vm225_vm1, %v9323_v1 }
  0xa1   : > { %7533 = vmatmul.mubr.msk.f32.gmra.mrb[24].mxu0 %vm225_vm1, %v9325_v19 }
  0xa2   : > { %7535 = vmatprep.mubr.msk.f32.mxu0 %vm225_vm1, %v9342_v49 }
  0xa5   : > { %7536 = vmatmul.mubr.msk.f32.gmra.mrb[26].mxu0 %vm225_vm1, %v9344_v36 }
  0xa6   : > { %7538 = vmatprep.mubr.msk.f32.mxu0 %vm225_vm1, %v9361_v29 }
  0xa9   : > { %7539 = vmatmul.mubr.msk.f32.gmra.mrb[28].mxu0 %vm225_vm1, %v9363_v13 }
  0xaa   : > { %7541 = vmatprep.mubr.msk.f32.mxu0 %vm225_vm1, %v9380_v3 }
  0xad   : > { %7542 = vmatmul.mubr.msk.f32.gmra.mrb[30].mxu0 %vm225_vm1, %v9382_v24 }
  0xae   : > { %7546 = vmatprep.mubr.msk.f32.mxu0 %vm225_vm1, %v1122_v18  ;;  %v1135_v18 = vrot.slane %v9134_v45, 2 }
  0xb0   : > { %v9536_v22 = vsel %vm1119_vm4, %v1135_v18, %v1136_v0  ;;  %v1146_v18 = vrot.slane %v9176_v63, 2  ;;  %v1148_v0 = vrot.slane %v9191_v8, 2 }
  0xb1   : > { %7547 = vmatmul.mubr.msk.f32.vlgmr.msra.gmra.mrb[0].mxu0 %vm225_vm1, %v1124_v6  ;;  %11615 = vst [vmem:[#allocation29_spill] sm:$0xff] %v9536_v22  ;;  %v1141_v6 = vrot.slane %v9157_v55, 2 }
  0xb2   : > { %7595 = vmatpush3.msk.msra.mxu0 %vm596_vm0, %v6344_v23  ;;  %7549 = vmatprep.mubr.msk.f32.mxu0 %vm225_vm1, %v9503_v11  ;;  %v1140_v23 = vrot.slane %v9155_v54, 2  ;;  %v9562_v61 = vsel %vm1119_vm4, %v1145_v50, %v1146_v18  ;;  %v1156_v50 = vrot.slane %v9230_v28, 2 }
  0xb3   : > { %7644 = vmatprep.subr.msk.mxu0 %vm596_vm0, %v9510_v42  ;;  %11617 = vst [vmem:[#allocation31_spill] sm:$0xff] %v9562_v61 }
  0xb4   : > { %v9549_v51 = vsel %vm1119_vm4, %v1140_v23, %v1141_v6  ;;  %v1151_v23 = vrot.slane %v9195_v10, 2 }
  0xb5   : > { %7550 = vmatmul.mubr.msk.f32.gmra.mrb[2].mxu0 %vm225_vm1, %v9517_v35  ;;  %11616 = vst [vmem:[#allocation30_spill] sm:$0xff] %v9549_v51 }
  0xb6   : > { %7552 = vmatprep.mubr.msk.f32.mxu0 %vm225_vm1, %v9521_v21  ;;  %v9575_v8 = vsel %vm1119_vm4, %v1150_v44, %v1151_v23  ;;  %v1161_v44 = vrot.slane %v9249_v41, 2 }
  0xb7   : > { %11618 = vst [vmem:[#allocation32_spill] sm:$0xff] %v9575_v8 }
  0xb9   : > { %7553 = vmatmul.mubr.msk.f32.gmra.mrb[4].mxu0 %vm225_vm1, %v9532_v20 }
  0xba   : > { %7555 = vmatprep.mubr.msk.f32.mxu0 %vm225_vm1, %v9536_v22  ;;  %v9558_v22 = vsel %vm1119_vm4, %v1141_v6, %v1143_v53  ;;  %v1153_v6 = vrot.slane %v9223_v26, 2  ;;  %v1155_v53 = vrot.slane %v9228_v27, 2 }
  0xbc   : > { %v9588_v26 = vsel %vm1119_vm4, %v1155_v53, %v1156_v50  ;;  %v1166_v53 = vrot.slane %v9268_v60, 2 }
  0xbd   : > { %7556 = vmatmul.mubr.msk.f32.gmra.mrb[6].mxu0 %vm225_vm1, %v9545_v7  ;;  %11619 = vst [vmem:[#allocation33_spill] sm:$0xff] %v9588_v26 }
  0xbe   : > { %7558 = vmatprep.mubr.msk.f32.mxu0 %vm225_vm1, %v9549_v51  ;;  %v9571_v51 = vsel %vm1119_vm4, %v1146_v18, %v1148_v0  ;;  %v1158_v18 = vrot.slane %v9245_v37, 2  ;;  %v1160_v0 = vrot.slane %v9247_v38, 2 }
  0xc0   : > { %v9601_v37 = vsel %vm1119_vm4, %v1160_v0, %v1161_v44  ;;  %v1171_v0 = vrot.slane %v9287_v16, 2 }
  0xc1   : > { %7559 = vmatmul.mubr.msk.f32.gmra.mrb[8].mxu0 %vm225_vm1, %v9558_v22  ;;  %11620 = vst [vmem:[#allocation34_spill] sm:$0xff] %v9601_v37 }
  0xc2   : > { %7561 = vmatprep.mubr.msk.f32.mxu0 %vm225_vm1, %v9562_v61  ;;  %v9584_v61 = vsel %vm1119_vm4, %v1151_v23, %v1153_v6  ;;  %v1163_v23 = vrot.slane %v9264_v57, 2  ;;  %v1165_v6 = vrot.slane %v9266_v59, 2 }
  0xc4   : > { %v9614_v57 = vsel %vm1119_vm4, %v1165_v6, %v1166_v53  ;;  %v1176_v6 = vrot.slane %v9306_v32, 2 }
  0xc5   : > { %7562 = vmatmul.mubr.msk.f32.gmra.mrb[10].mxu0 %vm225_vm1, %v9571_v51  ;;  %11621 = vst [vmem:[#allocation35_spill] sm:$0xff] %v9614_v57 }
  0xc6   : > { %7564 = vmatprep.mubr.msk.f32.mxu0 %vm225_vm1, %v9575_v8  ;;  %v9597_v8 = vsel %vm1119_vm4, %v1156_v50, %v1158_v18  ;;  %v1168_v50 = vrot.slane %v9283_v14, 2  ;;  %v1170_v18 = vrot.slane %v9285_v15, 2 }
  0xc8   : > { %v9627_v14 = vsel %vm1119_vm4, %v1170_v18, %v1171_v0  ;;  %v1181_v18 = vrot.slane %v9325_v19, 2 }
  0xc9   : > { %7565 = vmatmul.mubr.msk.f32.gmra.mrb[12].mxu0 %vm225_vm1, %v9584_v61  ;;  %11622 = vst [vmem:[#allocation36_spill] sm:$0xff] %v9627_v14 }
  0xca   : > { %7567 = vmatprep.mubr.msk.f32.mxu0 %vm225_vm1, %v9588_v26  ;;  %v9610_v26 = vsel %vm1119_vm4, %v1161_v44, %v1163_v23  ;;  %v1173_v44 = vrot.slane %v9302_v25, 2  ;;  %v1175_v23 = vrot.slane %v9304_v30, 2 }
  0xcc   : > { %v9640_v25 = vsel %vm1119_vm4, %v1175_v23, %v1176_v6  ;;  %v1186_v23 = vrot.slane %v9344_v36, 2 }
  0xcd   : > { %7568 = vmatmul.mubr.msk.f32.gmra.mrb[14].mxu0 %vm225_vm1, %v9597_v8  ;;  %11624 = vst [vmem:[#allocation38_spill] sm:$0xff] %v9640_v25 }
  0xce   : > { %7570 = vmatprep.mubr.msk.f32.mxu0 %vm225_vm1, %v9601_v37  ;;  %v9623_v37 = vsel %vm1119_vm4, %v1166_v53, %v1168_v50  ;;  %v1178_v53 = vrot.slane %v9321_v12, 2  ;;  %v1180_v50 = vrot.slane %v9323_v1, 2 }
  0xd0   : > { %v9653_v12 = vsel %vm1119_vm4, %v1180_v50, %v1181_v18  ;;  %v1191_v50 = vrot.slane %v9363_v13, 2 }
  0xd1   : > { %7571 = vmatmul.mubr.msk.f32.gmra.mrb[16].mxu0 %vm225_vm1, %v9610_v26  ;;  %11625 = vst [vmem:[#allocation39_spill] sm:$0xff] %v9653_v12 }
  0xd2   : > { %7573 = vmatprep.mubr.msk.f32.mxu0 %vm225_vm1, %v9614_v57  ;;  %v9636_v57 = vsel %vm1119_vm4, %v1171_v0, %v1173_v44  ;;  %v1183_v0 = vrot.slane %v9340_v2, 2  ;;  %v1185_v44 = vrot.slane %v9342_v49, 2 }
  0xd3   : > { %11623 = vst [vmem:[#allocation37_spill] sm:$0xff] %v9636_v57 }
  0xd4   : > { %v9666_v2 = vsel %vm1119_vm4, %v1185_v44, %v1186_v23  ;;  %v1196_v44 = vrot.slane %v9382_v24, 2 }
  0xd5   : > { %7574 = vmatmul.mubr.msk.f32.gmra.mrb[18].mxu0 %vm225_vm1, %v9623_v37  ;;  %11627 = vst [vmem:[#allocation41_spill] sm:$0xff] %v9666_v2 }
  0xd6   : > { %7576 = vmatprep.mubr.msk.f32.mxu0 %vm225_vm1, %v9627_v14  ;;  %v9649_v14 = vsel %vm1119_vm4, %v1176_v6, %v1178_v53  ;;  %v1188_v6 = vrot.slane %v9359_v31, 2  ;;  %v1190_v53 = vrot.slane %v9361_v29, 2 }
  0xd8   : > { %v9679_v31 = vsel %vm1119_vm4, %v1190_v53, %v1191_v50  ;;  %v11629_v53 = vld [vmem:[#allocation4_spill] sm:$0xff] }
  0xd9   : > { %7577 = vmatmul.mubr.msk.f32.gmra.mrb[20].mxu0 %vm225_vm1, %v9636_v57  ;;  %11628 = vst [vmem:[#allocation42_spill] sm:$0xff] %v9679_v31 }
  0xda   : > { %7579 = vmatprep.mubr.msk.f32.mxu0 %vm225_vm1, %v9640_v25  ;;  %v9662_v25 = vsel %vm1119_vm4, %v1181_v18, %v1183_v0  ;;  %v1193_v18 = vrot.slane %v9378_v17, 2  ;;  %v1195_v0 = vrot.slane %v9380_v3, 2 }
  0xdb   : > { %11626 = vst [vmem:[#allocation40_spill] sm:$0xff] %v9662_v25 }
  0xdc   : > { %v9692_v17 = vsel %vm1119_vm4, %v1195_v0, %v1196_v44  ;;  %v11634_v0 = vld [vmem:[#allocation9_spill] sm:$0xff] }
  0xdd   : > { %7580 = vmatmul.mubr.msk.f32.gmra.mrb[22].mxu0 %vm225_vm1, %v9649_v14 }
  0xde   : > { %7582 = vmatprep.mubr.msk.f32.mxu0 %vm225_vm1, %v9653_v12  ;;  %v9675_v12 = vsel %vm1119_vm4, %v1186_v23, %v1188_v6  ;;  %v1198_v23 = vrot.slane %v9397_v58, 2  ;;  %v6412_v58 = vld [vmem:[%s11437_s1 + $0x14] sm:$0xf] }
  0xe0   : > { %v9699_v6 = vsel %vm1119_vm4, %v1196_v44, %v1198_v23  ;;  %v11635_v44 = vld [vmem:[#allocation10_spill] sm:$0xff]  ;;  %v11636_v23 = vld [vmem:[#allocation11_spill] sm:$0xff] }
  0xe1   : > { %7583 = vmatmul.mubr.msk.f32.gmra.mrb[24].mxu0 %vm225_vm1, %v9662_v25 }
  0xe2   : > { %7585 = vmatprep.mubr.msk.f32.mxu0 %vm225_vm1, %v9666_v2  ;;  %v9688_v2 = vsel %vm1119_vm4, %v1191_v50, %v1193_v18  ;;  %v11631_v50 = vld [vmem:[#allocation6_spill] sm:$0xff]  ;;  %v11633_v18 = vld [vmem:[#allocation8_spill] sm:$0xff] }
  0xe5   : > { %7586 = vmatmul.mubr.msk.f32.gmra.mrb[26].mxu0 %vm225_vm1, %v9675_v12 }
  0xe6   : > { %7588 = vmatprep.mubr.msk.f32.mxu0 %vm225_vm1, %v9679_v31 }
  0xe9   : > { %7589 = vmatmul.mubr.msk.f32.gmra.mrb[28].mxu0 %vm225_vm1, %v9688_v2 }
  0xea   : > { %7591 = vmatprep.mubr.msk.f32.mxu0 %vm225_vm1, %v9692_v17 }
  0xed   : > { %7592 = vmatmul.mubr.msk.f32.gmra.mrb[30].mxu0 %vm225_vm1, %v9699_v6 }
  0xee   : > { %7596 = vmatprep.mubr.msk.f32.mxu0 %vm225_vm1, %v9111_v33  ;;  %v9767_v33 = vld [vmem:[#allocation2 + $0x180] sm:$0xff] }
  0xf1   : > { %7597 = vmatmul.mubr.msk.f32.vlgmr.msra.gmra.mrb[0].mxu0 %vm225_vm1, %v9113_v34  ;;  %v9773_v34 = vld [vmem:[#allocation2 + $0x188] sm:$0xff] }
  0xf2   : > { %7645 = vmatpush3.msk.msra.mxu0 %vm596_vm0, %v9510_v42  ;;  %7599 = vmatprep.mubr.msk.f32.mxu0 %vm225_vm1, %v9125_v39  ;;  %v6446_v42 = vld [vmem:[%s11437_s1 + $0x18] sm:$0xf] }
  0xf3   : > { %7694 = vmatprep.subr.msk.mxu0 %vm596_vm0, %v6412_v58 }
  0xf5   : > { %7600 = vmatmul.mubr.msk.f32.gmra.mrb[2].mxu0 %vm225_vm1, %v9127_v40 }
  0xf6   : > { %7602 = vmatprep.mubr.msk.f32.mxu0 %vm225_vm1, %v9134_v45 }
  0xf9   : > { %7603 = vmatmul.mubr.msk.f32.gmra.mrb[4].mxu0 %vm225_vm1, %v9136_v46 }
  0xfa   : > { %7605 = vmatprep.mubr.msk.f32.mxu0 %vm225_vm1, %v9155_v54 }
  0xfd   : > { %7606 = vmatmul.mubr.msk.f32.gmra.mrb[6].mxu0 %vm225_vm1, %v9157_v55 }
  0xfe   : > { %7608 = vmatprep.mubr.msk.f32.mxu0 %vm225_vm1, %v9174_v62 }
 0x101   : > { %7609 = vmatmul.mubr.msk.f32.gmra.mrb[8].mxu0 %vm225_vm1, %v9176_v63 }
 0x102   : > { %7611 = vmatprep.mubr.msk.f32.mxu0 %vm225_vm1, %v9193_v9 }
 0x105   : > { %7612 = vmatmul.mubr.msk.f32.gmra.mrb[10].mxu0 %vm225_vm1, %v9195_v10 }
 0x106   : > { %7614 = vmatprep.mubr.msk.f32.mxu0 %vm225_vm1, %v9228_v27 }
 0x109   : > { %7615 = vmatmul.mubr.msk.f32.gmra.mrb[12].mxu0 %vm225_vm1, %v9230_v28 }
 0x10a   : > { %7617 = vmatprep.mubr.msk.f32.mxu0 %vm225_vm1, %v9247_v38 }
 0x10d   : > { %7618 = vmatmul.mubr.msk.f32.gmra.mrb[14].mxu0 %vm225_vm1, %v9249_v41 }
 0x10e   : > { %7620 = vmatprep.mubr.msk.f32.mxu0 %vm225_vm1, %v9266_v59 }
 0x111   : > { %7621 = vmatmul.mubr.msk.f32.gmra.mrb[16].mxu0 %vm225_vm1, %v9268_v60 }
 0x112   : > { %7623 = vmatprep.mubr.msk.f32.mxu0 %vm225_vm1, %v9285_v15 }
 0x115   : > { %7624 = vmatmul.mubr.msk.f32.gmra.mrb[18].mxu0 %vm225_vm1, %v9287_v16 }
 0x116   : > { %7626 = vmatprep.mubr.msk.f32.mxu0 %vm225_vm1, %v9304_v30 }
 0x119   : > { %7627 = vmatmul.mubr.msk.f32.gmra.mrb[20].mxu0 %vm225_vm1, %v9306_v32 }
 0x11a   : > { %7629 = vmatprep.mubr.msk.f32.mxu0 %vm225_vm1, %v9323_v1 }
 0x11d   : > { %7630 = vmatmul.mubr.msk.f32.gmra.mrb[22].mxu0 %vm225_vm1, %v9325_v19 }
 0x11e   : > { %7632 = vmatprep.mubr.msk.f32.mxu0 %vm225_vm1, %v9342_v49 }
 0x121   : > { %7633 = vmatmul.mubr.msk.f32.gmra.mrb[24].mxu0 %vm225_vm1, %v9344_v36 }
 0x122   : > { %7635 = vmatprep.mubr.msk.f32.mxu0 %vm225_vm1, %v9361_v29 }
 0x125   : > { %7636 = vmatmul.mubr.msk.f32.gmra.mrb[26].mxu0 %vm225_vm1, %v9363_v13 }
 0x126   : > { %7638 = vmatprep.mubr.msk.f32.mxu0 %vm225_vm1, %v9380_v3 }
 0x129   : > { %7639 = vmatmul.mubr.msk.f32.gmra.mrb[28].mxu0 %vm225_vm1, %v9382_v24 }
 0x12a   : > { %7641 = vmatprep.mubr.msk.f32.mxu0 %vm225_vm1, %v9767_v33 }
 0x12d   : > { %7642 = vmatmul.mubr.msk.f32.gmra.mrb[30].mxu0 %vm225_vm1, %v9773_v34 }
 0x12e   : > { %7646 = vmatprep.mubr.msk.f32.mxu0 %vm225_vm1, %v9140_v47  ;;  %v11630_v47 = vld [vmem:[#allocation5_spill] sm:$0xff] }
 0x131   : > { %7647 = vmatmul.mubr.msk.f32.vlgmr.msra.gmra.mrb[0].mxu0 %vm225_vm1, %v9143_v48  ;;  %v11632_v48 = vld [vmem:[#allocation7_spill] sm:$0xff] }
 0x132   : > { %7695 = vmatpush3.msk.msra.mxu0 %vm596_vm0, %v6412_v58  ;;  %7649 = vmatprep.mubr.msk.f32.mxu0 %vm225_vm1, %v9152_v52  ;;  %v11637_v58 = vld [vmem:[#allocation12_spill] sm:$0xff] }
 0x133   : > { %7744 = vmatprep.subr.msk.mxu0 %vm596_vm0, %v6446_v42 }
 0x135   : > { %7650 = vmatmul.mubr.msk.f32.gmra.mrb[2].mxu0 %vm225_vm1, %v9164_v56 }
 0x136   : > { %7652 = vmatprep.mubr.msk.f32.mxu0 %vm225_vm1, %v11629_v53 }
 0x139   : > { %7653 = vmatmul.mubr.msk.f32.gmra.mrb[4].mxu0 %vm225_vm1, %v11630_v47  ;;  %v11638_v47 = vld [vmem:[#allocation13_spill] sm:$0xff] }
 0x13a   : > { %7655 = vmatprep.mubr.msk.f32.mxu0 %vm225_vm1, %v11631_v50  ;;  %v11639_v50 = vld [vmem:[#allocation14_spill] sm:$0xff] }
 0x13d   : > { %7656 = vmatmul.mubr.msk.f32.gmra.mrb[6].mxu0 %vm225_vm1, %v11632_v48  ;;  %v11640_v48 = vld [vmem:[#allocation15_spill] sm:$0xff] }
 0x13e   : > { %7658 = vmatprep.mubr.msk.f32.mxu0 %vm225_vm1, %v11633_v18  ;;  %v11641_v18 = vld [vmem:[#allocation16_spill] sm:$0xff] }
 0x141   : > { %7659 = vmatmul.mubr.msk.f32.gmra.mrb[8].mxu0 %vm225_vm1, %v11634_v0  ;;  %v11642_v0 = vld [vmem:[#allocation17_spill] sm:$0xff] }
 0x142   : > { %7661 = vmatprep.mubr.msk.f32.mxu0 %vm225_vm1, %v11635_v44  ;;  %v11643_v44 = vld [vmem:[#allocation18_spill] sm:$0xff] }
 0x145   : > { %7662 = vmatmul.mubr.msk.f32.gmra.mrb[10].mxu0 %vm225_vm1, %v11636_v23  ;;  %v11644_v23 = vld [vmem:[#allocation19_spill] sm:$0xff] }
 0x146   : > { %7664 = vmatprep.mubr.msk.f32.mxu0 %vm225_vm1, %v11637_v58  ;;  %v11645_v58 = vld [vmem:[#allocation20_spill] sm:$0xff] }
 0x149   : > { %7665 = vmatmul.mubr.msk.f32.gmra.mrb[12].mxu0 %vm225_vm1, %v11638_v47  ;;  %v11646_v47 = vld [vmem:[#allocation21_spill] sm:$0xff] }
 0x14a   : > { %7667 = vmatprep.mubr.msk.f32.mxu0 %vm225_vm1, %v11639_v50  ;;  %v11647_v50 = vld [vmem:[#allocation22_spill] sm:$0xff] }
 0x14d   : > { %7668 = vmatmul.mubr.msk.f32.gmra.mrb[14].mxu0 %vm225_vm1, %v11640_v48 }
 0x14e   : > { %7670 = vmatprep.mubr.msk.f32.mxu0 %vm225_vm1, %v11641_v18  ;;  %v11648_v18 = vld [vmem:[#allocation24_spill] sm:$0xff] }
 0x151   : > { %7671 = vmatmul.mubr.msk.f32.gmra.mrb[16].mxu0 %vm225_vm1, %v11642_v0  ;;  %v11651_v0 = vld [vmem:[#allocation28_spill] sm:$0xff] }
 0x152   : > { %7673 = vmatprep.mubr.msk.f32.mxu0 %vm225_vm1, %v11643_v44  ;;  %v11649_v44 = vld [vmem:[#allocation26_spill] sm:$0xff] }
 0x155   : > { %7674 = vmatmul.mubr.msk.f32.gmra.mrb[18].mxu0 %vm225_vm1, %v11644_v23  ;;  %v1796_v23 = vrot.slane %v9773_v34, 1 }
 0x156   : > { %7676 = vmatprep.mubr.msk.f32.mxu0 %vm225_vm1, %v11645_v58  ;;  %v1795_v58 = vrot.slane %v9767_v33, 1 }
 0x159   : > { %7677 = vmatmul.mubr.msk.f32.gmra.mrb[20].mxu0 %vm225_vm1, %v11646_v47  ;;  %v396_v47 = vld [vmem:[#allocation2 + $0x190] sm:$0x3] }
 0x15a   : > { %7679 = vmatprep.mubr.msk.f32.mxu0 %vm225_vm1, %v11647_v50  ;;  %v11650_v50 = vld [vmem:[#allocation27_spill] sm:$0xff] }
 0x15d   : > { %7680 = vmatmul.mubr.msk.f32.gmra.mrb[22].mxu0 %vm225_vm1, %v9370_v4  ;;  %v1798_v4 = vrot.slane %v396_v47, 1 }
 0x15e   : > { %7682 = vmatprep.mubr.msk.f32.mxu0 %vm225_vm1, %v11648_v18  ;;  %v9843_v18 = vsel %vm451_vm3, %v1795_v58, %v1796_v23  ;;  %v6480_v58 = vld [vmem:[%s11437_s1 + $0x1c] sm:$0xf] }
 0x161   : > { %7683 = vmatmul.mubr.msk.f32.gmra.mrb[24].mxu0 %vm225_vm1, %v9389_v5 }
 0x162   : > { %7685 = vmatprep.mubr.msk.f32.mxu0 %vm225_vm1, %v9393_v43  ;;  %v9850_v43 = vsel %vm451_vm3, %v1796_v23, %v1798_v4  ;;  %v11652_v4 = vld [vmem:[#allocation29_spill] sm:$0xff] }
 0x163   : > { %v11656_v23 = vld [vmem:[#allocation33_spill] sm:$0xff] }
 0x165   : > { %7686 = vmatmul.mubr.msk.f32.gmra.mrb[26].mxu0 %vm225_vm1, %v11649_v44 }
 0x166   : > { %7688 = vmatprep.mubr.msk.f32.mxu0 %vm225_vm1, %v11650_v50 }
 0x169   : > { %7689 = vmatmul.mubr.msk.f32.gmra.mrb[28].mxu0 %vm225_vm1, %v11651_v0 }
 0x16a   : > { %7691 = vmatprep.mubr.msk.f32.mxu0 %vm225_vm1, %v9843_v18 }
 0x16d   : > { %7692 = vmatmul.mubr.msk.f32.gmra.mrb[30].mxu0 %vm225_vm1, %v9850_v43 }
 0x16e   : > { %7696 = vmatprep.mubr.msk.f32.mxu0 %vm225_vm1, %v9503_v11  ;;  %v11653_v11 = vld [vmem:[#allocation30_spill] sm:$0xff] }
 0x171   : > { %7697 = vmatmul.mubr.msk.f32.vlgmr.msra.gmra.mrb[0].mxu0 %vm225_vm1, %v9517_v35  ;;  %v11654_v35 = vld [vmem:[#allocation31_spill] sm:$0xff] }
 0x172   : > { %7745 = vmatpush3.msk.msra.mxu0 %vm596_vm0, %v6446_v42  ;;  %7699 = vmatprep.mubr.msk.f32.mxu0 %vm225_vm1, %v9521_v21  ;;  %v11655_v42 = vld [vmem:[#allocation32_spill] sm:$0xff] }
 0x173   : > { %7794 = vmatprep.subr.msk.mxu0 %vm596_vm0, %v6480_v58 }
 0x175   : > { %7700 = vmatmul.mubr.msk.f32.gmra.mrb[2].mxu0 %vm225_vm1, %v9532_v20 }
 0x176   : > { %7702 = vmatprep.mubr.msk.f32.mxu0 %vm225_vm1, %v11652_v4 }
 0x179   : > { %7703 = vmatmul.mubr.msk.f32.gmra.mrb[4].mxu0 %vm225_vm1, %v9545_v7 }
 0x17a   : > { %7705 = vmatprep.mubr.msk.f32.mxu0 %vm225_vm1, %v11653_v11  ;;  %v11657_v11 = vld [vmem:[#allocation34_spill] sm:$0xff] }
 0x17d   : > { %7706 = vmatmul.mubr.msk.f32.gmra.mrb[6].mxu0 %vm225_vm1, %v9558_v22 }
 0x17e   : > { %7708 = vmatprep.mubr.msk.f32.mxu0 %vm225_vm1, %v11654_v35  ;;  %v11658_v35 = vld [vmem:[#allocation35_spill] sm:$0xff] }
 0x181   : > { %7709 = vmatmul.mubr.msk.f32.gmra.mrb[8].mxu0 %vm225_vm1, %v9571_v51 }
 0x182   : > { %7711 = vmatprep.mubr.msk.f32.mxu0 %vm225_vm1, %v11655_v42  ;;  %v11659_v42 = vld [vmem:[#allocation36_spill] sm:$0xff] }
 0x185   : > { %7712 = vmatmul.mubr.msk.f32.gmra.mrb[10].mxu0 %vm225_vm1, %v9584_v61 }
 0x186   : > { %7714 = vmatprep.mubr.msk.f32.mxu0 %vm225_vm1, %v11656_v23  ;;  %v11660_v23 = vld [vmem:[#allocation38_spill] sm:$0xff] }
 0x189   : > { %7715 = vmatmul.mubr.msk.f32.gmra.mrb[12].mxu0 %vm225_vm1, %v9597_v8 }
 0x18a   : > { %7717 = vmatprep.mubr.msk.f32.mxu0 %vm225_vm1, %v11657_v11  ;;  %v11661_v11 = vld [vmem:[#allocation39_spill] sm:$0xff] }
 0x18d   : > { %7718 = vmatmul.mubr.msk.f32.gmra.mrb[14].mxu0 %vm225_vm1, %v9610_v26 }
 0x18e   : > { %7720 = vmatprep.mubr.msk.f32.mxu0 %vm225_vm1, %v11658_v35  ;;  %v11662_v35 = vld [vmem:[#allocation41_spill] sm:$0xff] }
 0x191   : > { %7721 = vmatmul.mubr.msk.f32.gmra.mrb[16].mxu0 %vm225_vm1, %v9623_v37 }
 0x192   : > { %7723 = vmatprep.mubr.msk.f32.mxu0 %vm225_vm1, %v11659_v42 }
 0x195   : > { %7724 = vmatmul.mubr.msk.f32.gmra.mrb[18].mxu0 %vm225_vm1, %v9636_v57  ;;  %v2067_v57 = vrot.slane %v9773_v34, 2 }
 0x196   : > { %7726 = vmatprep.mubr.msk.f32.mxu0 %vm225_vm1, %v11660_v23  ;;  %v2066_v23 = vrot.slane %v9767_v33, 2 }
 0x199   : > { %7727 = vmatmul.mubr.msk.f32.gmra.mrb[20].mxu0 %vm225_vm1, %v9649_v14 }
 0x19a   : > { %7729 = vmatprep.mubr.msk.f32.mxu0 %vm225_vm1, %v11661_v11  ;;  %v9920_v11 = vsel %vm1119_vm4, %v2066_v23, %v2067_v57 }
 0x19d   : > { %7730 = vmatmul.mubr.msk.f32.gmra.mrb[22].mxu0 %vm225_vm1, %v9662_v25  ;;  %v2069_v25 = vrot.slane %v396_v47, 2  ;;  %v6514_v47 = vld [vmem:[%s11437_s1 + $0x20] sm:$0xf] }
 0x19e   : > { %7732 = vmatprep.mubr.msk.f32.mxu0 %vm225_vm1, %v11662_v35 }
 0x1a1   : > { %7733 = vmatmul.mubr.msk.f32.gmra.mrb[24].mxu0 %vm225_vm1, %v9675_v12 }
 0x1a2   : > { %7735 = vmatprep.mubr.msk.f32.mxu0 %vm225_vm1, %v9679_v31  ;;  %v9927_v31 = vsel %vm1119_vm4, %v2067_v57, %v2069_v25 }
 0x1a5   : > { %7736 = vmatmul.mubr.msk.f32.gmra.mrb[26].mxu0 %vm225_vm1, %v9688_v2 }
 0x1a6   : > { %7738 = vmatprep.mubr.msk.f32.mxu0 %vm225_vm1, %v9692_v17 }
 0x1a9   : > { %7739 = vmatmul.mubr.msk.f32.gmra.mrb[28].mxu0 %vm225_vm1, %v9699_v6 }
 0x1aa   : > { %7741 = vmatprep.mubr.msk.f32.mxu0 %vm225_vm1, %v9920_v11 }
 0x1ad   : > { %7742 = vmatmul.mubr.msk.f32.gmra.mrb[30].mxu0 %vm225_vm1, %v9927_v31 }
 0x1ae   : > { %7746 = vmatprep.mubr.msk.f32.mxu0 %vm225_vm1, %v9125_v39  ;;  %v10000_v39 = vld [vmem:[#allocation2 + $0x1a0] sm:$0xff] }
 0x1b1   : > { %7747 = vmatmul.mubr.msk.f32.vlgmr.msra.gmra.mrb[0].mxu0 %vm225_vm1, %v9127_v40  ;;  %v11663_v40 = vld [vmem:[#allocation5_spill] sm:$0xff] }
 0x1b2   : > { %7795 = vmatpush3.msk.msra.mxu0 %vm596_vm0, %v6480_v58  ;;  %7749 = vmatprep.mubr.msk.f32.mxu0 %vm225_vm1, %v9134_v45  ;;  %v11664_v45 = vld [vmem:[#allocation6_spill] sm:$0xff] }
 0x1b3   : > { %7844 = vmatprep.subr.msk.mxu0 %vm596_vm0, %v6514_v47 }
 0x1b5   : > { %7750 = vmatmul.mubr.msk.f32.gmra.mrb[2].mxu0 %vm225_vm1, %v9136_v46  ;;  %v11665_v46 = vld [vmem:[#allocation7_spill] sm:$0xff] }
 0x1b6   : > { %7752 = vmatprep.mubr.msk.f32.mxu0 %vm225_vm1, %v9155_v54  ;;  %v11666_v54 = vld [vmem:[#allocation8_spill] sm:$0xff] }
 0x1b9   : > { %7753 = vmatmul.mubr.msk.f32.gmra.mrb[4].mxu0 %vm225_vm1, %v9157_v55  ;;  %v11668_v55 = vld [vmem:[#allocation10_spill] sm:$0xff] }
 0x1ba   : > { %7755 = vmatprep.mubr.msk.f32.mxu0 %vm225_vm1, %v9174_v62  ;;  %v11670_v62 = vld [vmem:[#allocation12_spill] sm:$0xff] }
 0x1bd   : > { %7756 = vmatmul.mubr.msk.f32.gmra.mrb[6].mxu0 %vm225_vm1, %v9176_v63  ;;  %v11671_v63 = vld [vmem:[#allocation13_spill] sm:$0xff] }
 0x1be   : > { %7758 = vmatprep.mubr.msk.f32.mxu0 %vm225_vm1, %v9193_v9  ;;  %v11673_v9 = vld [vmem:[#allocation16_spill] sm:$0xff] }
 0x1c1   : > { %7759 = vmatmul.mubr.msk.f32.gmra.mrb[8].mxu0 %vm225_vm1, %v9195_v10  ;;  %v11674_v10 = vld [vmem:[#allocation17_spill] sm:$0xff] }
 0x1c2   : > { %7761 = vmatprep.mubr.msk.f32.mxu0 %vm225_vm1, %v9228_v27  ;;  %v11675_v27 = vld [vmem:[#allocation18_spill] sm:$0xff] }
 0x1c5   : > { %7762 = vmatmul.mubr.msk.f32.gmra.mrb[10].mxu0 %vm225_vm1, %v9230_v28  ;;  %v11676_v28 = vld [vmem:[#allocation19_spill] sm:$0xff] }
 0x1c6   : > { %7764 = vmatprep.mubr.msk.f32.mxu0 %vm225_vm1, %v9247_v38  ;;  %v11678_v38 = vld [vmem:[#allocation21_spill] sm:$0xff] }
 0x1c9   : > { %7765 = vmatmul.mubr.msk.f32.gmra.mrb[12].mxu0 %vm225_vm1, %v9249_v41  ;;  %v11679_v41 = vld [vmem:[#allocation22_spill] sm:$0xff] }
 0x1ca   : > { %7767 = vmatprep.mubr.msk.f32.mxu0 %vm225_vm1, %v9266_v59  ;;  %v11681_v59 = vld [vmem:[#allocation24_spill] sm:$0xff] }
 0x1cd   : > { %7768 = vmatmul.mubr.msk.f32.gmra.mrb[14].mxu0 %vm225_vm1, %v9268_v60  ;;  %v11682_v60 = vld [vmem:[#allocation25_spill] sm:$0xff] }
 0x1ce   : > { %7770 = vmatprep.mubr.msk.f32.mxu0 %vm225_vm1, %v9285_v15 }
 0x1d1   : > { %7771 = vmatmul.mubr.msk.f32.gmra.mrb[16].mxu0 %vm225_vm1, %v9287_v16  ;;  %v2607_v16 = vrot.slane %v10000_v39, 1 }
 0x1d2   : > { %7773 = vmatprep.mubr.msk.f32.mxu0 %vm225_vm1, %v9304_v30 }
 0x1d5   : > { %7774 = vmatmul.mubr.msk.f32.gmra.mrb[18].mxu0 %vm225_vm1, %v9306_v32 }
 0x1d6   : > { %7776 = vmatprep.mubr.msk.f32.mxu0 %vm225_vm1, %v9323_v1  ;;  %v9994_v1 = vld [vmem:[#allocation2 + $0x198] sm:$0xff] }
 0x1d7   : > { %v2606_v15 = vrot.slane %v9994_v1, 1 }
 0x1d9   : > { %7777 = vmatmul.mubr.msk.f32.gmra.mrb[20].mxu0 %vm225_vm1, %v9325_v19  ;;  %v399_v19 = vld [vmem:[#allocation2 + $0x1a8] sm:$0x3]  ;;  %v2608_v32 = vsel %vm451_vm3, %v2606_v15, %v2607_v16 }
 0x1da   : > { %7779 = vmatprep.mubr.msk.f32.mxu0 %vm225_vm1, %v9342_v49  ;;  %v11680_v49 = vld [vmem:[#allocation23_spill] sm:$0xff]  ;;  %v2609_v30 = vrot.slane %v399_v19, 1  ;;  %v2880_v57 = vrot.slane %v399_v19, 2 }
 0x1dd   : > { %7780 = vmatmul.mubr.msk.f32.gmra.mrb[22].mxu0 %vm225_vm1, %v9344_v36  ;;  %v2610_v36 = vsel %vm451_vm3, %v2607_v16, %v2609_v30 }
 0x1de   : > { %7782 = vmatprep.mubr.msk.f32.mxu0 %vm225_vm1, %v9361_v29  ;;  %v11677_v29 = vld [vmem:[#allocation20_spill] sm:$0xff] }
 0x1e1   : > { %7783 = vmatmul.mubr.msk.f32.gmra.mrb[24].mxu0 %vm225_vm1, %v9363_v13  ;;  %v11683_v13 = vld [vmem:[#allocation30_spill] sm:$0xff] }
 0x1e2   : > { %7785 = vmatprep.mubr.msk.f32.mxu0 %vm225_vm1, %v9380_v3  ;;  %v11672_v3 = vld [vmem:[#allocation14_spill] sm:$0xff] }
 0x1e5   : > { %7786 = vmatmul.mubr.msk.f32.gmra.mrb[26].mxu0 %vm225_vm1, %v9382_v24  ;;  %v11684_v24 = vld [vmem:[#allocation31_spill] sm:$0xff] }
 0x1e6   : > { %7788 = vmatprep.mubr.msk.f32.mxu0 %vm225_vm1, %v9767_v33 }
 0x1e9   : > { %7789 = vmatmul.mubr.msk.f32.gmra.mrb[28].mxu0 %vm225_vm1, %v9773_v34  ;;  %v6549_v34 = vld [vmem:[%s11439_s3 + $0x8] sm:$0xff] }
 0x1ea   : > { %7791 = vmatprep.mubr.msk.f32.mxu0 %vm225_vm1, %v9994_v1  ;;  %7894 = vmatprep.subr.mxu1 %v6549_v34 }
 0x1eb   : > { %7895 = vmatpush3.msra.mxu1 %v6549_v34 }
 0x1ed   : > { %7792 = vmatmul.mubr.msk.f32.gmra.mrb[30].mxu0 %vm225_vm1, %v10000_v39 }
 0x1ee   : > { %7796 = vmatprep.mubr.msk.f32.mxu0 %vm225_vm1, %v9152_v52  ;;  %v11667_v52 = vld [vmem:[#allocation9_spill] sm:$0xff] }
 0x1f1   : > { %7797 = vmatmul.mubr.msk.f32.vlgmr.msra.gmra.mrb[0].mxu0 %vm225_vm1, %v9164_v56  ;;  %v11669_v56 = vld [vmem:[#allocation11_spill] sm:$0xff] }
 0x1f2   : > { %7845 = vmatpush3.msk.msra.mxu0 %vm596_vm0, %v6514_v47  ;;  %7799 = vmatprep.mubr.msk.f32.mxu0 %vm225_vm1, %v11629_v53 }
 0x1f5   : > { %7800 = vmatmul.mubr.msk.f32.gmra.mrb[2].mxu0 %vm225_vm1, %v11663_v40 }
 0x1f6   : > { %7802 = vmatprep.mubr.msk.f32.mxu0 %vm225_vm1, %v11664_v45 }
 0x1f9   : > { %7803 = vmatmul.mubr.msk.f32.gmra.mrb[4].mxu0 %vm225_vm1, %v11665_v46 }
 0x1fa   : > { %7805 = vmatprep.mubr.msk.f32.mxu0 %vm225_vm1, %v11666_v54 }
 0x1fd   : > { %7806 = vmatmul.mubr.msk.f32.gmra.mrb[6].mxu0 %vm225_vm1, %v11667_v52 }
 0x1fe   : > { %7808 = vmatprep.mubr.msk.f32.mxu0 %vm225_vm1, %v11668_v55 }
 0x201   : > { %7809 = vmatmul.mubr.msk.f32.gmra.mrb[8].mxu0 %vm225_vm1, %v11669_v56 }
 0x202   : > { %7811 = vmatprep.mubr.msk.f32.mxu0 %vm225_vm1, %v11670_v62 }
 0x205   : > { %7812 = vmatmul.mubr.msk.f32.gmra.mrb[10].mxu0 %vm225_vm1, %v11671_v63 }
 0x206   : > { %7814 = vmatprep.mubr.msk.f32.mxu0 %vm225_vm1, %v11672_v3 }
 0x209   : > { %7815 = vmatmul.mubr.msk.f32.gmra.mrb[12].mxu0 %vm225_vm1, %v11640_v48 }
 0x20a   : > { %7817 = vmatprep.mubr.msk.f32.mxu0 %vm225_vm1, %v11673_v9 }
 0x20d   : > { %7818 = vmatmul.mubr.msk.f32.gmra.mrb[14].mxu0 %vm225_vm1, %v11674_v10 }
 0x20e   : > { %7820 = vmatprep.mubr.msk.f32.mxu0 %vm225_vm1, %v11675_v27 }
 0x211   : > { %7821 = vmatmul.mubr.msk.f32.gmra.mrb[16].mxu0 %vm225_vm1, %v11676_v28 }
 0x212   : > { %7823 = vmatprep.mubr.msk.f32.mxu0 %vm225_vm1, %v11677_v29 }
 0x215   : > { %7824 = vmatmul.mubr.msk.f32.gmra.mrb[18].mxu0 %vm225_vm1, %v11678_v38 }
 0x216   : > { %7826 = vmatprep.mubr.msk.f32.mxu0 %vm225_vm1, %v11679_v41 }
 0x219   : > { %7827 = vmatmul.mubr.msk.f32.gmra.mrb[20].mxu0 %vm225_vm1, %v11680_v49 }
 0x21a   : > { %7829 = vmatprep.mubr.msk.f32.mxu0 %vm225_vm1, %v11681_v59 }
 0x21d   : > { %7830 = vmatmul.mubr.msk.f32.gmra.mrb[22].mxu0 %vm225_vm1, %v9389_v5  ;;  %v11685_v5 = vld [vmem:[#allocation32_spill] sm:$0xff] }
 0x21e   : > { %7832 = vmatprep.mubr.msk.f32.mxu0 %vm225_vm1, %v11682_v60 }
 0x221   : > { %7833 = vmatmul.mubr.msk.f32.gmra.mrb[24].mxu0 %vm225_vm1, %v11649_v44  ;;  %v10273_v44 = vld [vmem:[%s11438_s2] ss:$0 sm:$0xff] }
 0x222   : > { %7835 = vmatprep.mubr.msk.f32.mxu0 %vm225_vm1, %v11650_v50 }
 0x225   : > { %7836 = vmatmul.mubr.msk.f32.gmra.mrb[26].mxu0 %vm225_vm1, %v11651_v0  ;;  %v10267_v0 = vld [vmem:[%s11439_s3 + $0x10] sm:$0xff] }
 0x226   : > { %7838 = vmatprep.mubr.msk.f32.mxu0 %vm225_vm1, %v9843_v18  ;;  %v3360_v18 = vld [vmem:[%s11439_s3] sm:$0xff] }
 0x227   : > { %7944 = vmatprep.subr.mxu1 %v3360_v18 }
 0x229   : > { %7839 = vmatmul.mubr.msk.f32.gmra.mrb[28].mxu0 %vm225_vm1, %v9850_v43  ;;  %v11686_v43 = vld [vmem:[#allocation33_spill] sm:$0xff] }
 0x22a   : > { %7841 = vmatprep.mubr.msk.f32.mxu0 %vm225_vm1, %v2608_v32 }
 0x22d   : > { %7842 = vmatmul.mubr.msk.f32.gmra.mrb[30].mxu0 %vm225_vm1, %v2610_v36 }
 0x22e   : > { %7846 = vmatprep.mubr.msk.f32.mxu0 %vm225_vm1, %v9521_v21  ;;  %v11687_v21 = vld [vmem:[#allocation34_spill] sm:$0xff] }
 0x231   : > { %7847 = vmatmul.mubr.msk.f32.vlgmr.msra.gmra.mrb[0].mxu0 %vm225_vm1, %v9532_v20  ;;  %v11688_v20 = vld [vmem:[#allocation35_spill] sm:$0xff] }
 0x232   : > { %7849 = vmatprep.mubr.msk.f32.mxu0 %vm225_vm1, %v11652_v4 }
 0x235   : > { %7850 = vmatmul.mubr.msk.f32.gmra.mrb[2].mxu0 %vm225_vm1, %v9545_v7  ;;  %v11690_v7 = vld [vmem:[#allocation38_spill] sm:$0xff] }
 0x236   : > { %7852 = vmatprep.mubr.msk.f32.mxu0 %vm225_vm1, %v11683_v13 }
 0x239   : > { %7853 = vmatmul.mubr.msk.f32.gmra.mrb[4].mxu0 %vm225_vm1, %v9558_v22  ;;  %v11689_v22 = vld [vmem:[#allocation37_spill] sm:$0xff] }
 0x23a   : > { %7855 = vmatprep.mubr.msk.f32.mxu0 %vm225_vm1, %v11684_v24 }
 0x23d   : > { %7856 = vmatmul.mubr.msk.f32.gmra.mrb[6].mxu0 %vm225_vm1, %v9571_v51  ;;  %v11691_v51 = vld [vmem:[#allocation39_spill] sm:$0xff] }
 0x23e   : > { %7858 = vmatprep.mubr.msk.f32.mxu0 %vm225_vm1, %v11685_v5 }
 0x241   : > { %7859 = vmatmul.mubr.msk.f32.gmra.mrb[8].mxu0 %vm225_vm1, %v9584_v61  ;;  %v11692_v61 = vld [vmem:[#allocation40_spill] sm:$0xff] }
 0x242   : > { %7861 = vmatprep.mubr.msk.f32.mxu0 %vm225_vm1, %v11686_v43 }
 0x245   : > { %7862 = vmatmul.mubr.msk.f32.gmra.mrb[10].mxu0 %vm225_vm1, %v9597_v8  ;;  %v11693_v8 = vld [vmem:[#allocation42_spill] sm:$0xff] }
 0x246   : > { %7864 = vmatprep.mubr.msk.f32.mxu0 %vm225_vm1, %v11687_v21 }
 0x249   : > { %7865 = vmatmul.mubr.msk.f32.gmra.mrb[12].mxu0 %vm225_vm1, %v9610_v26  ;;  %v2877_v26 = vrot.slane %v9994_v1, 2 }
 0x24a   : > { %7867 = vmatprep.mubr.msk.f32.mxu0 %vm225_vm1, %v11688_v20 }
 0x24d   : > { %7868 = vmatmul.mubr.msk.f32.gmra.mrb[14].mxu0 %vm225_vm1, %v9623_v37  ;;  %v2878_v37 = vrot.slane %v10000_v39, 2 }
 0x24e   : > { %7870 = vmatprep.mubr.msk.f32.mxu0 %vm225_vm1, %v11659_v42 }
 0x24f   : > { %v2881_v25 = vsel %vm1119_vm4, %v2878_v37, %v2880_v57 }
 0x251   : > { %7871 = vmatmul.mubr.msk.f32.gmra.mrb[16].mxu0 %vm225_vm1, %v11689_v22 }
 0x252   : > { %7873 = vmatprep.mubr.msk.f32.mxu0 %vm225_vm1, %v11690_v7 }
 0x255   : > { %7874 = vmatmul.mubr.msk.f32.gmra.mrb[18].mxu0 %vm225_vm1, %v9649_v14  ;;  %v2879_v14 = vsel %vm1119_vm4, %v2877_v26, %v2878_v37 }
 0x256   : > { %7876 = vmatprep.mubr.msk.f32.mxu0 %vm225_vm1, %v11691_v51 }
 0x259   : > { %7877 = vmatmul.mubr.msk.f32.gmra.mrb[20].mxu0 %vm225_vm1, %v11692_v61 }
 0x25a   : > { %7879 = vmatprep.mubr.msk.f32.mxu0 %vm225_vm1, %v11662_v35 }
 0x25d   : > { %7880 = vmatmul.mubr.msk.f32.gmra.mrb[22].mxu0 %vm225_vm1, %v9675_v12  ;;  %v11694_v12 = vmov 0.0  }
 0x25e   : > { %7882 = vmatprep.mubr.msk.f32.mxu0 %vm225_vm1, %v11693_v8  ;;  %3223 = vst.msk [vmem:[#allocation3 + $0x20] sm:$0xff] %vm3217_vm5, %v11694_v12  ;;  %3218 = vst.msk [vmem:[#allocation3] sm:$0xff] %vm3217_vm5, %v11694_v12 }
 0x25f   : > { %3219 = vst.msk [vmem:[#allocation3 + $0x8] sm:$0xff] %vm3217_vm5, %v11694_v12  ;;  %3222 = vst.msk [vmem:[#allocation3 + $0x18] sm:$0xff] %vm3217_vm5, %v11694_v12 }
 0x260   : > { %3225 = vst.msk [vmem:[#allocation3 + $0x30] sm:$0xff] %vm3217_vm5, %v11694_v12  ;;  %3226 = vst.msk [vmem:[#allocation3 + $0x38] sm:$0xff] %vm3217_vm5, %v11694_v12 }
 0x261   : > { %7883 = vmatmul.mubr.msk.f32.gmra.mrb[24].mxu0 %vm225_vm1, %v9688_v2  ;;  %3228 = vst.msk [vmem:[#allocation3 + $0x48] sm:$0xff] %vm3217_vm5, %v11694_v12  ;;  %3229 = vst.msk [vmem:[#allocation3 + $0x50] sm:$0xff] %vm3217_vm5, %v11694_v12 }
 0x262   : > { %7885 = vmatprep.mubr.msk.f32.mxu0 %vm225_vm1, %v9692_v17  ;;  %3231 = vst.msk [vmem:[#allocation3 + $0x60] sm:$0xff] %vm3217_vm5, %v11694_v12  ;;  %3232 = vst.msk [vmem:[#allocation3 + $0x68] sm:$0xff] %vm3217_vm5, %v11694_v12 }
 0x263   : > { %3234 = vst.msk [vmem:[#allocation3 + $0x78] sm:$0xff] %vm3217_vm5, %v11694_v12  ;;  %3235 = vst.msk [vmem:[#allocation3 + $0x80] sm:$0xff] %vm3217_vm5, %v11694_v12 }
 0x264   : > { %3237 = vst.msk [vmem:[#allocation3 + $0x90] sm:$0xff] %vm3217_vm5, %v11694_v12  ;;  %3238 = vst.msk [vmem:[#allocation3 + $0x98] sm:$0xff] %vm3217_vm5, %v11694_v12 }
 0x265   : > { %7886 = vmatmul.mubr.msk.f32.gmra.mrb[26].mxu0 %vm225_vm1, %v9699_v6  ;;  %3240 = vst.msk [vmem:[#allocation3 + $0xa8] sm:$0xff] %vm3217_vm5, %v11694_v12  ;;  %3241 = vst.msk [vmem:[#allocation3 + $0xb0] sm:$0xff] %vm3217_vm5, %v11694_v12  ;;  %v10245_v2 = vld [vmem:[#allocation3] sm:$0xff] }
 0x266   : > { %7888 = vmatprep.mubr.msk.f32.mxu0 %vm225_vm1, %v9920_v11  ;;  %3243 = vst.msk [vmem:[#allocation3 + $0xc0] sm:$0xff] %vm3217_vm5, %v11694_v12  ;;  %3244 = vst.msk [vmem:[#allocation3 + $0xc8] sm:$0xff] %vm3217_vm5, %v11694_v12  ;;  %v3411_v17 = vrot.slane %v10245_v2, 1 }
 0x267   : > { %3246 = vst.msk [vmem:[#allocation3 + $0xd8] sm:$0xff] %vm3217_vm5, %v11694_v12  ;;  %3247 = vst.msk [vmem:[#allocation3 + $0xe0] sm:$0xff] %vm3217_vm5, %v11694_v12 }
 0x268   : > { %3249 = vst.msk [vmem:[#allocation3 + $0xf0] sm:$0xff] %vm3217_vm5, %v11694_v12  ;;  %3250 = vst.msk [vmem:[#allocation3 + $0xf8] sm:$0xff] %vm3217_vm5, %v11694_v12 }
 0x269   : > { %7889 = vmatmul.mubr.msk.f32.gmra.mrb[28].mxu0 %vm225_vm1, %v9927_v31  ;;  %3252 = vst.msk [vmem:[#allocation3 + $0x108] sm:$0xff] %vm3217_vm5, %v11694_v12  ;;  %3253 = vst.msk [vmem:[#allocation3 + $0x110] sm:$0xff] %vm3217_vm5, %v11694_v12  ;;  %v10247_v31 = vld [vmem:[#allocation3 + $0x8] sm:$0xff] }
 0x26a   : > { %7891 = vmatprep.mubr.msk.f32.mxu0 %vm225_vm1, %v2879_v14  ;;  %3255 = vst.msk [vmem:[#allocation3 + $0x120] sm:$0xff] %vm3217_vm5, %v11694_v12  ;;  %3256 = vst.msk [vmem:[#allocation3 + $0x128] sm:$0xff] %vm3217_vm5, %v11694_v12  ;;  %v3412_v6 = vrot.slane %v10247_v31, 1 }
 0x26b   : > { %3258 = vst.msk [vmem:[#allocation3 + $0x138] sm:$0xff] %vm3217_vm5, %v11694_v12  ;;  %3259 = vst.msk [vmem:[#allocation3 + $0x140] sm:$0xff] %vm3217_vm5, %v11694_v12 }
 0x26c   : > { %3261 = vst.msk [vmem:[#allocation3 + $0x150] sm:$0xff] %vm3217_vm5, %v11694_v12  ;;  %3262 = vst.msk [vmem:[#allocation3 + $0x158] sm:$0xff] %vm3217_vm5, %v11694_v12  ;;  %v3413_v50 = vsel %vm451_vm3, %v3411_v17, %v3412_v6 }
 0x26d   : > { %7892 = vmatmul.mubr.msk.f32.gmra.mrb[30].mxu0 %vm225_vm1, %v2881_v25  ;;  %3264 = vst.msk [vmem:[#allocation3 + $0x168] sm:$0xff] %vm3217_vm5, %v11694_v12  ;;  %3265 = vst.msk [vmem:[#allocation3 + $0x170] sm:$0xff] %vm3217_vm5, %v11694_v12  ;;  %7896 = vmatprep.mubr.msk.f32.mxu1 %vm3217_vm5, %v3413_v50 }
 0x26e   : > { %3267 = vst.msk [vmem:[#allocation3 + $0x180] sm:$0xff] %vm3217_vm5, %v11694_v12  ;;  %3268 = vst.msk [vmem:[#allocation3 + $0x188] sm:$0xff] %vm3217_vm5, %v11694_v12 }
 0x26f   : > { %3270 = vst.msk [vmem:[#allocation3 + $0x198] sm:$0xff] %vm3217_vm5, %v11694_v12  ;;  %3271 = vst.msk [vmem:[#allocation3 + $0x1a0] sm:$0xff] %vm3217_vm5, %v11694_v12 }
 0x270   : > { %3224 = vst.msk [vmem:[#allocation3 + $0x28] sm:$0x3] %vm3220_vm6, %v11694_v12  ;;  %3221 = vst.msk [vmem:[#allocation3 + $0x10] sm:$0x3] %vm3220_vm6, %v11694_v12 }
 0x271   : > { %3227 = vst.msk [vmem:[#allocation3 + $0x40] sm:$0x3] %vm3220_vm6, %v11694_v12  ;;  %3230 = vst.msk [vmem:[#allocation3 + $0x58] sm:$0x3] %vm3220_vm6, %v11694_v12 }
 0x272   : > { %3233 = vst.msk [vmem:[#allocation3 + $0x70] sm:$0x3] %vm3220_vm6, %v11694_v12  ;;  %3236 = vst.msk [vmem:[#allocation3 + $0x88] sm:$0x3] %vm3220_vm6, %v11694_v12 }
 0x273   : > { %3239 = vst.msk [vmem:[#allocation3 + $0xa0] sm:$0x3] %vm3220_vm6, %v11694_v12  ;;  %3242 = vst.msk [vmem:[#allocation3 + $0xb8] sm:$0x3] %vm3220_vm6, %v11694_v12 }
 0x274   : > { %3245 = vst.msk [vmem:[#allocation3 + $0xd0] sm:$0x3] %vm3220_vm6, %v11694_v12  ;;  %3248 = vst.msk [vmem:[#allocation3 + $0xe8] sm:$0x3] %vm3220_vm6, %v11694_v12 }
 0x275   : > { %3251 = vst.msk [vmem:[#allocation3 + $0x100] sm:$0x3] %vm3220_vm6, %v11694_v12  ;;  %3254 = vst.msk [vmem:[#allocation3 + $0x118] sm:$0x3] %vm3220_vm6, %v11694_v12 }
 0x276   : > { %3257 = vst.msk [vmem:[#allocation3 + $0x130] sm:$0x3] %vm3220_vm6, %v11694_v12  ;;  %3260 = vst.msk [vmem:[#allocation3 + $0x148] sm:$0x3] %vm3220_vm6, %v11694_v12 }
 0x277   : > { %3263 = vst.msk [vmem:[#allocation3 + $0x160] sm:$0x3] %vm3220_vm6, %v11694_v12  ;;  %3266 = vst.msk [vmem:[#allocation3 + $0x178] sm:$0x3] %vm3220_vm6, %v11694_v12  ;;  %v10251_v33 = vld [vmem:[#allocation3 + $0x10] sm:$0x3] }
 0x278   : > { %3269 = vst.msk [vmem:[#allocation3 + $0x190] sm:$0x3] %vm3220_vm6, %v11694_v12  ;;  %3272 = vst.msk [vmem:[#allocation3 + $0x1a8] sm:$0x3] %vm3220_vm6, %v11694_v12  ;;  %v3414_v53 = vrot.slane %v10251_v33, 1 }
 0x27a   : > { %v3415_v48 = vsel %vm451_vm3, %v3412_v6, %v3414_v53 }
 0x27b   : > { %7897 = vmatmul.mubr.msk.f32.vlgmr.msra.gmra.mrb[0].mxu1 %vm3217_vm5, %v3415_v48 }
 0x27c   : > { %7945 = vmatpush3.msra.mxu1 %v3360_v18 }
 0x27d   : > { %7994 = vmatprep.subr.mxu1 %v10267_v0 }
 0x304   : > { %v7848_v58 = vpop.f32.mrb[0].mxu0 }
 0x305   : > { %v3154_v4 = vadd.f32 %v7848_v58, %v10273_v44  ;;  %v2955_v11 = vpop.f32.mrb[1].mxu0 }
 0x306   : > { %v3153_v35 = vadd.f32 %v10273_v44, %v2955_v11 }
 0x307   : > { %v3186_v42 = vmax.f32 %v3154_v4, 0.0 }
 0x308   : > { %v3185_v23 = vmax.f32 %v3153_v35, 0.0  ;;  %v7851_v47 = vpop.f32.mrb[2].mxu0 }
 0x309   : > { %3275 = vst.msk [vmem:[#allocation3 + $0x21] sm:$0xff] %vm3217_vm5, %v3186_v42  ;;  %v3156_v1 = vadd.f32 %v7851_v47, %v10273_v44  ;;  %v2965_v39 = vpop.f32.mrb[3].mxu0 }
 0x30a   : > { %3274 = vst.msk [vmem:[#allocation3 + $0x19] sm:$0xff] %vm3217_vm5, %v3185_v23  ;;  %v3155_v40 = vadd.f32 %v10273_v44, %v2965_v39 }
 0x30b   : > { %v3188_v45 = vmax.f32 %v3156_v1, 0.0 }
 0x30c   : > { %v3187_v46 = vmax.f32 %v3155_v40, 0.0  ;;  %v7854_v54 = vpop.f32.mrb[4].mxu0 }
 0x30d   : > { %3277 = vst.msk [vmem:[#allocation3 + $0x39] sm:$0xff] %vm3217_vm5, %v3188_v45  ;;  %v3158_v52 = vadd.f32 %v7854_v54, %v10273_v44  ;;  %v2975_v55 = vpop.f32.mrb[5].mxu0 }
 0x30e   : > { %3276 = vst.msk [vmem:[#allocation3 + $0x31] sm:$0xff] %vm3217_vm5, %v3187_v46  ;;  %v3157_v56 = vadd.f32 %v10273_v44, %v2975_v55 }
 0x30f   : > { %v3190_v62 = vmax.f32 %v3158_v52, 0.0 }
 0x310   : > { %v3189_v63 = vmax.f32 %v3157_v56, 0.0  ;;  %v7857_v3 = vpop.f32.mrb[6].mxu0  ;;  %v10285_v9 = vld [vmem:[#allocation3 + $0x28] sm:$0x3] }
 0x311   : > { %3279 = vst.msk [vmem:[#allocation3 + $0x51] sm:$0xff] %vm3217_vm5, %v3190_v62  ;;  %v3160_v10 = vadd.f32 %v7857_v3, %v10273_v44  ;;  %v2985_v27 = vpop.f32.mrb[7].mxu0  ;;  %v10289_v28 = vld [vmem:[#allocation3 + $0x18] sm:$0xff]  ;;  %v10291_v29 = vld [vmem:[#allocation3 + $0x20] sm:$0xff]  ;;  %v3419_v38 = vrot.slane %v10285_v9, 1 }
 0x312   : > { %3278 = vst.msk [vmem:[#allocation3 + $0x49] sm:$0xff] %vm3217_vm5, %v3189_v63  ;;  %v3159_v41 = vadd.f32 %v10273_v44, %v2985_v27  ;;  %v3416_v49 = vrot.slane %v10289_v28, 1  ;;  %v3417_v59 = vrot.slane %v10291_v29, 1 }
 0x313   : > { %v3192_v60 = vmax.f32 %v3160_v10, 0.0 }
 0x314   : > { %v3191_v15 = vmax.f32 %v3159_v41, 0.0  ;;  %v7860_v16 = vpop.f32.mrb[8].mxu0  ;;  %v10299_v19 = vsel %vm451_vm3, %v3416_v49, %v3417_v59  ;;  %v10302_v30 = vsel %vm451_vm3, %v3417_v59, %v3419_v38  ;;  %v10304_v32 = vld [vmem:[#allocation3 + $0x40] sm:$0x3] }
 0x315   : > { %3281 = vst.msk [vmem:[#allocation3 + $0x69] sm:$0xff] %vm3217_vm5, %v3192_v60  ;;  %v3162_v36 = vadd.f32 %v7860_v16, %v10273_v44  ;;  %v2995_v13 = vpop.f32.mrb[9].mxu0  ;;  %7899 = vmatprep.mubr.msk.f32.mxu1 %vm3217_vm5, %v10299_v19  ;;  %v10310_v24 = vld [vmem:[#allocation3 + $0x30] sm:$0xff]  ;;  %v10312_v5 = vld [vmem:[#allocation3 + $0x38] sm:$0xff]  ;;  %v3424_v43 = vrot.slane %v10304_v32, 1 }
 0x316   : > { %3280 = vst.msk [vmem:[#allocation3 + $0x61] sm:$0xff] %vm3217_vm5, %v3191_v15  ;;  %v3161_v21 = vadd.f32 %v10273_v44, %v2995_v13  ;;  %7900 = vmatmul.mubr.msk.f32.gmra.mrb[2].mxu1 %vm3217_vm5, %v10302_v30  ;;  %v3421_v20 = vrot.slane %v10310_v24, 1  ;;  %v3422_v22 = vrot.slane %v10312_v5, 1 }
 0x317   : > { %v3194_v7 = vmax.f32 %v3162_v36, 0.0 }
 0x318   : > { %v3193_v51 = vmax.f32 %v3161_v21, 0.0  ;;  %v7863_v61 = vpop.f32.mrb[10].mxu0  ;;  %v10322_v8 = vsel %vm451_vm3, %v3421_v20, %v3422_v22  ;;  %v10325_v26 = vsel %vm451_vm3, %v3422_v22, %v3424_v43  ;;  %v10327_v37 = vld [vmem:[#allocation3 + $0x58] sm:$0x3] }
 0x319   : > { %3283 = vst.msk [vmem:[#allocation3 + $0x81] sm:$0xff] %vm3217_vm5, %v3194_v7  ;;  %v3164_v57 = vadd.f32 %v7863_v61, %v10273_v44  ;;  %v3005_v14 = vpop.f32.mrb[11].mxu0  ;;  %7902 = vmatprep.mubr.msk.f32.mxu1 %vm3217_vm5, %v10322_v8  ;;  %v10333_v25 = vld [vmem:[#allocation3 + $0x48] sm:$0xff]  ;;  %v10335_v12 = vld [vmem:[#allocation3 + $0x50] sm:$0xff]  ;;  %v3429_v17 = vrot.slane %v10327_v37, 1 }
 0x31a   : > { %3282 = vst.msk [vmem:[#allocation3 + $0x79] sm:$0xff] %vm3217_vm5, %v3193_v51  ;;  %v3163_v6 = vadd.f32 %v10273_v44, %v3005_v14  ;;  %7903 = vmatmul.mubr.msk.f32.gmra.mrb[4].mxu1 %vm3217_vm5, %v10325_v26  ;;  %v3426_v34 = vrot.slane %v10333_v25, 1  ;;  %v3427_v53 = vrot.slane %v10335_v12, 1 }
 0x31b   : > { %v3196_v50 = vmax.f32 %v3164_v57, 0.0 }
 0x31c   : > { %v3195_v48 = vmax.f32 %v3163_v6, 0.0  ;;  %v7866_v18 = vpop.f32.mrb[12].mxu0  ;;  %v10345_v58 = vsel %vm451_vm3, %v3426_v34, %v3427_v53  ;;  %v10348_v4 = vsel %vm451_vm3, %v3427_v53, %v3429_v17  ;;  %v10350_v11 = vld [vmem:[#allocation3 + $0x70] sm:$0x3] }
 0x31d   : > { %3285 = vst.msk [vmem:[#allocation3 + $0x99] sm:$0xff] %vm3217_vm5, %v3196_v50  ;;  %v3166_v35 = vadd.f32 %v7866_v18, %v10273_v44  ;;  %v3015_v42 = vpop.f32.mrb[13].mxu0  ;;  %7905 = vmatprep.mubr.msk.f32.mxu1 %vm3217_vm5, %v10345_v58  ;;  %v10356_v23 = vld [vmem:[#allocation3 + $0x60] sm:$0xff]  ;;  %v10358_v47 = vld [vmem:[#allocation3 + $0x68] sm:$0xff]  ;;  %v3434_v1 = vrot.slane %v10350_v11, 1 }
 0x31e   : > { %3284 = vst.msk [vmem:[#allocation3 + $0x91] sm:$0xff] %vm3217_vm5, %v3195_v48  ;;  %v3165_v39 = vadd.f32 %v10273_v44, %v3015_v42  ;;  %7906 = vmatmul.mubr.msk.f32.gmra.mrb[6].mxu1 %vm3217_vm5, %v10348_v4  ;;  %v3431_v40 = vrot.slane %v10356_v23, 1  ;;  %v3432_v45 = vrot.slane %v10358_v47, 1 }
 0x31f   : > { %v3198_v46 = vmax.f32 %v3166_v35, 0.0 }
 0x320   : > { %v3197_v54 = vmax.f32 %v3165_v39, 0.0  ;;  %v7869_v52 = vpop.f32.mrb[14].mxu0  ;;  %v10368_v55 = vsel %vm451_vm3, %v3431_v40, %v3432_v45  ;;  %v10371_v56 = vsel %vm451_vm3, %v3432_v45, %v3434_v1  ;;  %v10373_v62 = vld [vmem:[#allocation3 + $0x88] sm:$0x3] }
 0x321   : > { %11695 = vst [vmem:[#allocation4_spill] sm:$0xff] %v10368_v55  ;;  %11696 = vst [vmem:[#allocation15_spill] sm:$0xff] %v10371_v56  ;;  %v3168_v63 = vadd.f32 %v7869_v52, %v10273_v44  ;;  %v3025_v3 = vpop.f32.mrb[15].mxu0  ;;  %7908 = vmatprep.mubr.msk.f32.mxu1 %vm3217_vm5, %v10368_v55  ;;  %v10379_v10 = vld [vmem:[#allocation3 + $0x78] sm:$0xff]  ;;  %v10381_v27 = vld [vmem:[#allocation3 + $0x80] sm:$0xff]  ;;  %v3439_v38 = vrot.slane %v10373_v62, 1 }
 0x322   : > { %3287 = vst.msk [vmem:[#allocation3 + $0xb1] sm:$0xff] %vm3217_vm5, %v3198_v46  ;;  %3286 = vst.msk [vmem:[#allocation3 + $0xa9] sm:$0xff] %vm3217_vm5, %v3197_v54  ;;  %v3167_v41 = vadd.f32 %v10273_v44, %v3025_v3  ;;  %7909 = vmatmul.mubr.msk.f32.gmra.mrb[8].mxu1 %vm3217_vm5, %v10371_v56  ;;  %v3436_v49 = vrot.slane %v10379_v10, 1  ;;  %v3437_v59 = vrot.slane %v10381_v27, 1 }
 0x323   : > { %v3200_v60 = vmax.f32 %v3168_v63, 0.0 }
 0x324   : > { %v3199_v15 = vmax.f32 %v3167_v41, 0.0  ;;  %v7872_v16 = vpop.f32.mrb[16].mxu0  ;;  %v10391_v36 = vsel %vm451_vm3, %v3436_v49, %v3437_v59  ;;  %v10394_v13 = vsel %vm451_vm3, %v3437_v59, %v3439_v38  ;;  %v10396_v43 = vld [vmem:[#allocation3 + $0xa0] sm:$0x3] }
 0x325   : > { %11697 = vst [vmem:[#allocation26_spill] sm:$0xff] %v10391_v36  ;;  %11698 = vst [vmem:[#allocation27_spill] sm:$0xff] %v10394_v13  ;;  %v3170_v21 = vadd.f32 %v7872_v16, %v10273_v44  ;;  %v3035_v20 = vpop.f32.mrb[17].mxu0  ;;  %7911 = vmatprep.mubr.msk.f32.mxu1 %vm3217_vm5, %v10391_v36  ;;  %v10402_v22 = vld [vmem:[#allocation3 + $0x90] sm:$0xff]  ;;  %v10404_v7 = vld [vmem:[#allocation3 + $0x98] sm:$0xff]  ;;  %v3444_v51 = vrot.slane %v10396_v43, 1 }
 0x326   : > { %3289 = vst.msk [vmem:[#allocation3 + $0xc9] sm:$0xff] %vm3217_vm5, %v3200_v60  ;;  %3288 = vst.msk [vmem:[#allocation3 + $0xc1] sm:$0xff] %vm3217_vm5, %v3199_v15  ;;  %v3169_v61 = vadd.f32 %v10273_v44, %v3035_v20  ;;  %7912 = vmatmul.mubr.msk.f32.gmra.mrb[10].mxu1 %vm3217_vm5, %v10394_v13  ;;  %v3441_v57 = vrot.slane %v10402_v22, 1  ;;  %v3442_v14 = vrot.slane %v10404_v7, 1 }
 0x327   : > { %v3202_v17 = vmax.f32 %v3170_v21, 0.0 }
 0x328   : > { %v3201_v6 = vmax.f32 %v3169_v61, 0.0  ;;  %v7875_v34 = vpop.f32.mrb[18].mxu0  ;;  %v10414_v53 = vsel %vm451_vm3, %v3441_v57, %v3442_v14  ;;  %v10417_v50 = vsel %vm451_vm3, %v3442_v14, %v3444_v51 }
 0x329   : > { %11699 = vst [vmem:[#allocation28_spill] sm:$0xff] %v10414_v53  ;;  %11700 = vst [vmem:[#allocation29_spill] sm:$0xff] %v10417_v50  ;;  %v10419_v48 = vld [vmem:[#allocation3 + $0xb8] sm:$0x3]  ;;  %v3172_v18 = vadd.f32 %v7875_v34, %v10273_v44  ;;  %v3045_v35 = vpop.f32.mrb[19].mxu0  ;;  %7914 = vmatprep.mubr.msk.f32.mxu1 %vm3217_vm5, %v10414_v53  ;;  %v10425_v42 = vld [vmem:[#allocation3 + $0xa8] sm:$0xff] }
 0x32a   : > { %3291 = vst.msk [vmem:[#allocation3 + $0xe1] sm:$0xff] %vm3217_vm5, %v3202_v17  ;;  %v10427_v1 = vld [vmem:[#allocation3 + $0xb0] sm:$0xff]  ;;  %v3449_v39 = vrot.slane %v10419_v48, 1  ;;  %3290 = vst.msk [vmem:[#allocation3 + $0xd9] sm:$0xff] %vm3217_vm5, %v3201_v6  ;;  %v3171_v40 = vadd.f32 %v10273_v44, %v3045_v35  ;;  %7915 = vmatmul.mubr.msk.f32.gmra.mrb[12].mxu1 %vm3217_vm5, %v10417_v50  ;;  %v3446_v45 = vrot.slane %v10425_v42, 1 }
 0x32b   : > { %v3447_v46 = vrot.slane %v10427_v1, 1  ;;  %v3204_v54 = vmax.f32 %v3172_v18, 0.0 }
 0x32c   : > { %v3203_v52 = vmax.f32 %v3171_v40, 0.0  ;;  %v7878_v63 = vpop.f32.mrb[20].mxu0 }
 0x32d   : > { %v10437_v3 = vsel %vm451_vm3, %v3446_v45, %v3447_v46  ;;  %v10440_v38 = vsel %vm451_vm3, %v3447_v46, %v3449_v39  ;;  %v10442_v41 = vld [vmem:[#allocation3 + $0xd0] sm:$0x3]  ;;  %3293 = vst.msk [vmem:[#allocation3 + $0xf9] sm:$0xff] %vm3217_vm5, %v3204_v54  ;;  %v3174_v49 = vadd.f32 %v7878_v63, %v10273_v44  ;;  %v3055_v59 = vpop.f32.mrb[21].mxu0  ;;  %v10448_v60 = vld [vmem:[#allocation3 + $0xc0] sm:$0xff]  ;;  %v10450_v15 = vld [vmem:[#allocation3 + $0xc8] sm:$0xff] }
 0x32e   : > { %11701 = vst [vmem:[#allocation36_spill] sm:$0xff] %v10437_v3  ;;  %11702 = vst [vmem:[#allocation41_spill] sm:$0xff] %v10440_v38  ;;  %7917 = vmatprep.mubr.msk.f32.mxu1 %vm3217_vm5, %v10437_v3  ;;  %v3454_v16 = vrot.slane %v10442_v41, 1  ;;  %v3173_v21 = vadd.f32 %v10273_v44, %v3055_v59  ;;  %v3451_v20 = vrot.slane %v10448_v60, 1  ;;  %v3452_v51 = vrot.slane %v10450_v15, 1 }
 0x32f   : > { %3292 = vst.msk [vmem:[#allocation3 + $0xf1] sm:$0xff] %vm3217_vm5, %v3203_v52  ;;  %7918 = vmatmul.mubr.msk.f32.gmra.mrb[14].mxu1 %vm3217_vm5, %v10440_v38  ;;  %v3206_v61 = vmax.f32 %v3174_v49, 0.0 }
 0x330   : > { %v3205_v57 = vmax.f32 %v3173_v21, 0.0  ;;  %v7881_v14 = vpop.f32.mrb[22].mxu0  ;;  %v10460_v17 = vsel %vm451_vm3, %v3451_v20, %v3452_v51  ;;  %v10463_v6 = vsel %vm451_vm3, %v3452_v51, %v3454_v16 }
 0x331   : > { %11703 = vst [vmem:[#allocation5_spill] sm:$0xff] %v10460_v17  ;;  %11704 = vst [vmem:[#allocation6_spill] sm:$0xff] %v10463_v6  ;;  %v10465_v34 = vld [vmem:[#allocation3 + $0xe8] sm:$0x3]  ;;  %v3176_v18 = vadd.f32 %v7881_v14, %v10273_v44  ;;  %v3065_v35 = vpop.f32.mrb[23].mxu0  ;;  %7920 = vmatprep.mubr.msk.f32.mxu1 %vm3217_vm5, %v10460_v17  ;;  %v10471_v39 = vld [vmem:[#allocation3 + $0xd8] sm:$0xff] }
 0x332   : > { %3295 = vst.msk [vmem:[#allocation3 + $0x111] sm:$0xff] %vm3217_vm5, %v3206_v61  ;;  %v10473_v40 = vld [vmem:[#allocation3 + $0xe0] sm:$0xff]  ;;  %v3459_v45 = vrot.slane %v10465_v34, 1  ;;  %3294 = vst.msk [vmem:[#allocation3 + $0x109] sm:$0xff] %vm3217_vm5, %v3205_v57  ;;  %v3175_v46 = vadd.f32 %v10273_v44, %v3065_v35  ;;  %v3456_v54 = vrot.slane %v10471_v39, 1 }
 0x333   : > { %7921 = vmatmul.mubr.msk.f32.gmra.mrb[16].mxu1 %vm3217_vm5, %v10463_v6  ;;  %v3457_v52 = vrot.slane %v10473_v40, 1  ;;  %v3208_v63 = vmax.f32 %v3176_v18, 0.0 }
 0x334   : > { %v3207_v49 = vmax.f32 %v3175_v46, 0.0  ;;  %v7884_v59 = vpop.f32.mrb[24].mxu0  ;;  %v10488_v20 = vld [vmem:[#allocation3 + $0x100] sm:$0x3] }
 0x335   : > { %v10483_v16 = vsel %vm451_vm3, %v3456_v54, %v3457_v52  ;;  %v10486_v21 = vsel %vm451_vm3, %v3457_v52, %v3459_v45  ;;  %3297 = vst.msk [vmem:[#allocation3 + $0x129] sm:$0xff] %vm3217_vm5, %v3208_v63  ;;  %v3178_v51 = vadd.f32 %v7884_v59, %v10273_v44  ;;  %v3075_v61 = vpop.f32.mrb[25].mxu0  ;;  %v3464_v18 = vrot.slane %v10488_v20, 1 }
 0x336   : > { %11705 = vst [vmem:[#allocation7_spill] sm:$0xff] %v10483_v16  ;;  %11706 = vst [vmem:[#allocation8_spill] sm:$0xff] %v10486_v21  ;;  %7923 = vmatprep.mubr.msk.f32.mxu1 %vm3217_vm5, %v10483_v16  ;;  %v10494_v57 = vld [vmem:[#allocation3 + $0xf0] sm:$0xff]  ;;  %v10496_v14 = vld [vmem:[#allocation3 + $0xf8] sm:$0xff]  ;;  %v3177_v35 = vadd.f32 %v10273_v44, %v3075_v61 }
 0x337   : > { %3296 = vst.msk [vmem:[#allocation3 + $0x121] sm:$0xff] %vm3217_vm5, %v3207_v49  ;;  %7924 = vmatmul.mubr.msk.f32.gmra.mrb[18].mxu1 %vm3217_vm5, %v10486_v21  ;;  %v3461_v45 = vrot.slane %v10494_v57, 1  ;;  %v3462_v46 = vrot.slane %v10496_v14, 1  ;;  %v3210_v54 = vmax.f32 %v3178_v51, 0.0 }
 0x338   : > { %v3209_v52 = vmax.f32 %v3177_v35, 0.0  ;;  %v7887_v63 = vpop.f32.mrb[26].mxu0 }
 0x339   : > { %v10506_v59 = vsel %vm451_vm3, %v3461_v45, %v3462_v46  ;;  %v10509_v16 = vsel %vm451_vm3, %v3462_v46, %v3464_v18  ;;  %v10511_v6 = vld [vmem:[#allocation3 + $0x118] sm:$0x3]  ;;  %3299 = vst.msk [vmem:[#allocation3 + $0x141] sm:$0xff] %vm3217_vm5, %v3210_v54  ;;  %v3180_v49 = vadd.f32 %v7887_v63, %v10273_v44  ;;  %v3085_v61 = vpop.f32.mrb[27].mxu0  ;;  %v10517_v21 = vld [vmem:[#allocation3 + $0x108] sm:$0xff]  ;;  %v10519_v51 = vld [vmem:[#allocation3 + $0x110] sm:$0xff] }
 0x33a   : > { %11707 = vst [vmem:[#allocation9_spill] sm:$0xff] %v10506_v59  ;;  %11708 = vst [vmem:[#allocation10_spill] sm:$0xff] %v10509_v16  ;;  %7926 = vmatprep.mubr.msk.f32.mxu1 %vm3217_vm5, %v10506_v59  ;;  %v3469_v35 = vrot.slane %v10511_v6, 1  ;;  %v3179_v18 = vadd.f32 %v10273_v44, %v3085_v61  ;;  %v3466_v45 = vrot.slane %v10517_v21, 1  ;;  %v3467_v46 = vrot.slane %v10519_v51, 1 }
 0x33b   : > { %3298 = vst.msk [vmem:[#allocation3 + $0x139] sm:$0xff] %vm3217_vm5, %v3209_v52  ;;  %7927 = vmatmul.mubr.msk.f32.gmra.mrb[20].mxu1 %vm3217_vm5, %v10509_v16  ;;  %v3212_v54 = vmax.f32 %v3180_v49, 0.0 }
 0x33c   : > { %v3211_v63 = vmax.f32 %v3179_v18, 0.0  ;;  %v7890_v59 = vpop.f32.mrb[28].mxu0  ;;  %v10529_v17 = vsel %vm451_vm3, %v3466_v45, %v3467_v46  ;;  %v10532_v38 = vsel %vm451_vm3, %v3467_v46, %v3469_v35  ;;  %v10534_v3 = vld [vmem:[#allocation3 + $0x130] sm:$0x3] }
 0x33d   : > { %11709 = vst [vmem:[#allocation11_spill] sm:$0xff] %v10529_v17  ;;  %11710 = vst [vmem:[#allocation12_spill] sm:$0xff] %v10532_v38  ;;  %v3182_v52 = vadd.f32 %v7890_v59, %v10273_v44  ;;  %v3095_v61 = vpop.f32.mrb[29].mxu0  ;;  %7929 = vmatprep.mubr.msk.f32.mxu1 %vm3217_vm5, %v10529_v17  ;;  %v3474_v18 = vrot.slane %v10534_v3, 1 }
 0x33e   : > { %3301 = vst.msk [vmem:[#allocation3 + $0x159] sm:$0xff] %vm3217_vm5, %v3212_v54  ;;  %v10540_v16 = vld [vmem:[#allocation3 + $0x120] sm:$0xff]  ;;  %v10542_v49 = vld [vmem:[#allocation3 + $0x128] sm:$0xff]  ;;  %3300 = vst.msk [vmem:[#allocation3 + $0x151] sm:$0xff] %vm3217_vm5, %v3211_v63  ;;  %v3181_v35 = vadd.f32 %v10273_v44, %v3095_v61 }
 0x33f   : > { %7930 = vmatmul.mubr.msk.f32.gmra.mrb[22].mxu1 %vm3217_vm5, %v10532_v38  ;;  %v3471_v45 = vrot.slane %v10540_v16, 1  ;;  %v3472_v59 = vrot.slane %v10542_v49, 1  ;;  %v3214_v46 = vmax.f32 %v3182_v52, 0.0 }
 0x340   : > { %v3213_v54 = vmax.f32 %v3181_v35, 0.0  ;;  %v7893_v17 = vpop.f32.mrb[30].mxu0  ;;  %v10557_v13 = vld [vmem:[#allocation3 + $0x148] sm:$0x3] }
 0x341   : > { %v10552_v50 = vsel %vm451_vm3, %v3471_v45, %v3472_v59  ;;  %v10555_v53 = vsel %vm451_vm3, %v3472_v59, %v3474_v18  ;;  %3303 = vst.msk [vmem:[#allocation3 + $0x171] sm:$0xff] %vm3217_vm5, %v3214_v46  ;;  %v3184_v63 = vadd.f32 %v7893_v17, %v10273_v44  ;;  %v3105_v61 = vpop.f32.mrb[31].mxu0  ;;  %v3479_v35 = vrot.slane %v10557_v13, 1 }
 0x342   : > { %11711 = vst [vmem:[#allocation13_spill] sm:$0xff] %v10552_v50  ;;  %11712 = vst [vmem:[#allocation14_spill] sm:$0xff] %v10555_v53  ;;  %7932 = vmatprep.mubr.msk.f32.mxu1 %vm3217_vm5, %v10552_v50  ;;  %v10563_v38 = vld [vmem:[#allocation3 + $0x138] sm:$0xff]  ;;  %v10565_v52 = vld [vmem:[#allocation3 + $0x140] sm:$0xff]  ;;  %v3183_v18 = vadd.f32 %v10273_v44, %v3105_v61 }
 0x343   : > { %3302 = vst.msk [vmem:[#allocation3 + $0x169] sm:$0xff] %vm3217_vm5, %v3213_v54  ;;  %7933 = vmatmul.mubr.msk.f32.gmra.mrb[24].mxu1 %vm3217_vm5, %v10555_v53  ;;  %v3476_v45 = vrot.slane %v10563_v38, 1  ;;  %v3477_v17 = vrot.slane %v10565_v52, 1  ;;  %v3216_v59 = vmax.f32 %v3184_v63, 0.0  ;;  %v4082_v53 = vrot.slane %v10312_v5, 2 }
 0x344   : > { %v3215_v46 = vmax.f32 %v3183_v18, 0.0 }
 0x345   : > { %v10575_v50 = vsel %vm451_vm3, %v3476_v45, %v3477_v17  ;;  %v10578_v36 = vsel %vm451_vm3, %v3477_v17, %v3479_v35  ;;  %v10580_v56 = vld [vmem:[#allocation3 + $0x160] sm:$0x3]  ;;  %3305 = vst.msk [vmem:[#allocation3 + $0x189] sm:$0xff] %vm3217_vm5, %v3216_v59  ;;  %v10585_v44 = vld [vmem:[#allocation3 + $0x150] sm:$0xff]  ;;  %v10587_v54 = vld [vmem:[#allocation3 + $0x158] sm:$0xff] }
 0x346   : > { %11713 = vst [vmem:[#allocation16_spill] sm:$0xff] %v10575_v50  ;;  %11714 = vst [vmem:[#allocation17_spill] sm:$0xff] %v10578_v36  ;;  %7935 = vmatprep.mubr.msk.f32.mxu1 %vm3217_vm5, %v10575_v50  ;;  %v3484_v63 = vrot.slane %v10580_v56, 1  ;;  %v3481_v61 = vrot.slane %v10585_v44, 1  ;;  %v3482_v35 = vrot.slane %v10587_v54, 1 }
 0x347   : > { %3304 = vst.msk [vmem:[#allocation3 + $0x181] sm:$0xff] %vm3217_vm5, %v3215_v46  ;;  %7936 = vmatmul.mubr.msk.f32.gmra.mrb[26].mxu1 %vm3217_vm5, %v10578_v36 }
 0x348   : > { %v10596_v18 = vsel %vm451_vm3, %v3481_v61, %v3482_v35  ;;  %v10599_v45 = vsel %vm451_vm3, %v3482_v35, %v3484_v63  ;;  %v10601_v17 = vld [vmem:[#allocation3 + $0x178] sm:$0x3] }
 0x349   : > { %11715 = vst [vmem:[#allocation18_spill] sm:$0xff] %v10596_v18  ;;  %11716 = vst [vmem:[#allocation19_spill] sm:$0xff] %v10599_v45  ;;  %7938 = vmatprep.mubr.msk.f32.mxu1 %vm3217_vm5, %v10596_v18  ;;  %v3489_v36 = vrot.slane %v10601_v17, 1  ;;  %v4081_v18 = vrot.slane %v10310_v24, 2 }
 0x34a   : > { %v10605_v59 = vld [vmem:[#allocation3 + $0x168] sm:$0xff]  ;;  %v10607_v46 = vld [vmem:[#allocation3 + $0x170] sm:$0xff] }
 0x34b   : > { %7939 = vmatmul.mubr.msk.f32.gmra.mrb[28].mxu1 %vm3217_vm5, %v10599_v45  ;;  %v3486_v61 = vrot.slane %v10605_v59, 1  ;;  %v3487_v50 = vrot.slane %v10607_v46, 1  ;;  %v6647_v45 = vld [vmem:[%s11439_s3 + $0x18] sm:$0xff] }
 0x34d   : > { %v10615_v63 = vsel %vm451_vm3, %v3486_v61, %v3487_v50  ;;  %v10618_v35 = vsel %vm451_vm3, %v3487_v50, %v3489_v36  ;;  %v4072_v36 = vrot.slane %v10247_v31, 2  ;;  %v4074_v50 = vrot.slane %v10251_v33, 2  ;;  %v10704_v33 = vld [vmem:[%s11439_s3 + $0x20] sm:$0xff] }
 0x34e   : > { %11717 = vst [vmem:[#allocation20_spill] sm:$0xff] %v10615_v63  ;;  %11718 = vst [vmem:[#allocation21_spill] sm:$0xff] %v10618_v35  ;;  %7941 = vmatprep.mubr.msk.f32.mxu1 %vm3217_vm5, %v10615_v63  ;;  %v4077_v63 = vrot.slane %v10291_v29, 2 }
 0x34f   : > { %7942 = vmatmul.mubr.msk.f32.gmra.mrb[30].mxu1 %vm3217_vm5, %v10618_v35  ;;  %v4076_v35 = vrot.slane %v10289_v28, 2 }
 0x350   : > { %7946 = vmatprep.mubr.msk.f32.mxu1 %vm3217_vm5, %v10245_v2 }
 0x353   : > { %7947 = vmatmul.mubr.msk.f32.vlgmr.msra.gmra.mrb[0].mxu1 %vm3217_vm5, %v10247_v31  ;;  %v4079_v31 = vrot.slane %v10285_v9, 2 }
 0x354   : > { %7995 = vmatpush3.msra.mxu1 %v10267_v0  ;;  %7949 = vmatprep.mubr.msk.f32.mxu1 %vm3217_vm5, %v10289_v28  ;;  %v4071_v0 = vrot.slane %v10245_v2, 2  ;;  %v4075_v2 = vsel %vm1119_vm4, %v4072_v36, %v4074_v50  ;;  %v4086_v50 = vrot.slane %v10333_v25, 2 }
 0x355   : > { %8044 = vmatprep.subr.mxu1 %v6647_v45  ;;  %v10716_v9 = vsel %vm1119_vm4, %v4077_v63, %v4079_v31 }
 0x356   : > { %v4073_v61 = vsel %vm1119_vm4, %v4071_v0, %v4072_v36  ;;  %v10708_v0 = vsel %vm1119_vm4, %v4076_v35, %v4077_v63  ;;  %v4084_v36 = vrot.slane %v10304_v32, 2  ;;  %v10722_v35 = vsel %vm1119_vm4, %v4081_v18, %v4082_v53 }
 0x357   : > { %7950 = vmatmul.mubr.msk.f32.gmra.mrb[2].mxu1 %vm3217_vm5, %v10291_v29  ;;  %v4089_v63 = vrot.slane %v10327_v37, 2  ;;  %v4091_v18 = vrot.slane %v10356_v23, 2 }
 0x358   : > { %7952 = vmatprep.mubr.msk.f32.mxu1 %vm3217_vm5, %v10310_v24 }
 0x35b   : > { %7953 = vmatmul.mubr.msk.f32.gmra.mrb[4].mxu1 %vm3217_vm5, %v10312_v5 }
 0x35c   : > { %7955 = vmatprep.mubr.msk.f32.mxu1 %vm3217_vm5, %v10333_v25 }
 0x35f   : > { %7956 = vmatmul.mubr.msk.f32.gmra.mrb[6].mxu1 %vm3217_vm5, %v10335_v12 }
 0x360   : > { %7958 = vmatprep.mubr.msk.f32.mxu1 %vm3217_vm5, %v10356_v23 }
 0x363   : > { %7959 = vmatmul.mubr.msk.f32.gmra.mrb[8].mxu1 %vm3217_vm5, %v10358_v47 }
 0x364   : > { %7961 = vmatprep.mubr.msk.f32.mxu1 %vm3217_vm5, %v10379_v10 }
 0x367   : > { %7962 = vmatmul.mubr.msk.f32.gmra.mrb[10].mxu1 %vm3217_vm5, %v10381_v27 }
 0x368   : > { %7964 = vmatprep.mubr.msk.f32.mxu1 %vm3217_vm5, %v10402_v22 }
 0x36b   : > { %7965 = vmatmul.mubr.msk.f32.gmra.mrb[12].mxu1 %vm3217_vm5, %v10404_v7 }
 0x36c   : > { %7967 = vmatprep.mubr.msk.f32.mxu1 %vm3217_vm5, %v10425_v42 }
 0x36f   : > { %7968 = vmatmul.mubr.msk.f32.gmra.mrb[14].mxu1 %vm3217_vm5, %v10427_v1 }
 0x370   : > { %7970 = vmatprep.mubr.msk.f32.mxu1 %vm3217_vm5, %v10448_v60 }
 0x373   : > { %7971 = vmatmul.mubr.msk.f32.gmra.mrb[16].mxu1 %vm3217_vm5, %v10450_v15 }
 0x374   : > { %7973 = vmatprep.mubr.msk.f32.mxu1 %vm3217_vm5, %v10471_v39 }
 0x377   : > { %7974 = vmatmul.mubr.msk.f32.gmra.mrb[18].mxu1 %vm3217_vm5, %v10473_v40 }
 0x378   : > { %7976 = vmatprep.mubr.msk.f32.mxu1 %vm3217_vm5, %v10494_v57 }
 0x37b   : > { %7977 = vmatmul.mubr.msk.f32.gmra.mrb[20].mxu1 %vm3217_vm5, %v10496_v14 }
 0x37c   : > { %7979 = vmatprep.mubr.msk.f32.mxu1 %vm3217_vm5, %v10517_v21 }
 0x37f   : > { %7980 = vmatmul.mubr.msk.f32.gmra.mrb[22].mxu1 %vm3217_vm5, %v10519_v51 }
 0x380   : > { %7982 = vmatprep.mubr.msk.f32.mxu1 %vm3217_vm5, %v10540_v16 }
 0x383   : > { %7983 = vmatmul.mubr.msk.f32.gmra.mrb[24].mxu1 %vm3217_vm5, %v10542_v49 }
 0x384   : > { %7985 = vmatprep.mubr.msk.f32.mxu1 %vm3217_vm5, %v10563_v38 }
 0x387   : > { %7986 = vmatmul.mubr.msk.f32.gmra.mrb[26].mxu1 %vm3217_vm5, %v10565_v52 }
 0x388   : > { %7988 = vmatprep.mubr.msk.f32.mxu1 %vm3217_vm5, %v10585_v44 }
 0x38b   : > { %7989 = vmatmul.mubr.msk.f32.gmra.mrb[28].mxu1 %vm3217_vm5, %v10587_v54 }
 0x38c   : > { %7991 = vmatprep.mubr.msk.f32.mxu1 %vm3217_vm5, %v10605_v59 }
 0x38f   : > { %7992 = vmatmul.mubr.msk.f32.gmra.mrb[30].mxu1 %vm3217_vm5, %v10607_v46 }
 0x390   : > { %7996 = vmatprep.mubr.msk.f32.mxu1 %vm3217_vm5, %v4073_v61  ;;  %v10729_v61 = vsel %vm1119_vm4, %v4082_v53, %v4084_v36  ;;  %v4094_v53 = vrot.slane %v10350_v11, 2  ;;  %v4096_v36 = vrot.slane %v10379_v10, 2 }
 0x393   : > { %7997 = vmatmul.mubr.msk.f32.vlgmr.msra.gmra.mrb[0].mxu1 %vm3217_vm5, %v4075_v2  ;;  %v4092_v2 = vrot.slane %v10358_v47, 2 }
 0x394   : > { %8045 = vmatpush3.msra.mxu1 %v6647_v45  ;;  %7999 = vmatprep.mubr.msk.f32.mxu1 %vm3217_vm5, %v10708_v0  ;;  %v4087_v45 = vrot.slane %v10335_v12, 2 }
 0x395   : > { %8094 = vmatprep.subr.mxu1 %v10704_v33  ;;  %v10748_v37 = vsel %vm1119_vm4, %v4091_v18, %v4092_v2  ;;  %v4102_v18 = vrot.slane %v10404_v7, 2 }
 0x396   : > { %v10735_v32 = vsel %vm1119_vm4, %v4086_v50, %v4087_v45  ;;  %v10742_v31 = vsel %vm1119_vm4, %v4087_v45, %v4089_v63  ;;  %11720 = vst [vmem:[#allocation23_spill] sm:$0xff] %v10748_v37  ;;  %v4097_v50 = vrot.slane %v10381_v27, 2  ;;  %v4099_v45 = vrot.slane %v10373_v62, 2 }
 0x397   : > { %8000 = vmatmul.mubr.msk.f32.gmra.mrb[2].mxu1 %vm3217_vm5, %v10716_v9  ;;  %11719 = vst [vmem:[#allocation22_spill] sm:$0xff] %v10735_v32  ;;  %v4101_v63 = vrot.slane %v10402_v22, 2 }
 0x398   : > { %8002 = vmatprep.mubr.msk.f32.mxu1 %vm3217_vm5, %v10722_v35  ;;  %v10761_v11 = vsel %vm1119_vm4, %v4096_v36, %v4097_v50  ;;  %v4107_v36 = vrot.slane %v10427_v1, 2 }
 0x399   : > { %11721 = vst [vmem:[#allocation24_spill] sm:$0xff] %v10761_v11  ;;  %v10774_v62 = vsel %vm1119_vm4, %v4101_v63, %v4102_v18  ;;  %v4112_v63 = vrot.slane %v10450_v15, 2 }
 0x39a   : > { %11722 = vst [vmem:[#allocation25_spill] sm:$0xff] %v10774_v62 }
 0x39b   : > { %8003 = vmatmul.mubr.msk.f32.gmra.mrb[4].mxu1 %vm3217_vm5, %v10729_v61 }
 0x39c   : > { %8005 = vmatprep.mubr.msk.f32.mxu1 %vm3217_vm5, %v10735_v32  ;;  %v10755_v32 = vsel %vm1119_vm4, %v4092_v2, %v4094_v53  ;;  %v4104_v2 = vrot.slane %v10396_v43, 2  ;;  %v4106_v53 = vrot.slane %v10425_v42, 2 }
 0x39e   : > { %v10787_v43 = vsel %vm1119_vm4, %v4106_v53, %v4107_v36  ;;  %v4117_v53 = vrot.slane %v10473_v40, 2 }
 0x39f   : > { %8006 = vmatmul.mubr.msk.f32.gmra.mrb[6].mxu1 %vm3217_vm5, %v10742_v31  ;;  %11723 = vst [vmem:[#allocation30_spill] sm:$0xff] %v10787_v43 }
 0x3a0   : > { %8008 = vmatprep.mubr.msk.f32.mxu1 %vm3217_vm5, %v10748_v37  ;;  %v10768_v37 = vsel %vm1119_vm4, %v4097_v50, %v4099_v45  ;;  %v4109_v50 = vrot.slane %v10419_v48, 2  ;;  %v4111_v45 = vrot.slane %v10448_v60, 2 }
 0x3a2   : > { %v10800_v48 = vsel %vm1119_vm4, %v4111_v45, %v4112_v63  ;;  %v4122_v45 = vrot.slane %v10496_v14, 2 }
 0x3a3   : > { %8009 = vmatmul.mubr.msk.f32.gmra.mrb[8].mxu1 %vm3217_vm5, %v10755_v32  ;;  %11724 = vst [vmem:[#allocation31_spill] sm:$0xff] %v10800_v48 }
 0x3a4   : > { %8011 = vmatprep.mubr.msk.f32.mxu1 %vm3217_vm5, %v10761_v11  ;;  %v10781_v11 = vsel %vm1119_vm4, %v4102_v18, %v4104_v2  ;;  %v4114_v18 = vrot.slane %v10442_v41, 2  ;;  %v4116_v2 = vrot.slane %v10471_v39, 2 }
 0x3a6   : > { %v10813_v41 = vsel %vm1119_vm4, %v4116_v2, %v4117_v53  ;;  %v4127_v2 = vrot.slane %v10519_v51, 2 }
 0x3a7   : > { %8012 = vmatmul.mubr.msk.f32.gmra.mrb[10].mxu1 %vm3217_vm5, %v10768_v37  ;;  %11725 = vst [vmem:[#allocation32_spill] sm:$0xff] %v10813_v41 }
 0x3a8   : > { %8014 = vmatprep.mubr.msk.f32.mxu1 %vm3217_vm5, %v10774_v62  ;;  %v10794_v62 = vsel %vm1119_vm4, %v4107_v36, %v4109_v50  ;;  %v4119_v36 = vrot.slane %v10465_v34, 2  ;;  %v4121_v50 = vrot.slane %v10494_v57, 2 }
 0x3aa   : > { %v10826_v34 = vsel %vm1119_vm4, %v4121_v50, %v4122_v45  ;;  %v4132_v50 = vrot.slane %v10542_v49, 2 }
 0x3ab   : > { %8015 = vmatmul.mubr.msk.f32.gmra.mrb[12].mxu1 %vm3217_vm5, %v10781_v11  ;;  %11726 = vst [vmem:[#allocation33_spill] sm:$0xff] %v10826_v34 }
 0x3ac   : > { %8017 = vmatprep.mubr.msk.f32.mxu1 %vm3217_vm5, %v10787_v43  ;;  %v10807_v43 = vsel %vm1119_vm4, %v4112_v63, %v4114_v18  ;;  %v4124_v63 = vrot.slane %v10488_v20, 2  ;;  %v4126_v18 = vrot.slane %v10517_v21, 2 }
 0x3ae   : > { %v10839_v20 = vsel %vm1119_vm4, %v4126_v18, %v4127_v2  ;;  %v4137_v18 = vrot.slane %v10565_v52, 2 }
 0x3af   : > { %8018 = vmatmul.mubr.msk.f32.gmra.mrb[14].mxu1 %vm3217_vm5, %v10794_v62  ;;  %11728 = vst [vmem:[#allocation35_spill] sm:$0xff] %v10839_v20 }
 0x3b0   : > { %8020 = vmatprep.mubr.msk.f32.mxu1 %vm3217_vm5, %v10800_v48  ;;  %v10820_v48 = vsel %vm1119_vm4, %v4117_v53, %v4119_v36  ;;  %v4129_v53 = vrot.slane %v10511_v6, 2  ;;  %v4131_v36 = vrot.slane %v10540_v16, 2 }
 0x3b2   : > { %v10852_v6 = vsel %vm1119_vm4, %v4131_v36, %v4132_v50  ;;  %v4142_v36 = vrot.slane %v10587_v54, 2 }
 0x3b3   : > { %8021 = vmatmul.mubr.msk.f32.gmra.mrb[16].mxu1 %vm3217_vm5, %v10807_v43  ;;  %11729 = vst [vmem:[#allocation37_spill] sm:$0xff] %v10852_v6 }
 0x3b4   : > { %8023 = vmatprep.mubr.msk.f32.mxu1 %vm3217_vm5, %v10813_v41  ;;  %v10833_v41 = vsel %vm1119_vm4, %v4122_v45, %v4124_v63  ;;  %v4134_v45 = vrot.slane %v10534_v3, 2  ;;  %v4136_v63 = vrot.slane %v10563_v38, 2 }
 0x3b5   : > { %11727 = vst [vmem:[#allocation34_spill] sm:$0xff] %v10833_v41 }
 0x3b6   : > { %v10865_v3 = vsel %vm1119_vm4, %v4136_v63, %v4137_v18  ;;  %v4147_v63 = vrot.slane %v10607_v46, 2 }
 0x3b7   : > { %8024 = vmatmul.mubr.msk.f32.gmra.mrb[18].mxu1 %vm3217_vm5, %v10820_v48  ;;  %11731 = vst [vmem:[#allocation39_spill] sm:$0xff] %v10865_v3 }
 0x3b8   : > { %8026 = vmatprep.mubr.msk.f32.mxu1 %vm3217_vm5, %v10826_v34  ;;  %v10846_v34 = vsel %vm1119_vm4, %v4127_v2, %v4129_v53  ;;  %v4139_v2 = vrot.slane %v10557_v13, 2  ;;  %v4141_v53 = vrot.slane %v10585_v44, 2 }
 0x3ba   : > { %v10878_v13 = vsel %vm1119_vm4, %v4141_v53, %v4142_v36  ;;  %v11735_v53 = vld [vmem:[#allocation27_spill] sm:$0xff] }
 0x3bb   : > { %8027 = vmatmul.mubr.msk.f32.gmra.mrb[20].mxu1 %vm3217_vm5, %v10833_v41  ;;  %11732 = vst [vmem:[#allocation40_spill] sm:$0xff] %v10878_v13 }
 0x3bc   : > { %8029 = vmatprep.mubr.msk.f32.mxu1 %vm3217_vm5, %v10839_v20  ;;  %v10859_v20 = vsel %vm1119_vm4, %v4132_v50, %v4134_v45  ;;  %v4144_v50 = vrot.slane %v10580_v56, 2  ;;  %v4146_v45 = vrot.slane %v10605_v59, 2 }
 0x3bd   : > { %11730 = vst [vmem:[#allocation38_spill] sm:$0xff] %v10859_v20 }
 0x3be   : > { %v10891_v56 = vsel %vm1119_vm4, %v4146_v45, %v4147_v63  ;;  %v11738_v45 = vld [vmem:[#allocation36_spill] sm:$0xff] }
 0x3bf   : > { %8030 = vmatmul.mubr.msk.f32.gmra.mrb[22].mxu1 %vm3217_vm5, %v10846_v34 }
 0x3c0   : > { %8032 = vmatprep.mubr.msk.f32.mxu1 %vm3217_vm5, %v10852_v6  ;;  %v10872_v6 = vsel %vm1119_vm4, %v4137_v18, %v4139_v2  ;;  %v4149_v18 = vrot.slane %v10601_v17, 2  ;;  %v6713_v17 = vld [vmem:[%s11439_s3 + $0x28] sm:$0xff] }
 0x3c2   : > { %v10896_v2 = vsel %vm1119_vm4, %v4147_v63, %v4149_v18  ;;  %v11739_v63 = vld [vmem:[#allocation41_spill] sm:$0xff] }
 0x3c3   : > { %8033 = vmatmul.mubr.msk.f32.gmra.mrb[24].mxu1 %vm3217_vm5, %v10859_v20  ;;  %v11740_v18 = vld [vmem:[#allocation5_spill] sm:$0xff] }
 0x3c4   : > { %8035 = vmatprep.mubr.msk.f32.mxu1 %vm3217_vm5, %v10865_v3  ;;  %v10885_v3 = vsel %vm1119_vm4, %v4142_v36, %v4144_v50  ;;  %v11736_v36 = vld [vmem:[#allocation28_spill] sm:$0xff]  ;;  %v11737_v50 = vld [vmem:[#allocation29_spill] sm:$0xff] }
 0x3c7   : > { %8036 = vmatmul.mubr.msk.f32.gmra.mrb[26].mxu1 %vm3217_vm5, %v10872_v6 }
 0x3c8   : > { %8038 = vmatprep.mubr.msk.f32.mxu1 %vm3217_vm5, %v10878_v13 }
 0x3cb   : > { %8039 = vmatmul.mubr.msk.f32.gmra.mrb[28].mxu1 %vm3217_vm5, %v10885_v3 }
 0x3cc   : > { %8041 = vmatprep.mubr.msk.f32.mxu1 %vm3217_vm5, %v10891_v56 }
 0x3cf   : > { %8042 = vmatmul.mubr.msk.f32.gmra.mrb[30].mxu1 %vm3217_vm5, %v10896_v2 }
 0x3d0   : > { %8046 = vmatprep.mubr.msk.f32.mxu1 %vm3217_vm5, %v10289_v28  ;;  %v10964_v28 = vld [vmem:[#allocation3 + $0x180] sm:$0xff] }
 0x3d3   : > { %8047 = vmatmul.mubr.msk.f32.vlgmr.msra.gmra.mrb[0].mxu1 %vm3217_vm5, %v10291_v29  ;;  %v10968_v29 = vld [vmem:[#allocation3 + $0x188] sm:$0xff] }
 0x3d4   : > { %8095 = vmatpush3.msra.mxu1 %v10704_v33  ;;  %8049 = vmatprep.mubr.msk.f32.mxu1 %vm3217_vm5, %v10310_v24  ;;  %v6746_v33 = vld [vmem:[%s11439_s3 + $0x30] sm:$0xff] }
 0x3d5   : > { %8144 = vmatprep.subr.mxu1 %v6713_v17 }
 0x3d7   : > { %8050 = vmatmul.mubr.msk.f32.gmra.mrb[2].mxu1 %vm3217_vm5, %v10312_v5 }
 0x3d8   : > { %8052 = vmatprep.mubr.msk.f32.mxu1 %vm3217_vm5, %v10333_v25 }
 0x3db   : > { %8053 = vmatmul.mubr.msk.f32.gmra.mrb[4].mxu1 %vm3217_vm5, %v10335_v12 }
 0x3dc   : > { %8055 = vmatprep.mubr.msk.f32.mxu1 %vm3217_vm5, %v10356_v23 }
 0x3df   : > { %8056 = vmatmul.mubr.msk.f32.gmra.mrb[6].mxu1 %vm3217_vm5, %v10358_v47 }
 0x3e0   : > { %8058 = vmatprep.mubr.msk.f32.mxu1 %vm3217_vm5, %v10379_v10 }
 0x3e3   : > { %8059 = vmatmul.mubr.msk.f32.gmra.mrb[8].mxu1 %vm3217_vm5, %v10381_v27 }
 0x3e4   : > { %8061 = vmatprep.mubr.msk.f32.mxu1 %vm3217_vm5, %v10402_v22 }
 0x3e7   : > { %8062 = vmatmul.mubr.msk.f32.gmra.mrb[10].mxu1 %vm3217_vm5, %v10404_v7 }
 0x3e8   : > { %8064 = vmatprep.mubr.msk.f32.mxu1 %vm3217_vm5, %v10425_v42 }
 0x3eb   : > { %8065 = vmatmul.mubr.msk.f32.gmra.mrb[12].mxu1 %vm3217_vm5, %v10427_v1 }
 0x3ec   : > { %8067 = vmatprep.mubr.msk.f32.mxu1 %vm3217_vm5, %v10448_v60 }
 0x3ef   : > { %8068 = vmatmul.mubr.msk.f32.gmra.mrb[14].mxu1 %vm3217_vm5, %v10450_v15 }
 0x3f0   : > { %8070 = vmatprep.mubr.msk.f32.mxu1 %vm3217_vm5, %v10471_v39 }
 0x3f3   : > { %8071 = vmatmul.mubr.msk.f32.gmra.mrb[16].mxu1 %vm3217_vm5, %v10473_v40 }
 0x3f4   : > { %8073 = vmatprep.mubr.msk.f32.mxu1 %vm3217_vm5, %v10494_v57 }
 0x3f7   : > { %8074 = vmatmul.mubr.msk.f32.gmra.mrb[18].mxu1 %vm3217_vm5, %v10496_v14 }
 0x3f8   : > { %8076 = vmatprep.mubr.msk.f32.mxu1 %vm3217_vm5, %v10517_v21 }
 0x3fb   : > { %8077 = vmatmul.mubr.msk.f32.gmra.mrb[20].mxu1 %vm3217_vm5, %v10519_v51 }
 0x3fc   : > { %8079 = vmatprep.mubr.msk.f32.mxu1 %vm3217_vm5, %v10540_v16 }
 0x3ff   : > { %8080 = vmatmul.mubr.msk.f32.gmra.mrb[22].mxu1 %vm3217_vm5, %v10542_v49 }
 0x400   : > { %8082 = vmatprep.mubr.msk.f32.mxu1 %vm3217_vm5, %v10563_v38 }
 0x403   : > { %8083 = vmatmul.mubr.msk.f32.gmra.mrb[24].mxu1 %vm3217_vm5, %v10565_v52 }
 0x404   : > { %8085 = vmatprep.mubr.msk.f32.mxu1 %vm3217_vm5, %v10585_v44 }
 0x407   : > { %8086 = vmatmul.mubr.msk.f32.gmra.mrb[26].mxu1 %vm3217_vm5, %v10587_v54 }
 0x408   : > { %8088 = vmatprep.mubr.msk.f32.mxu1 %vm3217_vm5, %v10605_v59 }
 0x40b   : > { %8089 = vmatmul.mubr.msk.f32.gmra.mrb[28].mxu1 %vm3217_vm5, %v10607_v46 }
 0x40c   : > { %8091 = vmatprep.mubr.msk.f32.mxu1 %vm3217_vm5, %v10964_v28 }
 0x40f   : > { %8092 = vmatmul.mubr.msk.f32.gmra.mrb[30].mxu1 %vm3217_vm5, %v10968_v29 }
 0x410   : > { %8096 = vmatprep.mubr.msk.f32.mxu1 %vm3217_vm5, %v10299_v19  ;;  %v11733_v19 = vld [vmem:[#allocation15_spill] sm:$0xff] }
 0x413   : > { %8097 = vmatmul.mubr.msk.f32.vlgmr.msra.gmra.mrb[0].mxu1 %vm3217_vm5, %v10302_v30  ;;  %v11734_v30 = vld [vmem:[#allocation26_spill] sm:$0xff] }
 0x414   : > { %8145 = vmatpush3.msra.mxu1 %v6713_v17  ;;  %8099 = vmatprep.mubr.msk.f32.mxu1 %vm3217_vm5, %v10322_v8  ;;  %v11741_v17 = vld [vmem:[#allocation6_spill] sm:$0xff] }
 0x415   : > { %8194 = vmatprep.subr.mxu1 %v6746_v33 }
 0x417   : > { %8100 = vmatmul.mubr.msk.f32.gmra.mrb[2].mxu1 %vm3217_vm5, %v10325_v26 }
 0x418   : > { %8102 = vmatprep.mubr.msk.f32.mxu1 %vm3217_vm5, %v10345_v58 }
 0x41b   : > { %8103 = vmatmul.mubr.msk.f32.gmra.mrb[4].mxu1 %vm3217_vm5, %v10348_v4 }
 0x41c   : > { %8105 = vmatprep.mubr.msk.f32.mxu1 %vm3217_vm5, %v10368_v55  ;;  %v11755_v55 = vld [vmem:[#allocation21_spill] sm:$0xff] }
 0x41f   : > { %8106 = vmatmul.mubr.msk.f32.gmra.mrb[6].mxu1 %vm3217_vm5, %v11733_v19  ;;  %v11754_v19 = vld [vmem:[#allocation20_spill] sm:$0xff] }
 0x420   : > { %8108 = vmatprep.mubr.msk.f32.mxu1 %vm3217_vm5, %v11734_v30  ;;  %v11742_v30 = vld [vmem:[#allocation7_spill] sm:$0xff] }
 0x423   : > { %8109 = vmatmul.mubr.msk.f32.gmra.mrb[8].mxu1 %vm3217_vm5, %v11735_v53  ;;  %v11743_v53 = vld [vmem:[#allocation8_spill] sm:$0xff] }
 0x424   : > { %8111 = vmatprep.mubr.msk.f32.mxu1 %vm3217_vm5, %v11736_v36  ;;  %v11744_v36 = vld [vmem:[#allocation9_spill] sm:$0xff] }
 0x427   : > { %8112 = vmatmul.mubr.msk.f32.gmra.mrb[10].mxu1 %vm3217_vm5, %v11737_v50  ;;  %v11745_v50 = vld [vmem:[#allocation10_spill] sm:$0xff] }
 0x428   : > { %8114 = vmatprep.mubr.msk.f32.mxu1 %vm3217_vm5, %v11738_v45  ;;  %v11746_v45 = vld [vmem:[#allocation11_spill] sm:$0xff] }
 0x42b   : > { %8115 = vmatmul.mubr.msk.f32.gmra.mrb[12].mxu1 %vm3217_vm5, %v11739_v63  ;;  %v11747_v63 = vld [vmem:[#allocation12_spill] sm:$0xff] }
 0x42c   : > { %8117 = vmatprep.mubr.msk.f32.mxu1 %vm3217_vm5, %v11740_v18  ;;  %v11748_v18 = vld [vmem:[#allocation13_spill] sm:$0xff] }
 0x42f   : > { %8118 = vmatmul.mubr.msk.f32.gmra.mrb[14].mxu1 %vm3217_vm5, %v11741_v17  ;;  %v11749_v17 = vld [vmem:[#allocation14_spill] sm:$0xff] }
 0x430   : > { %8120 = vmatprep.mubr.msk.f32.mxu1 %vm3217_vm5, %v11742_v30  ;;  %v11750_v30 = vld [vmem:[#allocation16_spill] sm:$0xff] }
 0x433   : > { %8121 = vmatmul.mubr.msk.f32.gmra.mrb[16].mxu1 %vm3217_vm5, %v11743_v53  ;;  %v11751_v53 = vld [vmem:[#allocation17_spill] sm:$0xff] }
 0x434   : > { %8123 = vmatprep.mubr.msk.f32.mxu1 %vm3217_vm5, %v11744_v36  ;;  %v11752_v36 = vld [vmem:[#allocation18_spill] sm:$0xff] }
 0x437   : > { %8124 = vmatmul.mubr.msk.f32.gmra.mrb[18].mxu1 %vm3217_vm5, %v11745_v50  ;;  %v4741_v50 = vrot.slane %v10968_v29, 1 }
 0x438   : > { %8126 = vmatprep.mubr.msk.f32.mxu1 %vm3217_vm5, %v11746_v45  ;;  %v4740_v45 = vrot.slane %v10964_v28, 1 }
 0x43b   : > { %8127 = vmatmul.mubr.msk.f32.gmra.mrb[20].mxu1 %vm3217_vm5, %v11747_v63  ;;  %v11753_v63 = vld [vmem:[#allocation19_spill] sm:$0xff] }
 0x43c   : > { %8129 = vmatprep.mubr.msk.f32.mxu1 %vm3217_vm5, %v11748_v18  ;;  %v3356_v18 = vld [vmem:[#allocation3 + $0x190] sm:$0x3] }
 0x43f   : > { %8130 = vmatmul.mubr.msk.f32.gmra.mrb[22].mxu1 %vm3217_vm5, %v11749_v17  ;;  %v4743_v17 = vrot.slane %v3356_v18, 1 }
 0x440   : > { %8132 = vmatprep.mubr.msk.f32.mxu1 %vm3217_vm5, %v11750_v30 }
 0x443   : > { %8133 = vmatmul.mubr.msk.f32.gmra.mrb[24].mxu1 %vm3217_vm5, %v11751_v53  ;;  %v11038_v53 = vsel %vm451_vm3, %v4740_v45, %v4741_v50  ;;  %v11760_v45 = vld [vmem:[#allocation30_spill] sm:$0xff] }
 0x444   : > { %8135 = vmatprep.mubr.msk.f32.mxu1 %vm3217_vm5, %v11752_v36  ;;  %v11043_v36 = vsel %vm451_vm3, %v4741_v50, %v4743_v17  ;;  %v11756_v50 = vld [vmem:[#allocation22_spill] sm:$0xff]  ;;  %v11761_v17 = vld [vmem:[#allocation31_spill] sm:$0xff] }
 0x447   : > { %8136 = vmatmul.mubr.msk.f32.gmra.mrb[26].mxu1 %vm3217_vm5, %v11753_v63 }
 0x448   : > { %8138 = vmatprep.mubr.msk.f32.mxu1 %vm3217_vm5, %v11754_v19  ;;  %v6779_v19 = vld [vmem:[%s11439_s3 + $0x38] sm:$0xff] }
 0x44b   : > { %8139 = vmatmul.mubr.msk.f32.gmra.mrb[28].mxu1 %vm3217_vm5, %v11755_v55 }
 0x44c   : > { %8141 = vmatprep.mubr.msk.f32.mxu1 %vm3217_vm5, %v11038_v53 }
 0x44f   : > { %8142 = vmatmul.mubr.msk.f32.gmra.mrb[30].mxu1 %vm3217_vm5, %v11043_v36 }
 0x450   : > { %8146 = vmatprep.mubr.msk.f32.mxu1 %vm3217_vm5, %v10708_v0  ;;  %v11757_v0 = vld [vmem:[#allocation23_spill] sm:$0xff] }
 0x453   : > { %8147 = vmatmul.mubr.msk.f32.vlgmr.msra.gmra.mrb[0].mxu1 %vm3217_vm5, %v10716_v9  ;;  %v11758_v9 = vld [vmem:[#allocation24_spill] sm:$0xff] }
 0x454   : > { %8195 = vmatpush3.msra.mxu1 %v6746_v33  ;;  %8149 = vmatprep.mubr.msk.f32.mxu1 %vm3217_vm5, %v10722_v35  ;;  %v11759_v33 = vld [vmem:[#allocation25_spill] sm:$0xff] }
 0x455   : > { %8244 = vmatprep.subr.mxu1 %v6779_v19 }
 0x457   : > { %8150 = vmatmul.mubr.msk.f32.gmra.mrb[2].mxu1 %vm3217_vm5, %v10729_v61 }
 0x458   : > { %8152 = vmatprep.mubr.msk.f32.mxu1 %vm3217_vm5, %v11756_v50 }
 0x45b   : > { %8153 = vmatmul.mubr.msk.f32.gmra.mrb[4].mxu1 %vm3217_vm5, %v10742_v31 }
 0x45c   : > { %8155 = vmatprep.mubr.msk.f32.mxu1 %vm3217_vm5, %v11757_v0 }
 0x45f   : > { %8156 = vmatmul.mubr.msk.f32.gmra.mrb[6].mxu1 %vm3217_vm5, %v10755_v32 }
 0x460   : > { %8158 = vmatprep.mubr.msk.f32.mxu1 %vm3217_vm5, %v11758_v9  ;;  %v11762_v9 = vld [vmem:[#allocation32_spill] sm:$0xff] }
 0x463   : > { %8159 = vmatmul.mubr.msk.f32.gmra.mrb[8].mxu1 %vm3217_vm5, %v10768_v37 }
 0x464   : > { %8161 = vmatprep.mubr.msk.f32.mxu1 %vm3217_vm5, %v11759_v33  ;;  %v11763_v33 = vld [vmem:[#allocation33_spill] sm:$0xff] }
 0x467   : > { %8162 = vmatmul.mubr.msk.f32.gmra.mrb[10].mxu1 %vm3217_vm5, %v10781_v11 }
 0x468   : > { %8164 = vmatprep.mubr.msk.f32.mxu1 %vm3217_vm5, %v11760_v45  ;;  %v11764_v45 = vld [vmem:[#allocation35_spill] sm:$0xff] }
 0x46b   : > { %8165 = vmatmul.mubr.msk.f32.gmra.mrb[12].mxu1 %vm3217_vm5, %v10794_v62 }
 0x46c   : > { %8167 = vmatprep.mubr.msk.f32.mxu1 %vm3217_vm5, %v11761_v17  ;;  %v11765_v17 = vld [vmem:[#allocation37_spill] sm:$0xff] }
 0x46f   : > { %8168 = vmatmul.mubr.msk.f32.gmra.mrb[14].mxu1 %vm3217_vm5, %v10807_v43 }
 0x470   : > { %8170 = vmatprep.mubr.msk.f32.mxu1 %vm3217_vm5, %v11762_v9  ;;  %v11766_v9 = vld [vmem:[#allocation39_spill] sm:$0xff] }
 0x473   : > { %8171 = vmatmul.mubr.msk.f32.gmra.mrb[16].mxu1 %vm3217_vm5, %v10820_v48 }
 0x474   : > { %8173 = vmatprep.mubr.msk.f32.mxu1 %vm3217_vm5, %v11763_v33 }
 0x477   : > { %8174 = vmatmul.mubr.msk.f32.gmra.mrb[18].mxu1 %vm3217_vm5, %v10833_v41  ;;  %v5009_v41 = vrot.slane %v10968_v29, 2 }
 0x478   : > { %8176 = vmatprep.mubr.msk.f32.mxu1 %vm3217_vm5, %v11764_v45  ;;  %v5008_v45 = vrot.slane %v10964_v28, 2 }
 0x47b   : > { %8177 = vmatmul.mubr.msk.f32.gmra.mrb[20].mxu1 %vm3217_vm5, %v10846_v34 }
 0x47c   : > { %8179 = vmatprep.mubr.msk.f32.mxu1 %vm3217_vm5, %v11765_v17 }
 0x47f   : > { %8180 = vmatmul.mubr.msk.f32.gmra.mrb[22].mxu1 %vm3217_vm5, %v10859_v20  ;;  %v5011_v20 = vrot.slane %v3356_v18, 2  ;;  %v6812_v18 = vld [vmem:[%s11439_s3 + $0x40] sm:$0xff] }
 0x480   : > { %8182 = vmatprep.mubr.msk.f32.mxu1 %vm3217_vm5, %v11766_v9  ;;  %v11113_v9 = vsel %vm1119_vm4, %v5008_v45, %v5009_v41 }
 0x483   : > { %8183 = vmatmul.mubr.msk.f32.gmra.mrb[24].mxu1 %vm3217_vm5, %v10872_v6 }
 0x484   : > { %8185 = vmatprep.mubr.msk.f32.mxu1 %vm3217_vm5, %v10878_v13  ;;  %v11118_v13 = vsel %vm1119_vm4, %v5009_v41, %v5011_v20  ;;  %v11328_v20 = vld [vmem:[%s11440_s4] ss:$0 sm:$0xff] }
 0x487   : > { %8186 = vmatmul.mubr.msk.f32.gmra.mrb[26].mxu1 %vm3217_vm5, %v10885_v3 }
 0x488   : > { %8188 = vmatprep.mubr.msk.f32.mxu1 %vm3217_vm5, %v10891_v56 }
 0x48b   : > { %8189 = vmatmul.mubr.msk.f32.gmra.mrb[28].mxu1 %vm3217_vm5, %v10896_v2 }
 0x48c   : > { %8191 = vmatprep.mubr.msk.f32.mxu1 %vm3217_vm5, %v11113_v9 }
 0x48f   : > { %8192 = vmatmul.mubr.msk.f32.gmra.mrb[30].mxu1 %vm3217_vm5, %v11118_v13 }
 0x490   : > { %8196 = vmatprep.mubr.msk.f32.mxu1 %vm3217_vm5, %v10310_v24  ;;  %v11183_v24 = vld [vmem:[#allocation3 + $0x198] sm:$0xff] }
 0x493   : > { %8197 = vmatmul.mubr.msk.f32.vlgmr.msra.gmra.mrb[0].mxu1 %vm3217_vm5, %v10312_v5  ;;  %v11189_v5 = vld [vmem:[#allocation3 + $0x1a0] sm:$0xff] }
 0x494   : > { %8245 = vmatpush3.msra.mxu1 %v6779_v19  ;;  %8199 = vmatprep.mubr.msk.f32.mxu1 %vm3217_vm5, %v10333_v25  ;;  %v11767_v25 = vld [vmem:[#allocation4_spill] sm:$0xff] }
 0x495   : > { %8294 = vmatprep.subr.mxu1 %v6812_v18 }
 0x497   : > { %8200 = vmatmul.mubr.msk.f32.gmra.mrb[2].mxu1 %vm3217_vm5, %v10335_v12  ;;  %v11768_v12 = vld [vmem:[#allocation15_spill] sm:$0xff] }
 0x498   : > { %8202 = vmatprep.mubr.msk.f32.mxu1 %vm3217_vm5, %v10356_v23  ;;  %v11769_v23 = vld [vmem:[#allocation26_spill] sm:$0xff] }
 0x49b   : > { %8203 = vmatmul.mubr.msk.f32.gmra.mrb[4].mxu1 %vm3217_vm5, %v10358_v47  ;;  %v11772_v47 = vld [vmem:[#allocation29_spill] sm:$0xff] }
 0x49c   : > { %8205 = vmatprep.mubr.msk.f32.mxu1 %vm3217_vm5, %v10379_v10  ;;  %v11775_v10 = vld [vmem:[#allocation5_spill] sm:$0xff] }
 0x49f   : > { %8206 = vmatmul.mubr.msk.f32.gmra.mrb[6].mxu1 %vm3217_vm5, %v10381_v27  ;;  %v11776_v27 = vld [vmem:[#allocation6_spill] sm:$0xff] }
 0x4a0   : > { %8208 = vmatprep.mubr.msk.f32.mxu1 %vm3217_vm5, %v10402_v22  ;;  %v11777_v22 = vld [vmem:[#allocation7_spill] sm:$0xff] }
 0x4a3   : > { %8209 = vmatmul.mubr.msk.f32.gmra.mrb[8].mxu1 %vm3217_vm5, %v10404_v7  ;;  %v11778_v7 = vld [vmem:[#allocation8_spill] sm:$0xff] }
 0x4a4   : > { %8211 = vmatprep.mubr.msk.f32.mxu1 %vm3217_vm5, %v10425_v42  ;;  %v11779_v42 = vld [vmem:[#allocation9_spill] sm:$0xff] }
 0x4a7   : > { %8212 = vmatmul.mubr.msk.f32.gmra.mrb[10].mxu1 %vm3217_vm5, %v10427_v1  ;;  %v11780_v1 = vld [vmem:[#allocation10_spill] sm:$0xff] }
 0x4a8   : > { %8214 = vmatprep.mubr.msk.f32.mxu1 %vm3217_vm5, %v10448_v60  ;;  %v11782_v60 = vld [vmem:[#allocation12_spill] sm:$0xff] }
 0x4ab   : > { %8215 = vmatmul.mubr.msk.f32.gmra.mrb[12].mxu1 %vm3217_vm5, %v10450_v15  ;;  %v11783_v15 = vld [vmem:[#allocation13_spill] sm:$0xff] }
 0x4ac   : > { %8217 = vmatprep.mubr.msk.f32.mxu1 %vm3217_vm5, %v10471_v39  ;;  %v11784_v39 = vld [vmem:[#allocation14_spill] sm:$0xff] }
 0x4af   : > { %8218 = vmatmul.mubr.msk.f32.gmra.mrb[14].mxu1 %vm3217_vm5, %v10473_v40  ;;  %v11785_v40 = vld [vmem:[#allocation17_spill] sm:$0xff] }
 0x4b0   : > { %8220 = vmatprep.mubr.msk.f32.mxu1 %vm3217_vm5, %v10494_v57  ;;  %v5542_v57 = vrot.slane %v11183_v24, 1 }
 0x4b3   : > { %8221 = vmatmul.mubr.msk.f32.gmra.mrb[16].mxu1 %vm3217_vm5, %v10496_v14  ;;  %v5543_v14 = vrot.slane %v11189_v5, 1 }
 0x4b4   : > { %8223 = vmatprep.mubr.msk.f32.mxu1 %vm3217_vm5, %v10517_v21  ;;  %v11787_v21 = vld [vmem:[#allocation20_spill] sm:$0xff] }
 0x4b7   : > { %8224 = vmatmul.mubr.msk.f32.gmra.mrb[18].mxu1 %vm3217_vm5, %v10519_v51  ;;  %v3359_v51 = vld [vmem:[#allocation3 + $0x1a8] sm:$0x3] }
 0x4b8   : > { %8226 = vmatprep.mubr.msk.f32.mxu1 %vm3217_vm5, %v10540_v16  ;;  %v11786_v16 = vld [vmem:[#allocation18_spill] sm:$0xff] }
 0x4bb   : > { %8227 = vmatmul.mubr.msk.f32.gmra.mrb[20].mxu1 %vm3217_vm5, %v10542_v49  ;;  %v5545_v49 = vrot.slane %v3359_v51, 1 }
 0x4bc   : > { %8229 = vmatprep.mubr.msk.f32.mxu1 %vm3217_vm5, %v10563_v38  ;;  %v11781_v38 = vld [vmem:[#allocation11_spill] sm:$0xff] }
 0x4bf   : > { %8230 = vmatmul.mubr.msk.f32.gmra.mrb[22].mxu1 %vm3217_vm5, %v10565_v52  ;;  %v5544_v52 = vsel %vm451_vm3, %v5542_v57, %v5543_v14 }
 0x4c0   : > { %8232 = vmatprep.mubr.msk.f32.mxu1 %vm3217_vm5, %v10585_v44  ;;  %v5546_v44 = vsel %vm451_vm3, %v5543_v14, %v5545_v49 }
 0x4c3   : > { %8233 = vmatmul.mubr.msk.f32.gmra.mrb[24].mxu1 %vm3217_vm5, %v10587_v54  ;;  %v11789_v54 = vld [vmem:[#allocation25_spill] sm:$0xff] }
 0x4c4   : > { %8235 = vmatprep.mubr.msk.f32.mxu1 %vm3217_vm5, %v10605_v59  ;;  %v11790_v59 = vld [vmem:[#allocation30_spill] sm:$0xff] }
 0x4c7   : > { %8236 = vmatmul.mubr.msk.f32.gmra.mrb[26].mxu1 %vm3217_vm5, %v10607_v46  ;;  %v11791_v46 = vld [vmem:[#allocation31_spill] sm:$0xff] }
 0x4c8   : > { %8238 = vmatprep.mubr.msk.f32.mxu1 %vm3217_vm5, %v10964_v28 }
 0x4cb   : > { %8239 = vmatmul.mubr.msk.f32.gmra.mrb[28].mxu1 %vm3217_vm5, %v10968_v29 }
 0x4cc   : > { %8241 = vmatprep.mubr.msk.f32.mxu1 %vm3217_vm5, %v11183_v24 }
 0x4cf   : > { %8242 = vmatmul.mubr.msk.f32.gmra.mrb[30].mxu1 %vm3217_vm5, %v11189_v5 }
 0x4d0   : > { %8246 = vmatprep.mubr.msk.f32.mxu1 %vm3217_vm5, %v10322_v8  ;;  %v11770_v8 = vld [vmem:[#allocation27_spill] sm:$0xff] }
 0x4d3   : > { %8247 = vmatmul.mubr.msk.f32.vlgmr.msra.gmra.mrb[0].mxu1 %vm3217_vm5, %v10325_v26  ;;  %v11771_v26 = vld [vmem:[#allocation28_spill] sm:$0xff] }
 0x4d4   : > { %8295 = vmatpush3.msra.mxu1 %v6812_v18  ;;  %8249 = vmatprep.mubr.msk.f32.mxu1 %vm3217_vm5, %v10345_v58  ;;  %v11773_v58 = vld [vmem:[#allocation36_spill] sm:$0xff] }
 0x4d7   : > { %8250 = vmatmul.mubr.msk.f32.gmra.mrb[2].mxu1 %vm3217_vm5, %v10348_v4  ;;  %v11774_v4 = vld [vmem:[#allocation41_spill] sm:$0xff] }
 0x4d8   : > { %8252 = vmatprep.mubr.msk.f32.mxu1 %vm3217_vm5, %v11767_v25 }
 0x4db   : > { %8253 = vmatmul.mubr.msk.f32.gmra.mrb[4].mxu1 %vm3217_vm5, %v11768_v12 }
 0x4dc   : > { %8255 = vmatprep.mubr.msk.f32.mxu1 %vm3217_vm5, %v11769_v23 }
 0x4df   : > { %8256 = vmatmul.mubr.msk.f32.gmra.mrb[6].mxu1 %vm3217_vm5, %v11770_v8 }
 0x4e0   : > { %8258 = vmatprep.mubr.msk.f32.mxu1 %vm3217_vm5, %v11771_v26 }
 0x4e3   : > { %8259 = vmatmul.mubr.msk.f32.gmra.mrb[8].mxu1 %vm3217_vm5, %v11772_v47 }
 0x4e4   : > { %8261 = vmatprep.mubr.msk.f32.mxu1 %vm3217_vm5, %v11773_v58 }
 0x4e7   : > { %8262 = vmatmul.mubr.msk.f32.gmra.mrb[10].mxu1 %vm3217_vm5, %v11774_v4 }
 0x4e8   : > { %8264 = vmatprep.mubr.msk.f32.mxu1 %vm3217_vm5, %v11775_v10 }
 0x4eb   : > { %8265 = vmatmul.mubr.msk.f32.gmra.mrb[12].mxu1 %vm3217_vm5, %v11776_v27 }
 0x4ec   : > { %8267 = vmatprep.mubr.msk.f32.mxu1 %vm3217_vm5, %v11777_v22 }
 0x4ef   : > { %8268 = vmatmul.mubr.msk.f32.gmra.mrb[14].mxu1 %vm3217_vm5, %v11778_v7 }
 0x4f0   : > { %8270 = vmatprep.mubr.msk.f32.mxu1 %vm3217_vm5, %v11779_v42 }
 0x4f3   : > { %8271 = vmatmul.mubr.msk.f32.gmra.mrb[16].mxu1 %vm3217_vm5, %v11780_v1 }
 0x4f4   : > { %8273 = vmatprep.mubr.msk.f32.mxu1 %vm3217_vm5, %v11781_v38 }
 0x4f7   : > { %8274 = vmatmul.mubr.msk.f32.gmra.mrb[18].mxu1 %vm3217_vm5, %v11782_v60 }
 0x4f8   : > { %8276 = vmatprep.mubr.msk.f32.mxu1 %vm3217_vm5, %v11783_v15 }
 0x4fb   : > { %8277 = vmatmul.mubr.msk.f32.gmra.mrb[20].mxu1 %vm3217_vm5, %v11784_v39 }
 0x4fc   : > { %8279 = vmatprep.mubr.msk.f32.mxu1 %vm3217_vm5, %v11750_v30 }
 0x4ff   : > { %8280 = vmatmul.mubr.msk.f32.gmra.mrb[22].mxu1 %vm3217_vm5, %v11785_v40 }
 0x500   : > { %8282 = vmatprep.mubr.msk.f32.mxu1 %vm3217_vm5, %v11786_v16 }
 0x503   : > { %8283 = vmatmul.mubr.msk.f32.gmra.mrb[24].mxu1 %vm3217_vm5, %v11753_v63 }
 0x504   : > { %8285 = vmatprep.mubr.msk.f32.mxu1 %vm3217_vm5, %v11787_v21 }
 0x507   : > { %8286 = vmatmul.mubr.msk.f32.gmra.mrb[26].mxu1 %vm3217_vm5, %v11755_v55  ;;  %v11788_v55 = vld [vmem:[#allocation24_spill] sm:$0xff] }
 0x508   : > { %8288 = vmatprep.mubr.msk.f32.mxu1 %vm3217_vm5, %v11038_v53 }
 0x50b   : > { %8289 = vmatmul.mubr.msk.f32.gmra.mrb[28].mxu1 %vm3217_vm5, %v11043_v36 }
 0x50c   : > { %8291 = vmatprep.mubr.msk.f32.mxu1 %vm3217_vm5, %v5544_v52 }
 0x50f   : > { %8292 = vmatmul.mubr.msk.f32.gmra.mrb[30].mxu1 %vm3217_vm5, %v5546_v44 }
 0x510   : > { %8296 = vmatprep.mubr.msk.f32.mxu1 %vm3217_vm5, %v10722_v35  ;;  %v11792_v35 = vld [vmem:[#allocation32_spill] sm:$0xff] }
 0x513   : > { %8297 = vmatmul.mubr.msk.f32.vlgmr.msra.gmra.mrb[0].mxu1 %vm3217_vm5, %v10729_v61  ;;  %v11793_v61 = vld [vmem:[#allocation34_spill] sm:$0xff] }
 0x514   : > { %8299 = vmatprep.mubr.msk.f32.mxu1 %vm3217_vm5, %v11756_v50 }
 0x517   : > { %8300 = vmatmul.mubr.msk.f32.gmra.mrb[2].mxu1 %vm3217_vm5, %v10742_v31  ;;  %v11795_v31 = vld [vmem:[#allocation38_spill] sm:$0xff] }
 0x518   : > { %8302 = vmatprep.mubr.msk.f32.mxu1 %vm3217_vm5, %v11757_v0 }
 0x51b   : > { %8303 = vmatmul.mubr.msk.f32.gmra.mrb[4].mxu1 %vm3217_vm5, %v10755_v32  ;;  %v11794_v32 = vld [vmem:[#allocation35_spill] sm:$0xff] }
 0x51c   : > { %8305 = vmatprep.mubr.msk.f32.mxu1 %vm3217_vm5, %v11788_v55 }
 0x51f   : > { %8306 = vmatmul.mubr.msk.f32.gmra.mrb[6].mxu1 %vm3217_vm5, %v10768_v37  ;;  %v11796_v37 = vld [vmem:[#allocation39_spill] sm:$0xff] }
 0x520   : > { %8308 = vmatprep.mubr.msk.f32.mxu1 %vm3217_vm5, %v11789_v54 }
 0x523   : > { %8309 = vmatmul.mubr.msk.f32.gmra.mrb[8].mxu1 %vm3217_vm5, %v10781_v11  ;;  %v11797_v11 = vld [vmem:[#allocation40_spill] sm:$0xff] }
 0x524   : > { %8311 = vmatprep.mubr.msk.f32.mxu1 %vm3217_vm5, %v11790_v59 }
 0x527   : > { %8312 = vmatmul.mubr.msk.f32.gmra.mrb[10].mxu1 %vm3217_vm5, %v10794_v62  ;;  %v5810_v62 = vrot.slane %v11183_v24, 2 }
 0x528   : > { %8314 = vmatprep.mubr.msk.f32.mxu1 %vm3217_vm5, %v11791_v46 }
 0x52b   : > { %8315 = vmatmul.mubr.msk.f32.gmra.mrb[12].mxu1 %vm3217_vm5, %v10807_v43  ;;  %v5811_v43 = vrot.slane %v11189_v5, 2 }
 0x52c   : > { %8317 = vmatprep.mubr.msk.f32.mxu1 %vm3217_vm5, %v11792_v35 }
 0x52d   : > { %v5812_v41 = vsel %vm1119_vm4, %v5810_v62, %v5811_v43 }
 0x52f   : > { %8318 = vmatmul.mubr.msk.f32.gmra.mrb[14].mxu1 %vm3217_vm5, %v10820_v48  ;;  %v5813_v48 = vrot.slane %v3359_v51, 2 }
 0x530   : > { %8320 = vmatprep.mubr.msk.f32.mxu1 %vm3217_vm5, %v11763_v33 }
 0x533   : > { %8321 = vmatmul.mubr.msk.f32.gmra.mrb[16].mxu1 %vm3217_vm5, %v11793_v61 }
 0x534   : > { %8323 = vmatprep.mubr.msk.f32.mxu1 %vm3217_vm5, %v11794_v32 }
 0x537   : > { %8324 = vmatmul.mubr.msk.f32.gmra.mrb[18].mxu1 %vm3217_vm5, %v10846_v34  ;;  %v5814_v34 = vsel %vm1119_vm4, %v5811_v43, %v5813_v48 }
 0x538   : > { %8326 = vmatprep.mubr.msk.f32.mxu1 %vm3217_vm5, %v11765_v17 }
 0x53b   : > { %8327 = vmatmul.mubr.msk.f32.gmra.mrb[20].mxu1 %vm3217_vm5, %v11795_v31 }
 0x53c   : > { %8329 = vmatprep.mubr.msk.f32.mxu1 %vm3217_vm5, %v11796_v37 }
 0x53f   : > { %8330 = vmatmul.mubr.msk.f32.gmra.mrb[22].mxu1 %vm3217_vm5, %v10872_v6 }
 0x540   : > { %8332 = vmatprep.mubr.msk.f32.mxu1 %vm3217_vm5, %v11797_v11 }
 0x543   : > { %8333 = vmatmul.mubr.msk.f32.gmra.mrb[24].mxu1 %vm3217_vm5, %v10885_v3 }
 0x544   : > { %8335 = vmatprep.mubr.msk.f32.mxu1 %vm3217_vm5, %v10891_v56 }
 0x547   : > { %8336 = vmatmul.mubr.msk.f32.gmra.mrb[26].mxu1 %vm3217_vm5, %v10896_v2 }
 0x548   : > { %8338 = vmatprep.mubr.msk.f32.mxu1 %vm3217_vm5, %v11113_v9 }
 0x54b   : > { %8339 = vmatmul.mubr.msk.f32.gmra.mrb[28].mxu1 %vm3217_vm5, %v11118_v13 }
 0x54c   : > { %8341 = vmatprep.mubr.msk.f32.mxu1 %vm3217_vm5, %v5812_v41 }
 0x54f   : > { %8342 = vmatmul.mubr.msk.f32.gmra.mrb[30].mxu1 %vm3217_vm5, %v5814_v34 }
 0x5e6   : > { %v8298_v6 = vpop.f32.mrb[0].mxu1 }
 0x5e7   : > { %v6084_v3 = vadd.f32 %v8298_v6, %v11328_v20  ;;  %v5885_v56 = vpop.f32.mrb[1].mxu1 }
 0x5e8   : > { %v6083_v13 = vadd.f32 %v11328_v20, %v5885_v56 }
 0x5e9   : > { %v6116_v2 = vmax.f32 %v6084_v3, 0.0 }
 0x5ea   : > { %v6115_v28 = vmax.f32 %v6083_v13, 0.0  ;;  %v8301_v29 = vpop.f32.mrb[2].mxu1 }
 0x5eb   : > { %6148 = vst.msk [vmem:[%s11336_s22 + $0x8] sm:$0xff] %vm3217_vm5, %v6116_v2  ;;  %v6086_v19 = vadd.f32 %v8301_v29, %v11328_v20  ;;  %v5895_v30 = vpop.f32.mrb[3].mxu1 }
 0x5ec   : > { %6147 = vst.msk [vmem:[%s11336_s22] sm:$0xff] %vm3217_vm5, %v6115_v28  ;;  %v6085_v53 = vadd.f32 %v11328_v20, %v5895_v30 }
 0x5ed   : > { %v6118_v36 = vmax.f32 %v6086_v19, 0.0 }
 0x5ee   : > { %v6117_v63 = vmax.f32 %v6085_v53, 0.0  ;;  %v8304_v50 = vpop.f32.mrb[4].mxu1 }
 0x5ef   : > { %6150 = vst.msk [vmem:[%s11336_s22 + $0x18] sm:$0xff] %vm3217_vm5, %v6118_v36  ;;  %v6088_v0 = vadd.f32 %v8304_v50, %v11328_v20  ;;  %v5905_v9 = vpop.f32.mrb[5].mxu1 }
 0x5f0   : > { %6149 = vst.msk [vmem:[%s11336_s22 + $0x10] sm:$0xff] %vm3217_vm5, %v6117_v63  ;;  %v6087_v33 = vadd.f32 %v11328_v20, %v5905_v9 }
 0x5f1   : > { %v6120_v45 = vmax.f32 %v6088_v0, 0.0 }
 0x5f2   : > { %v6119_v17 = vmax.f32 %v6087_v33, 0.0  ;;  %v8307_v18 = vpop.f32.mrb[6].mxu1 }
 0x5f3   : > { %6152 = vst.msk [vmem:[%s11336_s22 + $0x28] sm:$0xff] %vm3217_vm5, %v6120_v45  ;;  %v6090_v24 = vadd.f32 %v8307_v18, %v11328_v20  ;;  %v5915_v5 = vpop.f32.mrb[7].mxu1 }
 0x5f4   : > { %6151 = vst.msk [vmem:[%s11336_s22 + $0x20] sm:$0xff] %vm3217_vm5, %v6119_v17  ;;  %v6089_v25 = vadd.f32 %v11328_v20, %v5915_v5 }
 0x5f5   : > { %v6122_v12 = vmax.f32 %v6090_v24, 0.0 }
 0x5f6   : > { %v6121_v23 = vmax.f32 %v6089_v25, 0.0  ;;  %v8310_v8 = vpop.f32.mrb[8].mxu1 }
 0x5f7   : > { %6154 = vst.msk [vmem:[%s11336_s22 + $0x38] sm:$0xff] %vm3217_vm5, %v6122_v12  ;;  %v6092_v26 = vadd.f32 %v8310_v8, %v11328_v20  ;;  %v5925_v47 = vpop.f32.mrb[9].mxu1 }
 0x5f8   : > { %6153 = vst.msk [vmem:[%s11336_s22 + $0x30] sm:$0xff] %vm3217_vm5, %v6121_v23  ;;  %v6091_v58 = vadd.f32 %v11328_v20, %v5925_v47 }
 0x5f9   : > { %v6124_v4 = vmax.f32 %v6092_v26, 0.0 }
 0x5fa   : > { %v6123_v10 = vmax.f32 %v6091_v58, 0.0  ;;  %v8313_v27 = vpop.f32.mrb[10].mxu1 }
 0x5fb   : > { %6156 = vst.msk [vmem:[%s11336_s22 + $0x48] sm:$0xff] %vm3217_vm5, %v6124_v4  ;;  %v6094_v22 = vadd.f32 %v8313_v27, %v11328_v20  ;;  %v5935_v7 = vpop.f32.mrb[11].mxu1 }
 0x5fc   : > { %6155 = vst.msk [vmem:[%s11336_s22 + $0x40] sm:$0xff] %vm3217_vm5, %v6123_v10  ;;  %v6093_v42 = vadd.f32 %v11328_v20, %v5935_v7 }
 0x5fd   : > { %v6126_v1 = vmax.f32 %v6094_v22, 0.0 }
 0x5fe   : > { %v6125_v38 = vmax.f32 %v6093_v42, 0.0  ;;  %v8316_v60 = vpop.f32.mrb[12].mxu1 }
 0x5ff   : > { %6158 = vst.msk [vmem:[%s11336_s22 + $0x58] sm:$0xff] %vm3217_vm5, %v6126_v1  ;;  %v6096_v15 = vadd.f32 %v8316_v60, %v11328_v20  ;;  %v5945_v39 = vpop.f32.mrb[13].mxu1 }
 0x600   : > { %6157 = vst.msk [vmem:[%s11336_s22 + $0x50] sm:$0xff] %vm3217_vm5, %v6125_v38  ;;  %v6095_v40 = vadd.f32 %v11328_v20, %v5945_v39 }
 0x601   : > { %v6128_v16 = vmax.f32 %v6096_v15, 0.0 }
 0x602   : > { %v6127_v21 = vmax.f32 %v6095_v40, 0.0  ;;  %v8319_v57 = vpop.f32.mrb[14].mxu1 }
 0x603   : > { %6160 = vst.msk [vmem:[%s11336_s22 + $0x68] sm:$0xff] %vm3217_vm5, %v6128_v16  ;;  %v6098_v14 = vadd.f32 %v8319_v57, %v11328_v20  ;;  %v5955_v51 = vpop.f32.mrb[15].mxu1 }
 0x604   : > { %6159 = vst.msk [vmem:[%s11336_s22 + $0x60] sm:$0xff] %vm3217_vm5, %v6127_v21  ;;  %v6097_v49 = vadd.f32 %v11328_v20, %v5955_v51 }
 0x605   : > { %v6130_v52 = vmax.f32 %v6098_v14, 0.0 }
 0x606   : > { %v6129_v44 = vmax.f32 %v6097_v49, 0.0  ;;  %v8322_v55 = vpop.f32.mrb[16].mxu1 }
 0x607   : > { %6162 = vst.msk [vmem:[%s11336_s22 + $0x78] sm:$0xff] %vm3217_vm5, %v6130_v52  ;;  %v6100_v54 = vadd.f32 %v8322_v55, %v11328_v20  ;;  %v5965_v59 = vpop.f32.mrb[17].mxu1 }
 0x608   : > { %6161 = vst.msk [vmem:[%s11336_s22 + $0x70] sm:$0xff] %vm3217_vm5, %v6129_v44  ;;  %v6099_v46 = vadd.f32 %v11328_v20, %v5965_v59 }
 0x609   : > { %v6132_v35 = vmax.f32 %v6100_v54, 0.0 }
 0x60a   : > { %v6131_v61 = vmax.f32 %v6099_v46, 0.0  ;;  %v8325_v32 = vpop.f32.mrb[18].mxu1 }
 0x60b   : > { %6164 = vst.msk [vmem:[%s11336_s22 + $0x88] sm:$0xff] %vm3217_vm5, %v6132_v35  ;;  %v6102_v31 = vadd.f32 %v8325_v32, %v11328_v20  ;;  %v5975_v37 = vpop.f32.mrb[19].mxu1 }
 0x60c   : > { %6163 = vst.msk [vmem:[%s11336_s22 + $0x80] sm:$0xff] %vm3217_vm5, %v6131_v61  ;;  %v6101_v11 = vadd.f32 %v11328_v20, %v5975_v37 }
 0x60d   : > { %v6134_v62 = vmax.f32 %v6102_v31, 0.0 }
 0x60e   : > { %v6133_v43 = vmax.f32 %v6101_v11, 0.0  ;;  %v8328_v48 = vpop.f32.mrb[20].mxu1 }
 0x60f   : > { %6166 = vst.msk [vmem:[%s11336_s22 + $0x98] sm:$0xff] %vm3217_vm5, %v6134_v62  ;;  %v6104_v41 = vadd.f32 %v8328_v48, %v11328_v20  ;;  %v5985_v34 = vpop.f32.mrb[21].mxu1 }
 0x610   : > { %6165 = vst.msk [vmem:[%s11336_s22 + $0x90] sm:$0xff] %vm3217_vm5, %v6133_v43  ;;  %v6103_v6 = vadd.f32 %v11328_v20, %v5985_v34 }
 0x611   : > { %v6136_v3 = vmax.f32 %v6104_v41, 0.0 }
 0x612   : > { %v6135_v56 = vmax.f32 %v6103_v6, 0.0  ;;  %v8331_v13 = vpop.f32.mrb[22].mxu1 }
 0x613   : > { %6168 = vst.msk [vmem:[%s11336_s22 + $0xa8] sm:$0xff] %vm3217_vm5, %v6136_v3  ;;  %v6106_v2 = vadd.f32 %v8331_v13, %v11328_v20  ;;  %v5995_v28 = vpop.f32.mrb[23].mxu1 }
 0x614   : > { %6167 = vst.msk [vmem:[%s11336_s22 + $0xa0] sm:$0xff] %vm3217_vm5, %v6135_v56  ;;  %v6105_v29 = vadd.f32 %v11328_v20, %v5995_v28 }
 0x615   : > { %v6138_v19 = vmax.f32 %v6106_v2, 0.0 }
 0x616   : > { %v6137_v30 = vmax.f32 %v6105_v29, 0.0  ;;  %v8334_v53 = vpop.f32.mrb[24].mxu1 }
 0x617   : > { %6170 = vst.msk [vmem:[%s11336_s22 + $0xb8] sm:$0xff] %vm3217_vm5, %v6138_v19  ;;  %v6108_v36 = vadd.f32 %v8334_v53, %v11328_v20  ;;  %v6005_v63 = vpop.f32.mrb[25].mxu1 }
 0x618   : > { %6169 = vst.msk [vmem:[%s11336_s22 + $0xb0] sm:$0xff] %vm3217_vm5, %v6137_v30  ;;  %v6107_v50 = vadd.f32 %v11328_v20, %v6005_v63 }
 0x619   : > { %v6140_v0 = vmax.f32 %v6108_v36, 0.0 }
 0x61a   : > { %v6139_v9 = vmax.f32 %v6107_v50, 0.0  ;;  %v8337_v33 = vpop.f32.mrb[26].mxu1 }
 0x61b   : > { %6172 = vst.msk [vmem:[%s11336_s22 + $0xc8] sm:$0xff] %vm3217_vm5, %v6140_v0  ;;  %v6110_v45 = vadd.f32 %v8337_v33, %v11328_v20  ;;  %v6015_v17 = vpop.f32.mrb[27].mxu1 }
 0x61c   : > { %6171 = vst.msk [vmem:[%s11336_s22 + $0xc0] sm:$0xff] %vm3217_vm5, %v6139_v9  ;;  %v6109_v18 = vadd.f32 %v11328_v20, %v6015_v17 }
 0x61d   : > { %v6142_v24 = vmax.f32 %v6110_v45, 0.0 }
 0x61e   : > { %v6141_v5 = vmax.f32 %v6109_v18, 0.0  ;;  %v8340_v25 = vpop.f32.mrb[28].mxu1 }
 0x61f   : > { %6174 = vst.msk [vmem:[%s11336_s22 + $0xd8] sm:$0xff] %vm3217_vm5, %v6142_v24  ;;  %v6112_v12 = vadd.f32 %v8340_v25, %v11328_v20  ;;  %v6025_v23 = vpop.f32.mrb[29].mxu1 }
 0x620   : > { %6173 = vst.msk [vmem:[%s11336_s22 + $0xd0] sm:$0xff] %vm3217_vm5, %v6141_v5  ;;  %v6111_v8 = vadd.f32 %v11328_v20, %v6025_v23 }
 0x621   : > { %v6144_v26 = vmax.f32 %v6112_v12, 0.0 }
 0x622   : > { %v6143_v47 = vmax.f32 %v6111_v8, 0.0  ;;  %v8343_v58 = vpop.f32.mrb[30].mxu1 }
 0x623   : > { %6176 = vst.msk [vmem:[%s11336_s22 + $0xe8] sm:$0xff] %vm3217_vm5, %v6144_v26  ;;  %v6114_v4 = vadd.f32 %v8343_v58, %v11328_v20  ;;  %v6035_v10 = vpop.f32.mrb[31].mxu1 }
 0x624   : > { %6175 = vst.msk [vmem:[%s11336_s22 + $0xe0] sm:$0xff] %vm3217_vm5, %v6143_v47  ;;  %v6113_v27 = vadd.f32 %v11328_v20, %v6035_v10 }
 0x625   : > { %v6146_v22 = vmax.f32 %v6114_v4, 0.0 }
 0x626   : > { %v6145_v7 = vmax.f32 %v6113_v27, 0.0 }
 0x627   : > { %6178 = vst.msk [vmem:[%s11336_s22 + $0xf8] sm:$0xff] %vm3217_vm5, %v6146_v22 }
 0x628   : > { %6177 = vst.msk [vmem:[%s11336_s22 + $0xf0] sm:$0xff] %vm3217_vm5, %v6145_v7 }
 0x629 PF: > { %s15_s18 = sadd.s32 1, %s8871_s18  }
 0x62a   : > { %p12_p4 = scmp.ge.s32.totalorder %s15_s18, 4  }
 0x62c   :  { %14 = sbr.rel (!%p12_p4) target bundleno = 1 (0x1), region = 88 }

</bundles_post_ra>
